<compile_context>
chip_gen: v7x
topology: tpu7x:2x2x1
jax: 0.10.0
libtpu: 0.0.40
codegen_flags: <defaults>
</compile_context>

<pallas_src>
import math

import jax
import jax.numpy as jnp
from jax.experimental import pallas as pl
from jax.experimental.pallas import tpu as pltpu

_BN_EPS = 1e-5
_LANE = 128
_SUB = 16          # bf16 sublane packing; keep flat-row counts multiples of this


def _round_up(x, m):
    return (x + m - 1) // m * m


# ----------------------------------------------------------------------------
# Fused kernel: relu(bn1(conv1(x))) -> bn2(conv2(.)) + x -> relu, per image.
#
# Flat "padded-width" layout: an (H, W) image padded by 1 px on every side and
# flattened row-major with row pitch wp = W+2.  Output flat row m = oh*wp + ow;
# the 3x3 tap (dh, dw) of that output reads flat row m + dh*wp + dw.  Columns
# ow in {W, W+1} are junk and double as the zero padding between rows once
# they are masked to zero.
# ----------------------------------------------------------------------------
def _make_fused_block_kernel(*, wp, m_out, p0, base, rows2):
    taps = [dh * wp + dw for dh in range(3) for dw in range(3)]

    def kernel(x_ref, w1_ref, b1_ref, w2_ref, b2_ref, mask_ref, o_ref, xp2_ref):
        cp = o_ref.shape[-1]

        # ---- conv1 + folded-BN bias + ReLU ---------------------------------
        # Accumulator seeded from the broadcast bias (no separate bias pass).
        acc1 = jnp.broadcast_to(b1_ref[...], (m_out, cp))
        for t, off in enumerate(taps):
            acc1 = acc1 + jnp.dot(x_ref[pl.ds(off, m_out), :], w1_ref[t],
                                  preferred_element_type=jnp.float32)
        # Zero junk padded-width columns (and rows >= M) so they act as conv2's
        # zero padding when read back from the staging scratch.
        acc1 = jnp.maximum(acc1, 0.0) * mask_ref[...]

        # ---- stage conv1 output as conv2's zero-padded flat input (VMEM) ----
        ntail = rows2 - p0 - m_out
        xp2_ref[pl.ds(0, p0), :] = jnp.zeros((p0, cp), xp2_ref.dtype)
        xp2_ref[pl.ds(p0 + m_out, ntail), :] = jnp.zeros((ntail, cp), xp2_ref.dtype)
        xp2_ref[pl.ds(p0, m_out), :] = acc1.astype(xp2_ref.dtype)

        # ---- conv2 + folded-BN bias + residual + ReLU ------------------------
        acc2 = jnp.broadcast_to(b2_ref[...], (m_out, cp))
        for t, off in enumerate(taps):
            acc2 = acc2 + jnp.dot(xp2_ref[pl.ds(base + off, m_out), :], w2_ref[t],
                                  preferred_element_type=jnp.float32)
        # identity: x at output position (oh, ow) lives at flat row m + wp + 1.
        acc2 = acc2 + x_ref[pl.ds(wp + 1, m_out), :].astype(jnp.float32)
        o_ref[...] = jnp.maximum(acc2, 0.0).astype(o_ref.dtype)

    return kernel


def fused_basic_block(x_flat, w1, b1, w2, b2, mask, *, wp, m_out, p0, base,
                      rows2, out_dtype=jnp.bfloat16):
    B, rows_in, cp = x_flat.shape
    kernel = _make_fused_block_kernel(wp=wp, m_out=m_out, p0=p0, base=base,
                                      rows2=rows2)
    return pl.pallas_call(
        kernel,
        out_shape=jax.ShapeDtypeStruct((B, m_out, cp), out_dtype),
        grid_spec=pltpu.PrefetchScalarGridSpec(
            num_scalar_prefetch=0,
            grid=(B,),
            in_specs=[
                pl.BlockSpec((None, rows_in, cp), lambda b: (b, 0, 0)),  # x slab
                pl.BlockSpec((9, cp, cp), lambda b: (0, 0, 0)),          # w1 (resident)
                pl.BlockSpec((1, cp), lambda b: (0, 0)),                 # b1
                pl.BlockSpec((9, cp, cp), lambda b: (0, 0, 0)),          # w2 (resident)
                pl.BlockSpec((1, cp), lambda b: (0, 0)),                 # b2
                pl.BlockSpec((m_out, cp), lambda b: (0, 0)),             # junk-col mask
            ],
            out_specs=pl.BlockSpec((None, m_out, cp), lambda b: (b, 0, 0)),
            scratch_shapes=[pltpu.VMEM((rows2, cp), jnp.bfloat16)],
        ),
        compiler_params=pltpu.CompilerParams(
            dimension_semantics=("parallel",),        # B images across TCs (v7x)
            vmem_limit_bytes=32 * 1024 * 1024),
    )(x_flat, w1, b1, w2, b2, mask)


# ----------------------------------------------------------------------------
# Parameter init (mirrors BasicBlock's conv/BN init, eval-mode running stats)
# ----------------------------------------------------------------------------
def init_params(key, inplanes=64, planes=64):
    k1, k2 = jax.random.split(key)

    def conv3x3_init(k, cin, cout):
        fan_out = cout * 9                   # kaiming_normal_(mode='fan_out')
        std = math.sqrt(2.0 / fan_out)
        return jax.random.normal(k, (3, 3, cin, cout), jnp.float32) * std

    def bn_init(c):                          # eval mode: gamma=1, beta=0, stats 0/1
        return dict(gamma=jnp.ones((c,), jnp.float32),
                    beta=jnp.zeros((c,), jnp.float32),
                    mean=jnp.zeros((c,), jnp.float32),
                    var=jnp.ones((c,), jnp.float32))

    return dict(w1=conv3x3_init(k1, inplanes, planes), bn1=bn_init(planes),
                w2=conv3x3_init(k2, planes, planes), bn2=bn_init(planes),
                inplanes=inplanes, planes=planes)


def _fold_bn(w, bn):
    scale = bn["gamma"] / jnp.sqrt(bn["var"] + _BN_EPS)
    return w * scale[None, None, None, :], bn["beta"] - bn["mean"] * scale


def prepare_kernel_params(params, cpad):
    """Fold BN scale into the weights, pad channels to lane width, cast bf16."""
    w1f, b1 = _fold_bn(params["w1"], params["bn1"])
    w2f, b2 = _fold_bn(params["w2"], params["bn2"])

    def pad_w(w):
        _, _, ci, co = w.shape
        w = jnp.pad(w, ((0, 0), (0, 0), (0, cpad - ci), (0, cpad - co)))
        return w.reshape(9, cpad, cpad).astype(jnp.bfloat16)

    def pad_b(b):
        return jnp.pad(b, (0, cpad - b.shape[0])).reshape(1, cpad).astype(jnp.float32)

    return dict(w1=pad_w(w1f), b1=pad_b(b1), w2=pad_w(w2f), b2=pad_b(b2))


# ----------------------------------------------------------------------------
# Forward (eval mode)
# ----------------------------------------------------------------------------
def basic_block_forward(params, x_nchw):
    B, C, H, W = x_nchw.shape
    planes, inplanes = params["planes"], params["inplanes"]
    assert inplanes == planes and C == inplanes, \
        "only the stride=1 / downsample=None config is implemented"

    cp = _round_up(max(C, planes, _LANE), _LANE)
    kp = prepare_kernel_params(params, cp)

    wp = W + 2                                    # padded-width row pitch
    M = H * wp                                    # real flat output rows
    m_out = _round_up(M, _SUB)                    # tm == M (single M tile / image)
    rows_in = _round_up(m_out + 2 * wp + 2, _SUB)  # input rows incl. 3x3 halo
    p0 = _round_up(wp + 1, _SUB)                  # aligned staging offset in scratch
    base = p0 - (wp + 1)                          # conv2 tap base offset
    rows2 = _round_up(base + m_out + 2 * wp + 2, _SUB)

    # NCHW -> NHWC -> lane-pad channels -> 1px spatial pad -> flat padded-width.
    x = jnp.transpose(x_nchw, (0, 2, 3, 1)).astype(jnp.float32)
    x = jnp.pad(x, ((0, 0), (0, 0), (0, 0), (0, cp - C)))
    xp = jnp.pad(x, ((0, 0), (1, 1), (1, 1), (0, 0)))
    x_flat = xp.reshape(B, (H + 2) * wp, cp)
    x_flat = jnp.pad(x_flat, ((0, 0), (0, rows_in - (H + 2) * wp), (0, 0)))
    x_flat = x_flat.astype(jnp.bfloat16)

    # Mask zeroing the junk (width-padding) columns of the flat layout.
    ridx = jnp.arange(m_out)
    keep = ((ridx % wp) < W) & (ridx < M)
    mask = jnp.broadcast_to(keep[:, None], (m_out, cp)).astype(jnp.float32)

    out = fused_basic_block(x_flat, kp["w1"], kp["b1"], kp["w2"], kp["b2"], mask,
                            wp=wp, m_out=m_out, p0=p0, base=base, rows2=rows2,
                            out_dtype=jnp.bfloat16)
    # TODO(synk): stride>1 / downsample (1x1 conv) variant, training-mode BN
    # statistic updates, and SE/SRM/CSRM/IBN/IN branches are not implemented;
    # they are disabled (Identity / None) in the reproduced configuration.
    out = out[:, :M, :].reshape(B, H, wp, cp)[:, :, :W, :planes]
    return jnp.transpose(out.astype(jnp.float32), (0, 3, 1, 2))


# ----------------------------------------------------------------------------
# Plain-JAX reference (mirrors the kernel's bf16 storage precision)
# ----------------------------------------------------------------------------
def reference_forward(params, x_nchw):
    w1f, b1 = _fold_bn(params["w1"], params["bn1"])
    w2f, b2 = _fold_bn(params["w2"], params["bn2"])
    rnd = lambda a: a.astype(jnp.bfloat16).astype(jnp.float32)

    def conv(xx, w, b):
        return jax.lax.conv_general_dilated(
            xx, w, window_strides=(1, 1), padding=((1, 1), (1, 1)),
            dimension_numbers=("NHWC", "HWIO", "NHWC"),
            preferred_element_type=jnp.float32) + b

    x = jnp.transpose(x_nchw, (0, 2, 3, 1)).astype(jnp.float32)
    xr = rnd(x)
    o1 = rnd(jnp.maximum(conv(xr, rnd(w1f), b1), 0.0))   # kernel stages conv1 out in bf16
    o2 = rnd(jnp.maximum(conv(o1, rnd(w2f), b2) + xr, 0.0))
    return jnp.transpose(o2, (0, 3, 1, 2))


if __name__ == "__main__":
    key = jax.random.PRNGKey(0)
    pkey, xkey = jax.random.split(key)
    params = init_params(pkey, inplanes=64, planes=64)
    x = jax.random.normal(xkey, (2, 64, 16, 16), jnp.float32)

    out = jax.block_until_ready(basic_block_forward(params, x))
    assert out.shape == (2, 64, 16, 16), out.shape
    assert bool(jnp.all(jnp.isfinite(out)))

    ref = jax.block_until_ready(reference_forward(params, x))
    assert bool(jnp.allclose(out, ref, atol=5e-2, rtol=5e-2)), (
        float(jnp.max(jnp.abs(out - ref))))
    print("KERNEL_OK")
</pallas_src>

<mosaic_0001>
module attributes {stable_mosaic.version = 11 : i64} {
  func.func @kernel(%arg0: i32, %arg1: memref<1x336x128xbf16, #tpu.memory_space<vmem>>, %arg2: memref<9x128x128xbf16, #tpu.memory_space<vmem>>, %arg3: memref<1x128xf32, #tpu.memory_space<vmem>>, %arg4: memref<9x128x128xbf16, #tpu.memory_space<vmem>>, %arg5: memref<1x128xf32, #tpu.memory_space<vmem>>, %arg6: memref<288x128xf32, #tpu.memory_space<vmem>>, %arg7: memref<1x288x128xbf16, #tpu.memory_space<vmem>>, %arg8: memref<352x128xbf16, #tpu.memory_space<vmem>>) attributes {dimension_semantics = [#tpu.dimension_semantics<parallel>], iteration_bounds = array<i64: 2>, scalar_prefetch = 0 : i64, scratch_operands = 1 : i64, tpu.core_type = #tpu.core_type<tc>, window_params = [{transform_indices = @transform_0, window_bounds = array<i64: 1, 336, 128>}, {pipeline_mode = #tpu.pipeline_mode<synchronous>, transform_indices = @transform_1, window_bounds = array<i64: 9, 128, 128>}, {pipeline_mode = #tpu.pipeline_mode<synchronous>, transform_indices = @transform_2, window_bounds = array<i64: 1, 128>}, {pipeline_mode = #tpu.pipeline_mode<synchronous>, transform_indices = @transform_3, window_bounds = array<i64: 9, 128, 128>}, {pipeline_mode = #tpu.pipeline_mode<synchronous>, transform_indices = @transform_4, window_bounds = array<i64: 1, 128>}, {pipeline_mode = #tpu.pipeline_mode<synchronous>, transform_indices = @transform_5, window_bounds = array<i64: 288, 128>}, {transform_indices = @transform_6, window_bounds = array<i64: 1, 288, 128>}]} {
    %c0 = arith.constant 0 : index
    %c0_0 = arith.constant 0 : index
    %0 = vector.load %arg3[%c0, %c0_0] : memref<1x128xf32, #tpu.memory_space<vmem>>, vector<1x128xf32>
    %1 = vector.shape_cast %0 : vector<1x128xf32> to vector<1x128xf32>
    %2 = vector.broadcast %1 : vector<1x128xf32> to vector<288x128xf32>
    %c0_1 = arith.constant 0 : index
    %c0_2 = arith.constant 0 : index
    %c0_3 = arith.constant 0 : index
    %3 = vector.load %arg1[%c0_1, %c0_2, %c0_3] : memref<1x336x128xbf16, #tpu.memory_space<vmem>>, vector<1x288x128xbf16>
    %4 = vector.shape_cast %3 : vector<1x288x128xbf16> to vector<288x128xbf16>
    %c0_4 = arith.constant 0 : index
    %c0_5 = arith.constant 0 : index
    %c0_6 = arith.constant 0 : index
    %5 = vector.load %arg2[%c0_4, %c0_5, %c0_6] : memref<9x128x128xbf16, #tpu.memory_space<vmem>>, vector<1x128x128xbf16>
    %6 = vector.shape_cast %5 : vector<1x128x128xbf16> to vector<128x128xbf16>
    %cst = arith.constant dense<0.000000e+00> : vector<288x128xf32>
    %7 = tpu.matmul %4, %6, %cst {dimension_numbers = #tpu.dot_dimension_numbers<[1], [0], [0], [1], [0, 0, 1, 1], [], []>} : vector<288x128xbf16>, vector<128x128xbf16>, vector<288x128xf32> -> vector<288x128xf32>
    %8 = arith.addf %2, %7 : vector<288x128xf32>
    %c0_7 = arith.constant 0 : index
    %c1 = arith.constant 1 : index
    %c0_8 = arith.constant 0 : index
    %9 = vector.load %arg1[%c0_7, %c1, %c0_8] : memref<1x336x128xbf16, #tpu.memory_space<vmem>>, vector<1x288x128xbf16>
    %10 = vector.shape_cast %9 : vector<1x288x128xbf16> to vector<288x128xbf16>
    %c1_9 = arith.constant 1 : index
    %c0_10 = arith.constant 0 : index
    %c0_11 = arith.constant 0 : index
    %11 = vector.load %arg2[%c1_9, %c0_10, %c0_11] : memref<9x128x128xbf16, #tpu.memory_space<vmem>>, vector<1x128x128xbf16>
    %12 = vector.shape_cast %11 : vector<1x128x128xbf16> to vector<128x128xbf16>
    %cst_12 = arith.constant dense<0.000000e+00> : vector<288x128xf32>
    %13 = tpu.matmul %10, %12, %cst_12 {dimension_numbers = #tpu.dot_dimension_numbers<[1], [0], [0], [1], [0, 0, 1, 1], [], []>} : vector<288x128xbf16>, vector<128x128xbf16>, vector<288x128xf32> -> vector<288x128xf32>
    %14 = arith.addf %8, %13 : vector<288x128xf32>
    %c0_13 = arith.constant 0 : index
    %c2 = arith.constant 2 : index
    %c0_14 = arith.constant 0 : index
    %15 = vector.load %arg1[%c0_13, %c2, %c0_14] : memref<1x336x128xbf16, #tpu.memory_space<vmem>>, vector<1x288x128xbf16>
    %16 = vector.shape_cast %15 : vector<1x288x128xbf16> to vector<288x128xbf16>
    %c2_15 = arith.constant 2 : index
    %c0_16 = arith.constant 0 : index
    %c0_17 = arith.constant 0 : index
    %17 = vector.load %arg2[%c2_15, %c0_16, %c0_17] : memref<9x128x128xbf16, #tpu.memory_space<vmem>>, vector<1x128x128xbf16>
    %18 = vector.shape_cast %17 : vector<1x128x128xbf16> to vector<128x128xbf16>
    %cst_18 = arith.constant dense<0.000000e+00> : vector<288x128xf32>
    %19 = tpu.matmul %16, %18, %cst_18 {dimension_numbers = #tpu.dot_dimension_numbers<[1], [0], [0], [1], [0, 0, 1, 1], [], []>} : vector<288x128xbf16>, vector<128x128xbf16>, vector<288x128xf32> -> vector<288x128xf32>
    %20 = arith.addf %14, %19 : vector<288x128xf32>
    %c0_19 = arith.constant 0 : index
    %c18 = arith.constant 18 : index
    %c0_20 = arith.constant 0 : index
    %21 = vector.load %arg1[%c0_19, %c18, %c0_20] : memref<1x336x128xbf16, #tpu.memory_space<vmem>>, vector<1x288x128xbf16>
    %22 = vector.shape_cast %21 : vector<1x288x128xbf16> to vector<288x128xbf16>
    %c3 = arith.constant 3 : index
    %c0_21 = arith.constant 0 : index
    %c0_22 = arith.constant 0 : index
    %23 = vector.load %arg2[%c3, %c0_21, %c0_22] : memref<9x128x128xbf16, #tpu.memory_space<vmem>>, vector<1x128x128xbf16>
    %24 = vector.shape_cast %23 : vector<1x128x128xbf16> to vector<128x128xbf16>
    %cst_23 = arith.constant dense<0.000000e+00> : vector<288x128xf32>
    %25 = tpu.matmul %22, %24, %cst_23 {dimension_numbers = #tpu.dot_dimension_numbers<[1], [0], [0], [1], [0, 0, 1, 1], [], []>} : vector<288x128xbf16>, vector<128x128xbf16>, vector<288x128xf32> -> vector<288x128xf32>
    %26 = arith.addf %20, %25 : vector<288x128xf32>
    %c0_24 = arith.constant 0 : index
    %c19 = arith.constant 19 : index
    %c0_25 = arith.constant 0 : index
    %27 = vector.load %arg1[%c0_24, %c19, %c0_25] : memref<1x336x128xbf16, #tpu.memory_space<vmem>>, vector<1x288x128xbf16>
    %28 = vector.shape_cast %27 : vector<1x288x128xbf16> to vector<288x128xbf16>
    %c4 = arith.constant 4 : index
    %c0_26 = arith.constant 0 : index
    %c0_27 = arith.constant 0 : index
    %29 = vector.load %arg2[%c4, %c0_26, %c0_27] : memref<9x128x128xbf16, #tpu.memory_space<vmem>>, vector<1x128x128xbf16>
    %30 = vector.shape_cast %29 : vector<1x128x128xbf16> to vector<128x128xbf16>
    %cst_28 = arith.constant dense<0.000000e+00> : vector<288x128xf32>
    %31 = tpu.matmul %28, %30, %cst_28 {dimension_numbers = #tpu.dot_dimension_numbers<[1], [0], [0], [1], [0, 0, 1, 1], [], []>} : vector<288x128xbf16>, vector<128x128xbf16>, vector<288x128xf32> -> vector<288x128xf32>
    %32 = arith.addf %26, %31 : vector<288x128xf32>
    %c0_29 = arith.constant 0 : index
    %c20 = arith.constant 20 : index
    %c0_30 = arith.constant 0 : index
    %33 = vector.load %arg1[%c0_29, %c20, %c0_30] : memref<1x336x128xbf16, #tpu.memory_space<vmem>>, vector<1x288x128xbf16>
    %34 = vector.shape_cast %33 : vector<1x288x128xbf16> to vector<288x128xbf16>
    %c5 = arith.constant 5 : index
    %c0_31 = arith.constant 0 : index
    %c0_32 = arith.constant 0 : index
    %35 = vector.load %arg2[%c5, %c0_31, %c0_32] : memref<9x128x128xbf16, #tpu.memory_space<vmem>>, vector<1x128x128xbf16>
    %36 = vector.shape_cast %35 : vector<1x128x128xbf16> to vector<128x128xbf16>
    %cst_33 = arith.constant dense<0.000000e+00> : vector<288x128xf32>
    %37 = tpu.matmul %34, %36, %cst_33 {dimension_numbers = #tpu.dot_dimension_numbers<[1], [0], [0], [1], [0, 0, 1, 1], [], []>} : vector<288x128xbf16>, vector<128x128xbf16>, vector<288x128xf32> -> vector<288x128xf32>
    %38 = arith.addf %32, %37 : vector<288x128xf32>
    %c0_34 = arith.constant 0 : index
    %c36 = arith.constant 36 : index
    %c0_35 = arith.constant 0 : index
    %39 = vector.load %arg1[%c0_34, %c36, %c0_35] : memref<1x336x128xbf16, #tpu.memory_space<vmem>>, vector<1x288x128xbf16>
    %40 = vector.shape_cast %39 : vector<1x288x128xbf16> to vector<288x128xbf16>
    %c6 = arith.constant 6 : index
    %c0_36 = arith.constant 0 : index
    %c0_37 = arith.constant 0 : index
    %41 = vector.load %arg2[%c6, %c0_36, %c0_37] : memref<9x128x128xbf16, #tpu.memory_space<vmem>>, vector<1x128x128xbf16>
    %42 = vector.shape_cast %41 : vector<1x128x128xbf16> to vector<128x128xbf16>
    %cst_38 = arith.constant dense<0.000000e+00> : vector<288x128xf32>
    %43 = tpu.matmul %40, %42, %cst_38 {dimension_numbers = #tpu.dot_dimension_numbers<[1], [0], [0], [1], [0, 0, 1, 1], [], []>} : vector<288x128xbf16>, vector<128x128xbf16>, vector<288x128xf32> -> vector<288x128xf32>
    %44 = arith.addf %38, %43 : vector<288x128xf32>
    %c0_39 = arith.constant 0 : index
    %c37 = arith.constant 37 : index
    %c0_40 = arith.constant 0 : index
    %45 = vector.load %arg1[%c0_39, %c37, %c0_40] : memref<1x336x128xbf16, #tpu.memory_space<vmem>>, vector<1x288x128xbf16>
    %46 = vector.shape_cast %45 : vector<1x288x128xbf16> to vector<288x128xbf16>
    %c7 = arith.constant 7 : index
    %c0_41 = arith.constant 0 : index
    %c0_42 = arith.constant 0 : index
    %47 = vector.load %arg2[%c7, %c0_41, %c0_42] : memref<9x128x128xbf16, #tpu.memory_space<vmem>>, vector<1x128x128xbf16>
    %48 = vector.shape_cast %47 : vector<1x128x128xbf16> to vector<128x128xbf16>
    %cst_43 = arith.constant dense<0.000000e+00> : vector<288x128xf32>
    %49 = tpu.matmul %46, %48, %cst_43 {dimension_numbers = #tpu.dot_dimension_numbers<[1], [0], [0], [1], [0, 0, 1, 1], [], []>} : vector<288x128xbf16>, vector<128x128xbf16>, vector<288x128xf32> -> vector<288x128xf32>
    %50 = arith.addf %44, %49 : vector<288x128xf32>
    %c0_44 = arith.constant 0 : index
    %c38 = arith.constant 38 : index
    %c0_45 = arith.constant 0 : index
    %51 = vector.load %arg1[%c0_44, %c38, %c0_45] : memref<1x336x128xbf16, #tpu.memory_space<vmem>>, vector<1x288x128xbf16>
    %52 = vector.shape_cast %51 : vector<1x288x128xbf16> to vector<288x128xbf16>
    %c8 = arith.constant 8 : index
    %c0_46 = arith.constant 0 : index
    %c0_47 = arith.constant 0 : index
    %53 = vector.load %arg2[%c8, %c0_46, %c0_47] : memref<9x128x128xbf16, #tpu.memory_space<vmem>>, vector<1x128x128xbf16>
    %54 = vector.shape_cast %53 : vector<1x128x128xbf16> to vector<128x128xbf16>
    %cst_48 = arith.constant dense<0.000000e+00> : vector<288x128xf32>
    %55 = tpu.matmul %52, %54, %cst_48 {dimension_numbers = #tpu.dot_dimension_numbers<[1], [0], [0], [1], [0, 0, 1, 1], [], []>} : vector<288x128xbf16>, vector<128x128xbf16>, vector<288x128xf32> -> vector<288x128xf32>
    %56 = arith.addf %50, %55 : vector<288x128xf32>
    %cst_49 = arith.constant 0.000000e+00 : f32
    %57 = vector.broadcast %cst_49 : f32 to vector<288x128xf32>
    %58 = arith.maximumf %56, %57 : vector<288x128xf32>
    %c0_50 = arith.constant 0 : index
    %c0_51 = arith.constant 0 : index
    %59 = vector.load %arg6[%c0_50, %c0_51] : memref<288x128xf32, #tpu.memory_space<vmem>>, vector<288x128xf32>
    %60 = arith.mulf %58, %59 : vector<288x128xf32>
    %cst_52 = arith.constant 0.000000e+00 : bf16
    %61 = vector.broadcast %cst_52 : bf16 to vector<32x128xbf16>
    %c0_53 = arith.constant 0 : index
    %c0_54 = arith.constant 0 : index
    %62 = vector.load %arg8[%c0_53, %c0_54] : memref<352x128xbf16, #tpu.memory_space<vmem>>, vector<32x128xbf16>
    tpu.vector_store %arg8[%c0_53, %c0_54], %61 {strides = array<i32>} : memref<352x128xbf16, #tpu.memory_space<vmem>>, vector<32x128xbf16>,
    %cst_55 = arith.constant 0.000000e+00 : bf16
    %63 = vector.broadcast %cst_55 : bf16 to vector<32x128xbf16>
    %c320 = arith.constant 320 : index
    %c0_56 = arith.constant 0 : index
    %64 = vector.load %arg8[%c320, %c0_56] : memref<352x128xbf16, #tpu.memory_space<vmem>>, vector<32x128xbf16>
    tpu.vector_store %arg8[%c320, %c0_56], %63 {strides = array<i32>} : memref<352x128xbf16, #tpu.memory_space<vmem>>, vector<32x128xbf16>,
    %65 = arith.truncf %60 : vector<288x128xf32> to vector<288x128xbf16>
    %c32 = arith.constant 32 : index
    %c0_57 = arith.constant 0 : index
    %66 = vector.load %arg8[%c32, %c0_57] : memref<352x128xbf16, #tpu.memory_space<vmem>>, vector<288x128xbf16>
    tpu.vector_store %arg8[%c32, %c0_57], %65 {strides = array<i32>} : memref<352x128xbf16, #tpu.memory_space<vmem>>, vector<288x128xbf16>,
    %c0_58 = arith.constant 0 : index
    %c0_59 = arith.constant 0 : index
    %67 = vector.load %arg5[%c0_58, %c0_59] : memref<1x128xf32, #tpu.memory_space<vmem>>, vector<1x128xf32>
    %68 = vector.shape_cast %67 : vector<1x128xf32> to vector<1x128xf32>
    %69 = vector.broadcast %68 : vector<1x128xf32> to vector<288x128xf32>
    %c13 = arith.constant 13 : index
    %c0_60 = arith.constant 0 : index
    %70 = vector.load %arg8[%c13, %c0_60] : memref<352x128xbf16, #tpu.memory_space<vmem>>, vector<288x128xbf16>
    %c0_61 = arith.constant 0 : index
    %c0_62 = arith.constant 0 : index
    %c0_63 = arith.constant 0 : index
    %71 = vector.load %arg4[%c0_61, %c0_62, %c0_63] : memref<9x128x128xbf16, #tpu.memory_space<vmem>>, vector<1x128x128xbf16>
    %72 = vector.shape_cast %71 : vector<1x128x128xbf16> to vector<128x128xbf16>
    %cst_64 = arith.constant dense<0.000000e+00> : vector<288x128xf32>
    %73 = tpu.matmul %70, %72, %cst_64 {dimension_numbers = #tpu.dot_dimension_numbers<[1], [0], [0], [1], [0, 0, 1, 1], [], []>} : vector<288x128xbf16>, vector<128x128xbf16>, vector<288x128xf32> -> vector<288x128xf32>
    %74 = arith.addf %69, %73 : vector<288x128xf32>
    %c14 = arith.constant 14 : index
    %c0_65 = arith.constant 0 : index
    %75 = vector.load %arg8[%c14, %c0_65] : memref<352x128xbf16, #tpu.memory_space<vmem>>, vector<288x128xbf16>
    %c1_66 = arith.constant 1 : index
    %c0_67 = arith.constant 0 : index
    %c0_68 = arith.constant 0 : index
    %76 = vector.load %arg4[%c1_66, %c0_67, %c0_68] : memref<9x128x128xbf16, #tpu.memory_space<vmem>>, vector<1x128x128xbf16>
    %77 = vector.shape_cast %76 : vector<1x128x128xbf16> to vector<128x128xbf16>
    %cst_69 = arith.constant dense<0.000000e+00> : vector<288x128xf32>
    %78 = tpu.matmul %75, %77, %cst_69 {dimension_numbers = #tpu.dot_dimension_numbers<[1], [0], [0], [1], [0, 0, 1, 1], [], []>} : vector<288x128xbf16>, vector<128x128xbf16>, vector<288x128xf32> -> vector<288x128xf32>
    %79 = arith.addf %74, %78 : vector<288x128xf32>
    %c15 = arith.constant 15 : index
    %c0_70 = arith.constant 0 : index
    %80 = vector.load %arg8[%c15, %c0_70] : memref<352x128xbf16, #tpu.memory_space<vmem>>, vector<288x128xbf16>
    %c2_71 = arith.constant 2 : index
    %c0_72 = arith.constant 0 : index
    %c0_73 = arith.constant 0 : index
    %81 = vector.load %arg4[%c2_71, %c0_72, %c0_73] : memref<9x128x128xbf16, #tpu.memory_space<vmem>>, vector<1x128x128xbf16>
    %82 = vector.shape_cast %81 : vector<1x128x128xbf16> to vector<128x128xbf16>
    %cst_74 = arith.constant dense<0.000000e+00> : vector<288x128xf32>
    %83 = tpu.matmul %80, %82, %cst_74 {dimension_numbers = #tpu.dot_dimension_numbers<[1], [0], [0], [1], [0, 0, 1, 1], [], []>} : vector<288x128xbf16>, vector<128x128xbf16>, vector<288x128xf32> -> vector<288x128xf32>
    %84 = arith.addf %79, %83 : vector<288x128xf32>
    %c31 = arith.constant 31 : index
    %c0_75 = arith.constant 0 : index
    %85 = vector.load %arg8[%c31, %c0_75] : memref<352x128xbf16, #tpu.memory_space<vmem>>, vector<288x128xbf16>
    %c3_76 = arith.constant 3 : index
    %c0_77 = arith.constant 0 : index
    %c0_78 = arith.constant 0 : index
    %86 = vector.load %arg4[%c3_76, %c0_77, %c0_78] : memref<9x128x128xbf16, #tpu.memory_space<vmem>>, vector<1x128x128xbf16>
    %87 = vector.shape_cast %86 : vector<1x128x128xbf16> to vector<128x128xbf16>
    %cst_79 = arith.constant dense<0.000000e+00> : vector<288x128xf32>
    %88 = tpu.matmul %85, %87, %cst_79 {dimension_numbers = #tpu.dot_dimension_numbers<[1], [0], [0], [1], [0, 0, 1, 1], [], []>} : vector<288x128xbf16>, vector<128x128xbf16>, vector<288x128xf32> -> vector<288x128xf32>
    %89 = arith.addf %84, %88 : vector<288x128xf32>
    %c32_80 = arith.constant 32 : index
    %c0_81 = arith.constant 0 : index
    %90 = vector.load %arg8[%c32_80, %c0_81] : memref<352x128xbf16, #tpu.memory_space<vmem>>, vector<288x128xbf16>
    %c4_82 = arith.constant 4 : index
    %c0_83 = arith.constant 0 : index
    %c0_84 = arith.constant 0 : index
    %91 = vector.load %arg4[%c4_82, %c0_83, %c0_84] : memref<9x128x128xbf16, #tpu.memory_space<vmem>>, vector<1x128x128xbf16>
    %92 = vector.shape_cast %91 : vector<1x128x128xbf16> to vector<128x128xbf16>
    %cst_85 = arith.constant dense<0.000000e+00> : vector<288x128xf32>
    %93 = tpu.matmul %90, %92, %cst_85 {dimension_numbers = #tpu.dot_dimension_numbers<[1], [0], [0], [1], [0, 0, 1, 1], [], []>} : vector<288x128xbf16>, vector<128x128xbf16>, vector<288x128xf32> -> vector<288x128xf32>
    %94 = arith.addf %89, %93 : vector<288x128xf32>
    %c33 = arith.constant 33 : index
    %c0_86 = arith.constant 0 : index
    %95 = vector.load %arg8[%c33, %c0_86] : memref<352x128xbf16, #tpu.memory_space<vmem>>, vector<288x128xbf16>
    %c5_87 = arith.constant 5 : index
    %c0_88 = arith.constant 0 : index
    %c0_89 = arith.constant 0 : index
    %96 = vector.load %arg4[%c5_87, %c0_88, %c0_89] : memref<9x128x128xbf16, #tpu.memory_space<vmem>>, vector<1x128x128xbf16>
    %97 = vector.shape_cast %96 : vector<1x128x128xbf16> to vector<128x128xbf16>
    %cst_90 = arith.constant dense<0.000000e+00> : vector<288x128xf32>
    %98 = tpu.matmul %95, %97, %cst_90 {dimension_numbers = #tpu.dot_dimension_numbers<[1], [0], [0], [1], [0, 0, 1, 1], [], []>} : vector<288x128xbf16>, vector<128x128xbf16>, vector<288x128xf32> -> vector<288x128xf32>
    %99 = arith.addf %94, %98 : vector<288x128xf32>
    %c49 = arith.constant 49 : index
    %c0_91 = arith.constant 0 : index
    %100 = vector.load %arg8[%c49, %c0_91] : memref<352x128xbf16, #tpu.memory_space<vmem>>, vector<288x128xbf16>
    %c6_92 = arith.constant 6 : index
    %c0_93 = arith.constant 0 : index
    %c0_94 = arith.constant 0 : index
    %101 = vector.load %arg4[%c6_92, %c0_93, %c0_94] : memref<9x128x128xbf16, #tpu.memory_space<vmem>>, vector<1x128x128xbf16>
    %102 = vector.shape_cast %101 : vector<1x128x128xbf16> to vector<128x128xbf16>
    %cst_95 = arith.constant dense<0.000000e+00> : vector<288x128xf32>
    %103 = tpu.matmul %100, %102, %cst_95 {dimension_numbers = #tpu.dot_dimension_numbers<[1], [0], [0], [1], [0, 0, 1, 1], [], []>} : vector<288x128xbf16>, vector<128x128xbf16>, vector<288x128xf32> -> vector<288x128xf32>
    %104 = arith.addf %99, %103 : vector<288x128xf32>
    %c50 = arith.constant 50 : index
    %c0_96 = arith.constant 0 : index
    %105 = vector.load %arg8[%c50, %c0_96] : memref<352x128xbf16, #tpu.memory_space<vmem>>, vector<288x128xbf16>
    %c7_97 = arith.constant 7 : index
    %c0_98 = arith.constant 0 : index
    %c0_99 = arith.constant 0 : index
    %106 = vector.load %arg4[%c7_97, %c0_98, %c0_99] : memref<9x128x128xbf16, #tpu.memory_space<vmem>>, vector<1x128x128xbf16>
    %107 = vector.shape_cast %106 : vector<1x128x128xbf16> to vector<128x128xbf16>
    %cst_100 = arith.constant dense<0.000000e+00> : vector<288x128xf32>
    %108 = tpu.matmul %105, %107, %cst_100 {dimension_numbers = #tpu.dot_dimension_numbers<[1], [0], [0], [1], [0, 0, 1, 1], [], []>} : vector<288x128xbf16>, vector<128x128xbf16>, vector<288x128xf32> -> vector<288x128xf32>
    %109 = arith.addf %104, %108 : vector<288x128xf32>
    %c51 = arith.constant 51 : index
    %c0_101 = arith.constant 0 : index
    %110 = vector.load %arg8[%c51, %c0_101] : memref<352x128xbf16, #tpu.memory_space<vmem>>, vector<288x128xbf16>
    %c8_102 = arith.constant 8 : index
    %c0_103 = arith.constant 0 : index
    %c0_104 = arith.constant 0 : index
    %111 = vector.load %arg4[%c8_102, %c0_103, %c0_104] : memref<9x128x128xbf16, #tpu.memory_space<vmem>>, vector<1x128x128xbf16>
    %112 = vector.shape_cast %111 : vector<1x128x128xbf16> to vector<128x128xbf16>
    %cst_105 = arith.constant dense<0.000000e+00> : vector<288x128xf32>
    %113 = tpu.matmul %110, %112, %cst_105 {dimension_numbers = #tpu.dot_dimension_numbers<[1], [0], [0], [1], [0, 0, 1, 1], [], []>} : vector<288x128xbf16>, vector<128x128xbf16>, vector<288x128xf32> -> vector<288x128xf32>
    %114 = arith.addf %109, %113 : vector<288x128xf32>
    %c0_106 = arith.constant 0 : index
    %c19_107 = arith.constant 19 : index
    %c0_108 = arith.constant 0 : index
    %115 = vector.load %arg1[%c0_106, %c19_107, %c0_108] : memref<1x336x128xbf16, #tpu.memory_space<vmem>>, vector<1x288x128xbf16>
    %116 = vector.shape_cast %115 : vector<1x288x128xbf16> to vector<288x128xbf16>
    %117 = arith.extf %116 : vector<288x128xbf16> to vector<288x128xf32>
    %118 = arith.addf %114, %117 : vector<288x128xf32>
    %cst_109 = arith.constant 0.000000e+00 : f32
    %119 = vector.broadcast %cst_109 : f32 to vector<288x128xf32>
    %120 = arith.maximumf %118, %119 : vector<288x128xf32>
    %121 = arith.truncf %120 : vector<288x128xf32> to vector<288x128xbf16>
    %c0_110 = arith.constant 0 : index
    %c0_111 = arith.constant 0 : index
    %c0_112 = arith.constant 0 : index
    %122 = vector.load %arg7[%c0_110, %c0_111, %c0_112] : memref<1x288x128xbf16, #tpu.memory_space<vmem>>, vector<1x288x128xbf16>
    %123 = vector.shape_cast %122 : vector<1x288x128xbf16> to vector<288x128xbf16>
    %124 = vector.shape_cast %121 : vector<288x128xbf16> to vector<1x288x128xbf16>
    tpu.vector_store %arg7[%c0_110, %c0_111, %c0_112], %124 {strides = array<i32>} : memref<1x288x128xbf16, #tpu.memory_space<vmem>>, vector<1x288x128xbf16>,
    return
  }
  func.func @transform_0(%arg0: i32) -> (i32, i32, i32) {
    %c0_i32 = arith.constant 0 : i32
    %c0_i32_0 = arith.constant 0 : i32
    %c0_i32_1 = arith.constant 0 : i32
    return %arg0, %c0_i32, %c0_i32_0 : i32, i32, i32
  }
  func.func @transform_1(%arg0: i32) -> (i32, i32, i32) {
    %c0_i32 = arith.constant 0 : i32
    %c0_i32_0 = arith.constant 0 : i32
    %c0_i32_1 = arith.constant 0 : i32
    %c0_i32_2 = arith.constant 0 : i32
    return %c0_i32, %c0_i32_0, %c0_i32_1 : i32, i32, i32
  }
  func.func @transform_2(%arg0: i32) -> (i32, i32) {
    %c0_i32 = arith.constant 0 : i32
    %c0_i32_0 = arith.constant 0 : i32
    %c0_i32_1 = arith.constant 0 : i32
    return %c0_i32, %c0_i32_0 : i32, i32
  }
  func.func @transform_3(%arg0: i32) -> (i32, i32, i32) {
    %c0_i32 = arith.constant 0 : i32
    %c0_i32_0 = arith.constant 0 : i32
    %c0_i32_1 = arith.constant 0 : i32
    %c0_i32_2 = arith.constant 0 : i32
    return %c0_i32, %c0_i32_0, %c0_i32_1 : i32, i32, i32
  }
  func.func @transform_4(%arg0: i32) -> (i32, i32) {
    %c0_i32 = arith.constant 0 : i32
    %c0_i32_0 = arith.constant 0 : i32
    %c0_i32_1 = arith.constant 0 : i32
    return %c0_i32, %c0_i32_0 : i32, i32
  }
  func.func @transform_5(%arg0: i32) -> (i32, i32) {
    %c0_i32 = arith.constant 0 : i32
    %c0_i32_0 = arith.constant 0 : i32
    %c0_i32_1 = arith.constant 0 : i32
    return %c0_i32, %c0_i32_0 : i32, i32
  }
  func.func @transform_6(%arg0: i32) -> (i32, i32, i32) {
    %c0_i32 = arith.constant 0 : i32
    %c0_i32_0 = arith.constant 0 : i32
    %c0_i32_1 = arith.constant 0 : i32
    return %arg0, %c0_i32, %c0_i32_0 : i32, i32, i32
  }
}

</mosaic_0001>

<bundles_post_ra>
// kernel: tpu_custom_call.1
= control target key start
LH: loop header
LB: loop body
LE: loop exit
PB: predicated region body
PF: predicated region fallthrough
CT: control target
= control target key end

     0   :  { %11 = vsyncpa [#allocation4], 0  ;;  %s13682_s0 = inlined_call_operand.hbm [shape: bf16[2,336,128], index: 0, kind: input, shape index: {}]   ;;  %s13683_s1 = inlined_call_operand.hbm [shape: bf16[9,128,128], index: 1, kind: input, shape index: {}]   ;;  %s13684_s2 = inlined_call_operand.vmem [shape: f32[1,128], index: 2, kind: input, shape index: {}]   ;;  %s13685_s3 = inlined_call_operand.hbm [shape: bf16[9,128,128], index: 3, kind: input, shape index: {}]   ;;  %s13686_s4 = inlined_call_operand.vmem [shape: f32[1,128], index: 4, kind: input, shape index: {}]   ;;  %s13687_s5 = inlined_call_operand.hbm [shape: f32[288,128], index: 5, kind: input, shape index: {}]   ;;  %s13688_s6 = inlined_call_operand.hbm [shape: bf16[2,288,128], index: 6, kind: output, shape index: {}]  }
   0x1   :  { %13 = vsyncpa [#allocation4 + $0x1], 0 }
   0x2   :  { %14 = vsyncpa [#allocation7], 0 }
   0x3   :  { %15 = vsyncpa [#allocation10], 0 }
   0x4   :  { %16 = vsyncpa [#allocation5], 0 }
   0x5   :  { %18 = vsyncpa [#allocation5 + $0x1], 0  ;;  %s11667_s21 = smov 0   ;;  %s11669_s22 = smov 0  }
   0x6   :  { %s11671_s23 = smov 0   ;;  %s11673_s24 = smov 0  }
   0x7 LB: > { %s11688_s25 = sadd.s32 4294967295, %s11618_s24   ;;  %s8546_s26 = sadd.s32 4294967294, %s11618_s24   ;;  %s11618_s24 = sphi %s11673_s24, %s13931_s24   ;;  %s11614_s23 = sphi %s11671_s23, %s13930_s23   ;;  %s11610_s22 = sphi %s11669_s22, %s13929_s22   ;;  %s11606_s21 = sphi %s11667_s21, %s13928_s21  }
   0x8   : > { %p44_p0 = scmp.ne.s32.totalorder %s11610_s22, %s11606_s21  ;;  %p13689_p1 = scmp.eq.s32.totalorder %s11688_s25, 0 }
   0x9   : > { %p179_p3 = scmp.eq.s32.totalorder %s8546_s26, 1  ;;  %p8547_p5 = scmp.ge.s32.totalorder %s11618_s24, 1 }
   0xa   : > { %p11697_p4 = por %p13689_p1, %p44_p0  ;;  %p186_p7 = scmp.lt.s32.totalorder %s11618_s24, 3 }
   0xb   : > { %p11702_p6 = por %p179_p3, %p44_p0  ;;  %s11620_s30 = smov [#allocation6]  }
   0xc   : > { %s13752_s27 = scalar_select %p11697_p4, 1, 0 }
   0xd   : > { %s13753_s28 = scalar_select %p11702_p6, 1, 0 }
   0xe   : > { %p11707_p8 = pnand %p8547_p5, %p186_p7  ;;  %s198_s7 = sshll.u32 %s11620_s30, 4  ;;  %s11711_s7 = int_to_ptr.vmem [resolvable:$true] %s198_s7 }
   0xf   : > { %s11621_s9 = smov [#allocation8]   ;;  %s11622_s11 = smov [#allocation9]  }
  0x10   : > { %s13754_s29 = scalar_select %p11707_p8, 1, 0 }
  0x11   : > { %p11123_p9 = pneg %p11707_p8  ;;  %s214_s10 = sshll.u32 %s11621_s9, 4  ;;  %s11722_s10 = int_to_ptr.vmem [resolvable:$true] %s214_s10 }
  0x12   : > { %s11724_s12 = sshll.u32 %s11622_s11, 4  ;;  %s11430_s15 = scalar_lea.hbm %s13683_s1, 9216  ;;  %s231_s12 = int_to_ptr.vmem [resolvable:$true] %s11724_s12 }
  0x13   : > { %p11718_p11 = pnand %p11123_p9, %p13689_p1  ;;  %p11431_p12 = scmp.ne.s32.totalorder %s13683_s1, %s11430_s15 }
  0x14   : > { %p11437_p5 = scmp.lt.u32.totalorder %s11430_s15, %s13683_s1 }
  0x15   : > { %p11734_p13 = pneg %p11718_p11 }
  0x17   : > { %p11433_p0 = pnand %p11734_p13, %p11431_p12 }
  0x19   : > { %p11434_p3 = pneg %p11433_p0 }
  0x1b   : > { %p11439_p7 = pnand %p11437_p5, %p11434_p3 }
  0x1d   : > { %11442 = shalt.err (!%p11439_p7)
}
  0x1e   : > { %s11443_s26 = scalar_lea.vmem %s11711_s7, 9216  ;;  %p11451_p2 = scmp.lt.s32.totalorder %s11711_s7, %s11711_s7 }
  0x1f   : > { %p11444_p9 = scmp.ne.s32.totalorder %s11711_s7, %s11443_s26  ;;  %p11452_p6 = scmp.lt.s32.totalorder %s11443_s26, %s11443_s26 }
  0x21   : > { %p11446_p10 = pnand %p11444_p9, %p11734_p13  ;;  %p11453_p12 = por %p11452_p6, %p11451_p2 }
  0x23   : > { %p11447_p1 = pneg %p11446_p10 }
  0x25   : > { %p11454_p0 = pnand %p11453_p12, %p11447_p1 }
  0x27   : > { %11457 = shalt.err (!%p11454_p0)
}
  0x28   : > { %s13692_s30 = smov 64   ;;  %s13693_s9 = smov 4  }
  0x29   : > { %11126 = dma.hbm_to_vmem [thread:$0]  (!%p11718_p11), %s13683_s1, 9216, %s11711_s7, [#allocation7], %s13692_s30, %s13692_s30, %s13693_s9  }
  0x2a   : > { %s11458_s16 = scalar_lea.hbm %s13685_s3, 9216 }
  0x2b   : > { %p11459_p1 = scmp.ne.s32.totalorder %s13685_s3, %s11458_s16  ;;  %p11465_p10 = scmp.lt.u32.totalorder %s11458_s16, %s13685_s3 }
  0x2d   : > { %p11461_p2 = pnand %p11459_p1, %p11734_p13 }
  0x2f   : > { %p11462_p6 = pneg %p11461_p2 }
  0x31   : > { %p11467_p3 = pnand %p11465_p10, %p11462_p6 }
  0x33   : > { %11470 = shalt.err (!%p11467_p3)
}
  0x34   : > { %s11471_s7 = scalar_lea.vmem %s11722_s10, 9216  ;;  %p11479_p12 = scmp.lt.s32.totalorder %s11722_s10, %s11722_s10 }
  0x35   : > { %p11472_p5 = scmp.ne.s32.totalorder %s11722_s10, %s11471_s7  ;;  %p11480_p0 = scmp.lt.s32.totalorder %s11471_s7, %s11471_s7 }
  0x37   : > { %p11474_p7 = pnand %p11472_p5, %p11734_p13  ;;  %p11481_p1 = por %p11480_p0, %p11479_p12 }
  0x39   : > { %p11475_p9 = pneg %p11474_p7 }
  0x3b   : > { %p11482_p2 = pnand %p11481_p1, %p11475_p9 }
  0x3d   : > { %11485 = shalt.err (!%p11482_p2)
}
  0x3e   : > { %11129 = dma.hbm_to_vmem [thread:$0]  (!%p11718_p11), %s13685_s3, 9216, %s11722_s10, [#allocation7], %s13692_s30, %s13692_s30, %s13693_s9  }
  0x3f   : > { %s11486_s16 = scalar_lea.hbm %s13687_s5, 4608 }
  0x40   : > { %p11487_p6 = scmp.ne.s32.totalorder %s13687_s5, %s11486_s16  ;;  %p11493_p5 = scmp.lt.u32.totalorder %s11486_s16, %s13687_s5 }
  0x42   : > { %p11489_p10 = pnand %p11487_p6, %p11734_p13 }
  0x44   : > { %p11490_p3 = pneg %p11489_p10 }
  0x46   : > { %p11495_p7 = pnand %p11493_p5, %p11490_p3 }
  0x48   : > { %11498 = shalt.err (!%p11495_p7)
}
  0x49   : > { %s11499_s7 = scalar_lea.vmem %s231_s12, 4608  ;;  %p11507_p1 = scmp.lt.s32.totalorder %s231_s12, %s231_s12 }
  0x4a   : > { %p11500_p9 = scmp.ne.s32.totalorder %s231_s12, %s11499_s7  ;;  %p11508_p2 = scmp.lt.s32.totalorder %s11499_s7, %s11499_s7 }
  0x4c   : > { %p11502_p12 = pnand %p11500_p9, %p11734_p13  ;;  %p11509_p4 = por %p11508_p2, %p11507_p1 }
  0x4e   : > { %p11503_p0 = pneg %p11502_p12 }
  0x50   : > { %p11510_p8 = pnand %p11509_p4, %p11503_p0 }
  0x52   : > { %11513 = shalt.err (!%p11510_p8)
}
  0x53   : > { %s11625_s10 = smov 128   ;;  %s11626_s18 = smov 8  }
  0x54   : > { %11132 = dma.hbm_to_vmem [thread:$0]  (!%p11718_p11), %s13687_s5, 4608, %s231_s12, [#allocation10], %s11625_s10, %s11625_s10, %s11626_s18  }
  0x55   : > { %s11804_s14 = sadd.s32 1, %s11618_s24   ;;  %s31_s16 = sadd.s32 1, %s11614_s23 }
  0x56   : > { %s28_s15 = ssub.s32 %s11618_s24, %s11804_s14  ;;  %p38_p8 = scmp.ne.s32.totalorder %s11614_s23, %s11610_s22 }
  0x57   : > { %p29_p4 = scmp.eq.s32.totalorder %s28_s15, 0  ;;  %p39_p13 = scmp.eq.s32.totalorder %s11618_s24, 0 }
  0x58   : > { %p11144_p6 = scmp.lt.s32.totalorder %s11618_s24, 2  ;;  %p13757_p3 = scmp.eq.s32.totalorder %s11688_s25, 1 }
  0x59   : > { %s11814_s17 = scalar_select %p29_p4, %s11614_s23, %s31_s16  }
  0x5a   : > { %p40_p10 = por %p39_p13, %p38_p8  ;;  %p11818_p5 = por %p13757_p3, %p38_p8 }
  0x5b   : > { %s244_s8 = sand.u32 1, %s11614_s23   ;;  %s11103_s20 = smul.u32 2688, %s11618_s24 }
  0x5c   : > { %s11102_s12 = smul.u32 168, %s244_s8  ;;  %p11824_p11 = pnand %p11144_p6, %p40_p10 }
  0x5d   : > { %s11831_s18 = scalar_lea.hbm %s13682_s0, %s11103_s20  ;;  %s11835_s15 = scalar_lea.sflag [#allocation4], %s244_s8 }
  0x5e   : > { %s248_s11 = scalar_lea.vmem [#allocation3], %s11102_s12  ;;  %s11514_s16 = scalar_lea.hbm %s11831_s18, 2688 }
  0x5f   : > { %s255_s13 = sshll.u32 %s248_s11, 4  ;;  %p11515_p7 = scmp.ne.s32.totalorder %s11831_s18, %s11514_s16  ;;  %s11833_s13 = int_to_ptr.vmem [resolvable:$true] %s255_s13 }
  0x60   : > { %p11516_p9 = pneg %p11824_p11  ;;  %s11519_s10 = scalar_lea.hbm %s13682_s0, 5376 }
  0x61   : > { %p11520_p1 = scmp.lt.u32.totalorder %s11831_s18, %s13682_s0  ;;  %p11521_p2 = scmp.lt.u32.totalorder %s11519_s10, %s11514_s16 }
  0x62   : > { %p11517_p12 = pnand %p11516_p9, %p11515_p7  ;;  %p11523_p8 = scmp.lt.u32.totalorder %s11514_s16, %s11831_s18 }
  0x63   : > { %p11522_p4 = por %p11521_p2, %p11520_p1 }
  0x64   : > { %p11518_p0 = pneg %p11517_p12 }
  0x65   : > { %p11524_p13 = por %p11523_p8, %p11522_p4 }
  0x67   : > { %p11525_p6 = pnand %p11524_p13, %p11518_p0 }
  0x69   : > { %11528 = shalt.err (!%p11525_p6)
}
  0x6a   : > { %s11529_s8 = scalar_lea.vmem %s11833_s13, 2688  ;;  %s11627_s12 = smov [#allocation3]  }
  0x6b   : > { %p11530_p10 = scmp.ne.s32.totalorder %s11833_s13, %s11529_s8  ;;  %s11534_s11 = sshll.u32 %s11627_s12, 4  ;;  %s11535_s11 = int_to_ptr.vmem [resolvable:$false] %s11534_s11 }
  0x6c   : > { %s11536_s30 = scalar_lea.vmem %s11535_s11, 5376  ;;  %p11537_p12 = scmp.lt.s32.totalorder %s11833_s13, %s11535_s11 }
  0x6d   : > { %p11532_p3 = pnand %p11530_p10, %p11516_p9  ;;  %p11538_p1 = scmp.lt.s32.totalorder %s11536_s30, %s11529_s8 }
  0x6f   : > { %p11533_p7 = pneg %p11532_p3  ;;  %p11539_p2 = por %p11538_p1, %p11537_p12 }
  0x71   : > { %p11540_p4 = pnand %p11539_p2, %p11533_p7 }
  0x73   : > { %11543 = shalt.err (!%p11540_p4)
}
  0x74   : > { %s13760_s9 = smov 4   ;;  %s13761_s16 = smov 64  }
  0x75   : > { %11136 = dma.hbm_to_vmem [thread:$0]  (!%p11824_p11), %s11831_s18, 2688, %s11833_s13, %s11835_s15, %s13761_s16, %s13761_s16, %s13760_s9  }
  0x76   : > { %p13762_p9 = scmp.ne.s32.totalorder %s13754_s29, 0 }
  0x78   : > { %267 = sbr.rel (%p13762_p9) target bundleno = 1865 (0x749), region = 44 }
  0x7f   : > { %s11869_s20 = sand.u32 1, %s11610_s22   ;;  %p13763_p0 = scmp.ne.s32.totalorder %s13752_s27, 0 }
  0x80   : > { %s11104_s7 = smul.u32 168, %s11869_s20  ;;  %s270_s10 = scalar_lea.sflag [#allocation4], %s11869_s20 }
  0x82   : > { %s11873_s8 = scalar_lea.vmem [#allocation3], %s11104_s7 }
  0x83   : > { %11589 = dma.done.wait (%p13763_p0), %s270_s10, 2688  }
  0x84   : > { %11591 = vsyncadd (%p13763_p0), %s270_s10, 4294964608  ;;  %p13764_p11 = scmp.eq.s32.totalorder %s11688_s25, 0 }
  0x86   : > { %11593 = dma.done.wait (%p13764_p11), [#allocation7], 18432   ;;  %p13765_p8 = pmov %p13764_p11 }
  0x88   : > { %11595 = vsyncadd (%p13765_p8), [#allocation7], 4294948864  ;;  %p13766_p13 = pmov %p13765_p8 }
  0x89   : > { %p13767_p6 = pmov %p13765_p8 }
  0x8a   : > { %11597 = dma.done.wait (%p13766_p13), [#allocation10], 4608  }
  0x8b   : > { %11599 = vsyncadd (%p13767_p6), [#allocation10], 4294962688  ;;  %v11191_v0 = vld [vmem:[#allocation6] sm:$0xff]   ;;  %v11192_v1 = vld [vmem:[#allocation6 + $0x8] sm:$0xff]   ;;  %vm1339_vm0 = vcmask 1046528   ;;  %vm2611_vm3 = vcmask 1045504  }
  0x8c   : > { %9518 = vmatprep.subr.bf16.mxu0 %v11191_v0  ;;  %v11193_v2 = vld [vmem:[#allocation6 + $0x10] sm:$0xff]   ;;  %v11194_v3 = vld [vmem:[#allocation6 + $0x18] sm:$0xff]   ;;  %v11195_v5 = vld [vmem:[#allocation6 + $0x20] sm:$0xff]   ;;  %vm890_vm1 = vsmask.f32 7424  ;;  %vm3883_vm5 = vcmask 1044480  }
  0x8d   : > { %9519 = vmatpush3.bf16.msra.mxu0 %v11191_v0  ;;  %v11199_v4 = vld [vmem:[%s11873_s8] sm:$0xff]   ;;  %v11196_v6 = vld [vmem:[#allocation6 + $0x28] sm:$0xff]   ;;  %v11201_v9 = vld [vmem:[#allocation6 + $0x40] sm:$0xff]   ;;  %vm2140_vm2 = vsmask.f32 6400  ;;  %vm4877_vm7 = vcmask 1040384  }
  0x8e   : > { %9520 = vmatprep.subr.bf16.mxu0 %v11192_v1  ;;  %9534 = vmatprep.mubr.bf16.mxu0 %v11199_v4  ;;  %v11197_v7 = vld [vmem:[#allocation6 + $0x30] sm:$0xff]   ;;  %v11198_v8 = vld [vmem:[#allocation6 + $0x38] sm:$0xff]   ;;  %v11202_v11 = vld [vmem:[%s11873_s8 + $0x10] sm:$0xff]   ;;  %vm3412_vm4 = vsmask.f32 5376  ;;  %s11105_s13 = smul.u32 144, %s11869_s20 }
  0x8f   : > { %v11200_v10 = vld [vmem:[%s11873_s8 + $0x8] sm:$0xff]   ;;  %v11204_v12 = vld [vmem:[#allocation6 + $0x48] sm:$0xff]   ;;  %v11207_v13 = vld [vmem:[#allocation6 + $0x50] sm:$0xff]   ;;  %vm4390_vm6 = vsmask.f32 1280  ;;  %s11106_s12 = smul.u32 2304, %s11688_s25 }
  0x90   : > { %v11203_v14 = vld [vmem:[%s11873_s8 + $0x18] sm:$0xff]   ;;  %v11205_v15 = vld [vmem:[%s11873_s8 + $0x20] sm:$0xff]   ;;  %v11213_v17 = vld [vmem:[#allocation6 + $0x60] sm:$0xff]   ;;  %vm5212_vm8 = vsmask.f32 256  ;;  %s13531_s15 = scalar_lea.vmem [#allocation11], %s11105_s13 }
  0x91   : > { %9521 = vmatpush3.bf16.msra.mxu0 %v11192_v1  ;;  %v11210_v16 = vld [vmem:[#allocation6 + $0x58] sm:$0xff]   ;;  %v11208_v19 = vld [vmem:[%s11873_s8 + $0x30] sm:$0xff]   ;;  %v11219_v21 = vld [vmem:[#allocation6 + $0x70] sm:$0xff]   ;;  %s8444_s11 = sshll.u32 %s13531_s15, 4  ;;  %s13634_s16 = scalar_lea.hbm %s13688_s6, %s11106_s12  ;;  %s13636_s11 = int_to_ptr.vmem [resolvable:$true] %s8444_s11 }
  0x92   : > { %9522 = vmatprep.subr.bf16.mxu0 %v11193_v2  ;;  %v11206_v18 = vld [vmem:[%s11873_s8 + $0x28] sm:$0xff]   ;;  %v11216_v20 = vld [vmem:[#allocation6 + $0x68] sm:$0xff]   ;;  %v743_v22 = vld [vmem:[%s11873_s8] sm:$0xf]  ;;  %s8431_s25 = scalar_lea.sflag [#allocation5], %s11869_s20  ;;  %s11544_s7 = scalar_lea.vmem %s13636_s11, 2304 }
  0x93   : > { %v744_v23 = vld [vmem:[%s11873_s8 + $0x4] sm:$0xf]  ;;  %v11209_v24 = vld [vmem:[%s11873_s8 + $0x38] sm:$0xff]   ;;  %v11901_v28 = vld [vmem:[%s11873_s8 + $0x8] sm:$0xff]   ;;  %p11545_p10 = scmp.ne.s32.totalorder %s13636_s11, %s11544_s7  ;;  %s11629_s10 = smov [#allocation11]  }
  0x94   : > { %v11211_v25 = vld [vmem:[%s11873_s8 + $0x40] sm:$0xff]   ;;  %v11898_v27 = vcombine.low %v743_v22, %v744_v23  ;;  %v11904_v29 = vld [vmem:[%s11873_s8 + $0x10] sm:$0xff]   ;;  %v899_v31 = vshll.u32 %v11901_v28, 16  ;;  %v11212_v34 = vld [vmem:[%s11873_s8 + $0x48] sm:$0xff]   ;;  %v903_v37 = vshrl.u32 %v11901_v28, 16  ;;  %v1341_v45 = vrot.slane %v11901_v28, 1 }
  0x95   : > { %9523 = vmatpush3.bf16.msra.mxu0 %v11193_v2  ;;  %v11223_v26 = vld [vmem:[#allocation6 + $0x78] sm:$0xff]   ;;  %v11908_v32 = vld [vmem:[#allocation6 + $0x80] sm:$0xff]   ;;  %v907_v33 = vshll.u32 %v11904_v29, 16  ;;  %v11916_v38 = vld [vmem:[%s11873_s8 + $0x18] sm:$0xff]   ;;  %v911_v42 = vshrl.u32 %v11904_v29, 16  ;;  %v1343_v48 = vrot.slane %v11904_v29, 1  ;;  %p11546_p3 = pnand %p11545_p10, %p11818_p5 }
  0x96   : > { %9524 = vmatprep.subr.bf16.mxu0 %v11194_v3  ;;  %v894_v30 = vshll.u32 %v11898_v27, 16  ;;  %v11214_v35 = vld [vmem:[%s11873_s8 + $0x50] sm:$0xff]   ;;  %v892_v36 = vshrl.u32 %v11898_v27, 16  ;;  %v11920_v40 = vrot.slane %v899_v31, 1  ;;  %v11927_v43 = vld [vmem:[%s11873_s8 + $0x20] sm:$0xff]   ;;  %v11930_v44 = vld [vmem:[%s11873_s8 + $0x28] sm:$0xff]  }
  0x97   : > { %v11923_v41 = vrot.slane %v907_v33, 1  ;;  %v11934_v46 = vld [vmem:[%s11873_s8 + $0x30] sm:$0xff]   ;;  %v1318_v47 = vld [vmem:[%s11873_s8] sm:$0xe]  ;;  %v915_v49 = vshll.u32 %v11916_v38, 16  ;;  %v11940_v50 = vld [vmem:[%s11873_s8 + $0x38] sm:$0xff]   ;;  %v11944_v53 = vsel %vm1339_vm0, %v1341_v45, %v1343_v48  ;;  %p11547_p7 = pneg %p11546_p3 }
  0x98   : > { %v11918_v39 = vrot.slane %v894_v30, 1  ;;  %v11215_v51 = vld [vmem:[%s11873_s8 + $0x58] sm:$0xff]   ;;  %v8611_v52 = vcombine.low %v1318_v47, %v744_v23  ;;  %v1345_v54 = vrot.slane %v11916_v38, 1  ;;  %v1347_v55 = vrot.slane %v11927_v43, 1  ;;  %v11217_v56 = vld [vmem:[%s11873_s8 + $0x60] sm:$0xff]   ;;  %v11956_v61 = vld [vmem:[%s11873_s8 + $0x48] sm:$0xff]  }
  0x99   : > { %9525 = vmatpush3.bf16.msra.mxu0 %v11194_v3  ;;  %v919_v57 = vshrl.u32 %v11916_v38, 16  ;;  %v11951_v58 = vld [vmem:[%s11873_s8 + $0x40] sm:$0xff]   ;;  %v1349_v59 = vrot.slane %v11930_v44, 1  ;;  %v1351_v60 = vrot.slane %v11934_v46, 1  ;;  %v1353_v1 = vrot.slane %v11940_v50, 1  ;;  %v11966_v2 = vld [vmem:[%s11873_s8 + $0x50] sm:$0xff]  }
  0x9a   : > { %9526 = vmatprep.subr.bf16.mxu0 %v11195_v5  ;;  %v1340_v62 = vrot.slane %v8611_v52, 1  ;;  %v11959_v63 = vsel %vm1339_vm0, %v1343_v48, %v1345_v54  ;;  %v11962_v0 = vsel %vm1339_vm0, %v1345_v54, %v1347_v55  ;;  %v11221_v23 = vld [vmem:[%s11873_s8 + $0x78] sm:$0xff]   ;;  %v12014_v30 = vld [vmem:[%s11873_s8 + $0x68] sm:$0xff]   ;;  %v12017_v31 = vld [vmem:[%s11873_s8 + $0x70] sm:$0xff]   ;;  %v897_v47 = vor.u32 %v11918_v39, %v892_v36 }
  0x9b   : > { %v11969_v3 = vsel %vm1339_vm0, %v1347_v55, %v1349_v59  ;;  %v11972_v4 = vsel %vm1339_vm0, %v1349_v59, %v1351_v60  ;;  %v12036_v52 = vld [vmem:[%s11873_s8 + $0x80] sm:$0xff]   ;;  %v905_v36 = vor.u32 %v903_v37, %v11920_v40  ;;  %v939_v39 = vshll.u32 %v11934_v46, 16  ;;  %v12061_v37 = vld [vmem:[%s11873_s8 + $0x90] ss:$0 sps:$4 sm:$0x11]  }
  0x9c   : > { %v1371_v55 = vrot.slane %v12036_v52, 1  ;;  %v943_v29 = vshrl.u32 %v11934_v46, 16  ;;  %v11237_v46 = vld [vmem:[#allocation6 + $0x98] sm:$0xff]  }
  0x9d   : > { %9527 = vmatpush3.bf16.msra.mxu0 %v11195_v5  ;;  %v1355_v5 = vrot.slane %v11951_v58, 1  ;;  %v910_v28 = vsel %vm890_vm1, %v905_v36, %v11923_v41  ;;  %v941_v38 = vrot.slane %v939_v39, 1  ;;  %v975_v36 = vshrl.u32 %v11966_v2, 16 }
  0x9e   : > { %9528 = vmatprep.subr.bf16.mxu0 %v11196_v6 }
  0xa1   : > { %9529 = vmatpush3.bf16.msra.mxu0 %v11196_v6  ;;  %v11976_v6 = vsel %vm1339_vm0, %v1340_v62, %v1341_v45  ;;  %v11224_v45 = vld [vmem:[%s11873_s8 + $0x88] sm:$0xff]   ;;  %v11231_v62 = vld [vmem:[#allocation6 + $0x88] sm:$0xff]  }
  0xa2   : > { %9530 = vmatprep.subr.bf16.mxu0 %v11197_v7 }
  0xa5   : > { %9531 = vmatpush3.bf16.msra.mxu0 %v11197_v7  ;;  %v11979_v7 = vsel %vm1339_vm0, %v1351_v60, %v1353_v1 }
  0xa6   : > { %9532 = vmatprep.subr.bf16.mxu0 %v11198_v8 }
  0xa9   : > { %9533 = vmatpush3.bf16.msra.mxu0 %v11198_v8  ;;  %v11982_v8 = vsel %vm1339_vm0, %v1353_v1, %v1355_v5  ;;  %v12056_v1 = vld [vmem:[%s11873_s8 + $0x88] sm:$0xff]  }
  0xaa   : > { %9570 = vmatprep.subr.bf16.mxu0 %v11201_v9 }
  0xac   : > { %9535 = vmatmul.mubr.bf16.vlgmr.msra.gmra.mrb[0].mxu0 %v11200_v10  ;;  %v1357_v10 = vrot.slane %v11956_v61, 1 }
  0xad   : > { %9571 = vmatpush3.bf16.msra.mxu0 %v11201_v9  ;;  %9538 = vmatprep.mubr.bf16.mxu0 %v11202_v11  ;;  %v923_v9 = vshll.u32 %v11927_v43, 16  ;;  %v927_v11 = vshrl.u32 %v11927_v43, 16  ;;  %v1367_v43 = vrot.slane %v12017_v31, 1 }
  0xae   : > { %9572 = vmatprep.subr.bf16.mxu0 %v11204_v12 }
  0xaf   : > { %v925_v33 = vrot.slane %v923_v9, 1 }
  0xb1   : > { %9573 = vmatpush3.bf16.msra.mxu0 %v11204_v12  ;;  %v1359_v12 = vrot.slane %v11966_v2, 1 }
  0xb2   : > { %9574 = vmatprep.subr.bf16.mxu0 %v11207_v13 }
  0xb4   : > { %9539 = vmatmul.mubr.bf16.gmra.mrb[4].mxu0 %v11203_v14  ;;  %v11990_v14 = vsel %vm1339_vm0, %v1355_v5, %v1357_v10  ;;  %v11234_v5 = vld [vmem:[#allocation6 + $0x90] sm:$0xff]  }
  0xb5   : > { %9542 = vmatprep.mubr.bf16.mxu0 %v11205_v15  ;;  %9575 = vmatpush3.bf16.msra.mxu0 %v11207_v13  ;;  %v11218_v13 = vld [vmem:[%s11873_s8 + $0x68] sm:$0xff]   ;;  %v11220_v15 = vld [vmem:[%s11873_s8 + $0x70] sm:$0xff]  }
  0xb6   : > { %9576 = vmatprep.subr.bf16.mxu0 %v11210_v16 }
  0xb9   : > { %9577 = vmatpush3.bf16.msra.mxu0 %v11210_v16  ;;  %v11994_v16 = vsel %vm1339_vm0, %v1357_v10, %v1359_v12  ;;  %v947_v10 = vshll.u32 %v11940_v50, 16 }
  0xba   : > { %9578 = vmatprep.subr.bf16.mxu0 %v11213_v17 }
  0xbc   : > { %9543 = vmatmul.mubr.bf16.gmra.mrb[8].mxu0 %v11206_v18  ;;  %v12000_v18 = vld [vmem:[%s11873_s8 + $0x60] sm:$0xff]  }
  0xbd   : > { %9546 = vmatprep.mubr.bf16.mxu0 %v11208_v19  ;;  %9579 = vmatpush3.bf16.msra.mxu0 %v11213_v17  ;;  %v11997_v17 = vld [vmem:[%s11873_s8 + $0x58] sm:$0xff]   ;;  %v917_v19 = vrot.slane %v915_v49, 1  ;;  %v1363_v22 = vrot.slane %v12000_v18, 1 }
  0xbe   : > { %9580 = vmatprep.subr.bf16.mxu0 %v11216_v20  ;;  %v979_v39 = vshll.u32 %v11997_v17, 16 }
  0xbf   : > { %v921_v9 = vor.u32 %v919_v57, %v917_v19 }
  0xc1   : > { %9581 = vmatpush3.bf16.msra.mxu0 %v11216_v20  ;;  %v1361_v20 = vrot.slane %v11997_v17, 1 }
  0xc2   : > { %9582 = vmatprep.subr.bf16.mxu0 %v11219_v21 }
  0xc4   : > { %9547 = vmatmul.mubr.bf16.gmra.mrb[12].mxu0 %v11209_v24  ;;  %v12007_v24 = vsel %vm1339_vm0, %v1359_v12, %v1361_v20  ;;  %v929_v12 = vor.u32 %v927_v11, %v925_v33  ;;  %v951_v11 = vshrl.u32 %v11940_v50, 16 }
  0xc5   : > { %9550 = vmatprep.mubr.bf16.mxu0 %v11211_v25  ;;  %9583 = vmatpush3.bf16.msra.mxu0 %v11219_v21  ;;  %v931_v21 = vshll.u32 %v11930_v44, 16  ;;  %v11222_v25 = vld [vmem:[%s11873_s8 + $0x80] sm:$0xff]  }
  0xc6   : > { %9584 = vmatprep.subr.bf16.mxu0 %v11223_v26 }
  0xc7   : > { %v933_v54 = vrot.slane %v931_v21, 1  ;;  %v945_v21 = vor.u32 %v943_v29, %v941_v38 }
  0xc9   : > { %9585 = vmatpush3.bf16.msra.mxu0 %v11223_v26  ;;  %v12011_v26 = vsel %vm1339_vm0, %v1361_v20, %v1363_v22  ;;  %v926_v20 = vsel %vm890_vm1, %v921_v9, %v925_v33  ;;  %v963_v33 = vshll.u32 %v11956_v61, 16  ;;  %v991_v9 = vshrl.u32 %v12000_v18, 16 }
  0xca   : > { %9622 = vmatprep.subr.bf16.mxu0 %v11908_v32 }
  0xcc   : > { %9551 = vmatmul.mubr.bf16.gmra.mrb[16].mxu0 %v11212_v34  ;;  %v1365_v34 = vrot.slane %v12014_v30, 1 }
  0xcd   : > { %9554 = vmatprep.mubr.bf16.mxu0 %v11214_v35  ;;  %v935_v35 = vshrl.u32 %v11930_v44, 16  ;;  %v902_v44 = vsel %vm890_vm1, %v897_v47, %v11920_v40  ;;  %v965_v47 = vrot.slane %v963_v33, 1 }
  0xce   : > { %v12027_v48 = vsel %vm1339_vm0, %v1363_v22, %v1365_v34  ;;  %v12030_v49 = vsel %vm1339_vm0, %v1365_v34, %v1367_v43  ;;  %v955_v22 = vshll.u32 %v11951_v58, 16  ;;  %v11243_v34 = vld [vmem:[#allocation6 + $0xa8] sm:$0xff]  }
  0xcf   : > { %v937_v57 = vor.u32 %v935_v35, %v933_v54 }
  0xd0   : > { %v957_v35 = vrot.slane %v955_v22, 1 }
  0xd4   : > { %9555 = vmatmul.mubr.bf16.gmra.mrb[20].mxu0 %v11215_v51  ;;  %v12033_v51 = vld [vmem:[%s11873_s8 + $0x78] sm:$0xff]  }
  0xd5   : > { %9558 = vmatprep.mubr.bf16.mxu0 %v11217_v56  ;;  %v1369_v27 = vrot.slane %v12033_v51, 1  ;;  %v913_v56 = vor.u32 %v911_v42, %v11923_v41  ;;  %v1373_v42 = vrot.slane %v12056_v1, 1  ;;  %v1375_v41 = vrot.slane %v12061_v37, 1 }
  0xd7   : > { %v12050_v59 = vsel %vm1339_vm0, %v1367_v43, %v1369_v27  ;;  %v12053_v60 = vsel %vm1339_vm0, %v1369_v27, %v1371_v55  ;;  %v918_v40 = vsel %vm890_vm1, %v913_v56, %v917_v19  ;;  %v949_v19 = vrot.slane %v947_v10, 1 }
  0xd8   : > { %v942_v43 = vsel %vm890_vm1, %v937_v57, %v941_v38  ;;  %v995_v10 = vshll.u32 %v12014_v30, 16  ;;  %v1003_v57 = vshll.u32 %v12017_v31, 16 }
  0xd9   : > { %v953_v50 = vor.u32 %v951_v11, %v949_v19 }
  0xda   : > { %v997_v38 = vrot.slane %v995_v10, 1  ;;  %v1005_v22 = vrot.slane %v1003_v57, 1  ;;  %v12169_v10 = vld [vmem:[%s11873_s8 + $0x40] sm:$0xff]   ;;  %v12179_v57 = vld [vmem:[%s11873_s8 + $0x50] sm:$0xff]  }
  0xdb   : > { %v958_v56 = vsel %vm890_vm1, %v953_v50, %v957_v35 }
  0xdc   : > { %9559 = vmatmul.mubr.bf16.gmra.mrb[24].mxu0 %v11218_v13  ;;  %v12072_v13 = vsel %vm1339_vm0, %v1371_v55, %v1373_v42  ;;  %v11250_v55 = vld [vmem:[#allocation6 + $0xb8] sm:$0xff]  }
  0xdd   : > { %9562 = vmatprep.mubr.bf16.mxu0 %v11220_v15  ;;  %v12075_v15 = vsel %vm1339_vm0, %v1373_v42, %v1375_v41  ;;  %v11253_v42 = vld [vmem:[#allocation6 + $0xc0] sm:$0xff]  }
  0xe4   : > { %9563 = vmatmul.mubr.bf16.gmra.mrb[28].mxu0 %v11221_v23  ;;  %v11240_v23 = vld [vmem:[#allocation6 + $0xa0] sm:$0xff]  }
  0xe5   : > { %9566 = vmatprep.mubr.bf16.mxu0 %v11222_v25  ;;  %v959_v25 = vshrl.u32 %v11951_v58, 16  ;;  %v11246_v58 = vld [vmem:[#allocation6 + $0xb0] sm:$0xff]  }
  0xe7   : > { %v961_v27 = vor.u32 %v959_v25, %v957_v35  ;;  %v1015_v25 = vshrl.u32 %v12033_v51, 16 }
  0xec   : > { %9567 = vmatmul.mubr.bf16.gmra.mrb[32].mxu0 %v11224_v45  ;;  %v950_v45 = vsel %vm890_vm1, %v945_v21, %v949_v19  ;;  %v1011_v19 = vshll.u32 %v12033_v51, 16  ;;  %v1031_v51 = vshrl.u32 %v12056_v1, 16 }
  0xed   : > { %9586 = vmatprep.mubr.bf16.mxu0 %v902_v44  ;;  %v967_v44 = vshrl.u32 %v11956_v61, 16 }
  0xef   : > { %v969_v61 = vor.u32 %v967_v44, %v965_v47 }
  0xf4   : > { %9587 = vmatmul.mubr.bf16.vlgmr.msra.gmra.mrb[0].mxu0 %v910_v28 }
  0xf5   : > { %9623 = vmatpush3.bf16.msra.mxu0 %v11908_v32  ;;  %9590 = vmatprep.mubr.bf16.mxu0 %v918_v40  ;;  %v934_v32 = vsel %vm890_vm1, %v929_v12, %v933_v54  ;;  %v971_v54 = vshll.u32 %v11966_v2, 16  ;;  %v981_v40 = vrot.slane %v979_v39, 1  ;;  %v987_v2 = vshll.u32 %v12000_v18, 16 }
  0xf6   : > { %9624 = vmatprep.subr.bf16.mxu0 %v11231_v62  ;;  %v1007_v18 = vshrl.u32 %v12017_v31, 16  ;;  %v1027_v31 = vshll.u32 %v12056_v1, 16  ;;  %v11255_v1 = vld [vmem:[#allocation6 + $0xd0] sm:$0xff]  }
  0xf7   : > { %v973_v28 = vrot.slane %v971_v54, 1 }
  0xf8   : > { %v1009_v33 = vor.u32 %v1007_v18, %v1005_v22  ;;  %v1029_v54 = vrot.slane %v1027_v31, 1  ;;  %v11279_v18 = vld [vmem:[#allocation6 + $0x128] sm:$0xff]   ;;  %v12193_v31 = vld [vmem:[#allocation6 + $0x140] sm:$0xff]  }
  0xf9   : > { %9625 = vmatpush3.bf16.msra.mxu0 %v11231_v62  ;;  %v966_v62 = vsel %vm890_vm1, %v961_v27, %v965_v47  ;;  %v977_v29 = vor.u32 %v975_v36, %v973_v28  ;;  %v974_v41 = vsel %vm890_vm1, %v969_v61, %v973_v28  ;;  %v11258_v28 = vld [vmem:[#allocation6 + $0xe8] sm:$0xff]  }
  0xfa   : > { %9626 = vmatprep.subr.bf16.mxu0 %v11234_v5  ;;  %v1033_v36 = vor.u32 %v1031_v51, %v1029_v54  ;;  %v11267_v61 = vld [vmem:[#allocation6 + $0x108] sm:$0xff]  }
  0xfb   : > { %v982_v12 = vsel %vm890_vm1, %v977_v29, %v981_v40  ;;  %v11270_v29 = vld [vmem:[#allocation6 + $0x110] sm:$0xff]  }
  0xfc   : > { %9591 = vmatmul.mubr.bf16.gmra.mrb[4].mxu0 %v926_v20  ;;  %v999_v20 = vshrl.u32 %v12014_v30, 16  ;;  %v1013_v30 = vrot.slane %v1011_v19, 1 }
  0xfd   : > { %9594 = vmatprep.mubr.bf16.mxu0 %v934_v32  ;;  %9627 = vmatpush3.bf16.msra.mxu0 %v11234_v5  ;;  %v983_v5 = vshrl.u32 %v11997_v17, 16 }
  0xfe   : > { %9628 = vmatprep.subr.bf16.mxu0 %v11237_v46  ;;  %v1014_v35 = vsel %vm890_vm1, %v1009_v33, %v1013_v30  ;;  %v1017_v47 = vor.u32 %v1015_v25, %v1013_v30  ;;  %v12189_v33 = vld [vmem:[%s11873_s8 + $0x60] sm:$0xff]  }
  0xff   : > { %v985_v17 = vor.u32 %v983_v5, %v981_v40  ;;  %v12159_v40 = vld [vmem:[%s11873_s8 + $0x30] sm:$0xff]   ;;  %v11286_v30 = vld [vmem:[#allocation6 + $0x138] sm:$0xff]  }
 0x100   : > { %v1812_v5 = vrot.slane %v12159_v40, 1 }
 0x101   : > { %9629 = vmatpush3.bf16.msra.mxu0 %v11237_v46  ;;  %v989_v46 = vrot.slane %v987_v2, 1 }
 0x102   : > { %9630 = vmatprep.subr.bf16.mxu0 %v11240_v23 }
 0x103   : > { %v993_v32 = vor.u32 %v991_v9, %v989_v46  ;;  %v990_v11 = vsel %vm890_vm1, %v985_v17, %v989_v46  ;;  %v1816_v46 = vrot.slane %v12169_v10, 1  ;;  %v11276_v17 = vld [vmem:[#allocation6 + $0x120] sm:$0xff]  }
 0x104   : > { %9595 = vmatmul.mubr.bf16.gmra.mrb[8].mxu0 %v942_v43  ;;  %v1023_v43 = vshrl.u32 %v12036_v52, 16 }
 0x105   : > { %9598 = vmatprep.mubr.bf16.mxu0 %v950_v45  ;;  %9631 = vmatpush3.bf16.msra.mxu0 %v11240_v23  ;;  %v998_v21 = vsel %vm890_vm1, %v993_v32, %v997_v38  ;;  %v1001_v23 = vor.u32 %v999_v20, %v997_v38  ;;  %v12175_v32 = vld [vmem:[%s11873_s8 + $0x48] sm:$0xff]  }
 0x106   : > { %9632 = vmatprep.subr.bf16.mxu0 %v11243_v34  ;;  %v1818_v19 = vrot.slane %v12175_v32, 1 }
 0x107   : > { %v1006_v45 = vsel %vm890_vm1, %v1001_v23, %v1005_v22  ;;  %v12185_v23 = vld [vmem:[%s11873_s8 + $0x58] sm:$0xff]  }
 0x108   : > { %v1819_v22 = vsel %vm1339_vm0, %v1816_v46, %v1818_v19 }
 0x109   : > { %9633 = vmatpush3.bf16.msra.mxu0 %v11243_v34  ;;  %v1019_v34 = vshll.u32 %v12036_v52, 16 }
 0x10a   : > { %9634 = vmatprep.subr.bf16.mxu0 %v11246_v58 }
 0x10b   : > { %v1021_v50 = vrot.slane %v1019_v34, 1  ;;  %v1822_v34 = vrot.slane %v12185_v23, 1 }
 0x10c   : > { %9599 = vmatmul.mubr.bf16.gmra.mrb[12].mxu0 %v958_v56  ;;  %v11254_v56 = vld [vmem:[#allocation6 + $0xc8] sm:$0xff]  }
 0x10d   : > { %9602 = vmatprep.mubr.bf16.mxu0 %v966_v62  ;;  %9635 = vmatpush3.bf16.msra.mxu0 %v11246_v58  ;;  %v1025_v44 = vor.u32 %v1023_v43, %v1021_v50  ;;  %v1035_v58 = vshll.u32 %v12061_v37, 16  ;;  %v1022_v27 = vsel %vm890_vm1, %v1017_v47, %v1021_v50  ;;  %v11256_v37 = vld [vmem:[#allocation6 + $0xd8] sm:$0xff]   ;;  %v11257_v62 = vld [vmem:[#allocation6 + $0xe0] sm:$0xff]   ;;  %v1824_v43 = vrot.slane %v12189_v33, 1 }
 0x10e   : > { %9636 = vmatprep.subr.bf16.mxu0 %v11250_v55  ;;  %v12201_v47 = vld [vmem:[%s11873_s8 + $0x70] sm:$0xff]  }
 0x10f   : > { %v1030_v52 = vsel %vm890_vm1, %v1025_v44, %v1029_v54  ;;  %v1037_v39 = vrot.slane %v1035_v58, 1  ;;  %v1825_v50 = vsel %vm1339_vm0, %v1822_v34, %v1824_v43  ;;  %v1828_v54 = vrot.slane %v12201_v47, 1  ;;  %v12208_v58 = vld [vmem:[%s11873_s8 + $0x78] sm:$0xff]  }
 0x111   : > { %9637 = vmatpush3.bf16.msra.mxu0 %v11250_v55  ;;  %v1038_v55 = vsel %vm890_vm1, %v1033_v36, %v1037_v39  ;;  %v1830_v36 = vrot.slane %v12208_v58, 1 }
 0x112   : > { %9674 = vmatprep.subr.bf16.mxu0 %v11253_v42 }
 0x114   : > { %9603 = vmatmul.mubr.bf16.gmra.mrb[16].mxu0 %v974_v41  ;;  %v11273_v41 = vld [vmem:[#allocation6 + $0x118] sm:$0xff]  }
 0x115   : > { %9606 = vmatprep.mubr.bf16.mxu0 %v982_v12 }
 0x11c   : > { %9607 = vmatmul.mubr.bf16.gmra.mrb[20].mxu0 %v990_v11  ;;  %v1820_v11 = vrot.slane %v12179_v57, 1 }
 0x11d   : > { %9610 = vmatprep.mubr.bf16.mxu0 %v998_v21  ;;  %v11282_v21 = vld [vmem:[#allocation6 + $0x130] sm:$0xff]  }
 0x11e   : > { %v1821_v25 = vsel %vm1339_vm0, %v1818_v19, %v1820_v11 }
 0x124   : > { %9611 = vmatmul.mubr.bf16.gmra.mrb[24].mxu0 %v1006_v45  ;;  %v1823_v45 = vsel %vm1339_vm0, %v1820_v11, %v1822_v34 }
 0x125   : > { %9614 = vmatprep.mubr.bf16.mxu0 %v1014_v35  ;;  %v12197_v35 = vld [vmem:[%s11873_s8 + $0x68] sm:$0xff]  }
 0x126   : > { %v1826_v44 = vrot.slane %v12197_v35, 1 }
 0x128   : > { %v1827_v51 = vsel %vm1339_vm0, %v1824_v43, %v1826_v44 }
 0x12c   : > { %9615 = vmatmul.mubr.bf16.gmra.mrb[28].mxu0 %v1022_v27  ;;  %v1829_v27 = vsel %vm1339_vm0, %v1826_v44, %v1828_v54 }
 0x12d   : > { %9618 = vmatprep.mubr.bf16.mxu0 %v1030_v52  ;;  %v12212_v52 = vld [vmem:[%s11873_s8 + $0x80] sm:$0xff]  }
 0x12e   : > { %v1832_v39 = vrot.slane %v12212_v52, 1 }
 0x134   : > { %9619 = vmatmul.mubr.bf16.gmra.mrb[32].mxu0 %v1038_v55  ;;  %v1831_v55 = vsel %vm1339_vm0, %v1828_v54, %v1830_v36 }
 0x135   : > { %9638 = vmatprep.mubr.bf16.mxu0 %v11976_v6 }
 0x13c   : > { %9639 = vmatmul.mubr.bf16.vlgmr.msra.gmra.mrb[0].mxu0 %v11944_v53  ;;  %v11259_v53 = vld [vmem:[#allocation6 + $0xf0] sm:$0xff]  }
 0x13d   : > { %9675 = vmatpush3.bf16.msra.mxu0 %v11253_v42  ;;  %9642 = vmatprep.mubr.bf16.mxu0 %v11959_v63  ;;  %v11260_v63 = vld [vmem:[#allocation6 + $0xf8] sm:$0xff]   ;;  %v12165_v42 = vld [vmem:[%s11873_s8 + $0x38] sm:$0xff]  }
 0x13e   : > { %9676 = vmatprep.subr.bf16.mxu0 %v11254_v56  ;;  %v1814_v12 = vrot.slane %v12165_v42, 1 }
 0x140   : > { %v1815_v20 = vsel %vm1339_vm0, %v1812_v5, %v1814_v12  ;;  %v1817_v38 = vsel %vm1339_vm0, %v1814_v12, %v1816_v46 }
 0x141   : > { %9677 = vmatpush3.bf16.msra.mxu0 %v11254_v56  ;;  %v12218_v56 = vld [vmem:[%s11873_s8 + $0x88] sm:$0xff]  }
 0x142   : > { %9678 = vmatprep.subr.bf16.mxu0 %v11255_v1 }
 0x144   : > { %9643 = vmatmul.mubr.bf16.gmra.mrb[4].mxu0 %v11962_v0  ;;  %v11264_v0 = vld [vmem:[#allocation6 + $0x100] sm:$0xff]  }
 0x145   : > { %9646 = vmatprep.mubr.bf16.mxu0 %v11969_v3  ;;  %9679 = vmatpush3.bf16.msra.mxu0 %v11255_v1  ;;  %v1656_v3 = vld [vmem:[%s11873_s8 + $0x8] sm:$0xe]  ;;  %v12221_v1 = vld [vmem:[%s11873_s8 + $0x90] sm:$0xff]  }
 0x146   : > { %9680 = vmatprep.subr.bf16.mxu0 %v11256_v37 }
 0x149   : > { %9681 = vmatpush3.bf16.msra.mxu0 %v11256_v37  ;;  %v1833_v37 = vsel %vm1339_vm0, %v1830_v36, %v1832_v39  ;;  %v2198_v36 = vshll.u32 %v12165_v42, 16 }
 0x14a   : > { %9682 = vmatprep.subr.bf16.mxu0 %v11257_v62 }
 0x14c   : > { %9647 = vmatmul.mubr.bf16.gmra.mrb[8].mxu0 %v11972_v4  ;;  %v12131_v4 = vld [vmem:[%s11873_s8 + $0xc] sm:$0xf] }
 0x14d   : > { %9650 = vmatprep.mubr.bf16.mxu0 %v11979_v7  ;;  %9683 = vmatpush3.bf16.msra.mxu0 %v11257_v62  ;;  %v12134_v6 = vcombine.low %v1656_v3, %v12131_v4  ;;  %v12137_v7 = vld [vmem:[%s11873_s8 + $0x10] sm:$0xff]   ;;  %v1834_v62 = vrot.slane %v12218_v56, 1 }
 0x14e   : > { %9684 = vmatprep.subr.bf16.mxu0 %v11258_v28  ;;  %v2153_v3 = vshll.u32 %v12137_v7, 16 }
 0x151   : > { %9685 = vmatpush3.bf16.msra.mxu0 %v11258_v28  ;;  %v1836_v28 = vrot.slane %v12221_v1, 1 }
 0x152   : > { %9686 = vmatprep.subr.bf16.mxu0 %v11259_v53 }
 0x154   : > { %9651 = vmatmul.mubr.bf16.gmra.mrb[12].mxu0 %v11982_v8  ;;  %v1803_v8 = vrot.slane %v12134_v6, 1 }
 0x155   : > { %9654 = vmatprep.mubr.bf16.mxu0 %v11990_v14  ;;  %9687 = vmatpush3.bf16.msra.mxu0 %v11259_v53  ;;  %v1804_v14 = vrot.slane %v12137_v7, 1  ;;  %v2142_v53 = vshrl.u32 %v12134_v6, 16 }
 0x156   : > { %9688 = vmatprep.subr.bf16.mxu0 %v11260_v63 }
 0x159   : > { %9689 = vmatpush3.bf16.msra.mxu0 %v11260_v63  ;;  %v2145_v63 = vshll.u32 %v12134_v6, 16 }
 0x15a   : > { %9726 = vmatprep.subr.bf16.mxu0 %v11264_v0 }
 0x15c   : > { %9655 = vmatmul.mubr.bf16.gmra.mrb[16].mxu0 %v11994_v16  ;;  %v12144_v16 = vld [vmem:[%s11873_s8 + $0x18] sm:$0xff]  }
 0x15d   : > { %9658 = vmatprep.mubr.bf16.mxu0 %v12007_v24  ;;  %v1805_v24 = vsel %vm1339_vm0, %v1803_v8, %v1804_v14  ;;  %v1835_v8 = vsel %vm1339_vm0, %v1832_v39, %v1834_v62  ;;  %v2162_v6 = vshll.u32 %v12144_v16, 16 }
 0x15f   : > { %v2164_v46 = vrot.slane %v2162_v6, 2 }
 0x164   : > { %9659 = vmatmul.mubr.bf16.gmra.mrb[20].mxu0 %v12011_v26  ;;  %v12148_v26 = vld [vmem:[%s11873_s8 + $0x20] sm:$0xff]  }
 0x165   : > { %9662 = vmatprep.mubr.bf16.mxu0 %v12027_v48  ;;  %v1806_v48 = vrot.slane %v12144_v16, 1 }
 0x16c   : > { %9663 = vmatmul.mubr.bf16.gmra.mrb[24].mxu0 %v12030_v49  ;;  %v1808_v49 = vrot.slane %v12148_v26, 1 }
 0x16d   : > { %9666 = vmatprep.mubr.bf16.mxu0 %v12050_v59  ;;  %v1807_v59 = vsel %vm1339_vm0, %v1804_v14, %v1806_v48  ;;  %v1837_v14 = vsel %vm1339_vm0, %v1834_v62, %v1836_v28  ;;  %v2207_v62 = vshll.u32 %v12169_v10, 16 }
 0x174   : > { %9667 = vmatmul.mubr.bf16.gmra.mrb[28].mxu0 %v12053_v60  ;;  %v12155_v60 = vld [vmem:[%s11873_s8 + $0x28] sm:$0xff]  }
 0x175   : > { %9670 = vmatprep.mubr.bf16.mxu0 %v12072_v13  ;;  %v1809_v13 = vsel %vm1339_vm0, %v1806_v48, %v1808_v49  ;;  %v2144_v48 = vrot.slane %v2142_v53, 1  ;;  %v2177_v19 = vshrl.u32 %v12155_v60, 16  ;;  %v2180_v11 = vshll.u32 %v12155_v60, 16 }
 0x177   : > { %v2179_v34 = vrot.slane %v2177_v19, 1  ;;  %v2182_v43 = vrot.slane %v2180_v11, 2  ;;  %v11294_v19 = vld [vmem:[#allocation6 + $0x170] sm:$0xff]  }
 0x17c   : > { %9671 = vmatmul.mubr.bf16.gmra.mrb[32].mxu0 %v12075_v15  ;;  %v1810_v15 = vrot.slane %v12155_v60, 1 }
 0x17d   : > { %9690 = vmatprep.mubr.bf16.mxu0 %v1805_v24  ;;  %v11287_v24 = vld [vmem:[%s11873_s8 + $0x98] ss:$0 sps:$4 sm:$0x11]  }
 0x17e   : > { %v1811_v2 = vsel %vm1339_vm0, %v1808_v49, %v1810_v15  ;;  %v1813_v9 = vsel %vm1339_vm0, %v1810_v15, %v1812_v5  ;;  %v2147_v49 = vrot.slane %v2145_v63, 2  ;;  %v2159_v15 = vshrl.u32 %v12144_v16, 16 }
 0x17f   : > { %v2200_v63 = vrot.slane %v2198_v36, 2  ;;  %v12268_v36 = vld [vmem:[#allocation6 + $0x180] sm:$0xff]  }
 0x180   : > { %v2148_v5 = vor.u32 %v2147_v49, %v2144_v48  ;;  %v2161_v12 = vrot.slane %v2159_v15, 1  ;;  %v2216_v48 = vshll.u32 %v12175_v32, 16 }
 0x184   : > { %9691 = vmatmul.mubr.bf16.vlgmr.msra.gmra.mrb[0].mxu0 %v1807_v59 }
 0x185   : > { %9727 = vmatpush3.bf16.msra.mxu0 %v11264_v0  ;;  %9694 = vmatprep.mubr.bf16.mxu0 %v1809_v13  ;;  %v2150_v0 = vshrl.u32 %v12137_v7, 16  ;;  %v2155_v13 = vrot.slane %v2153_v3, 2  ;;  %v2209_v3 = vrot.slane %v2207_v62, 2 }
 0x186   : > { %9728 = vmatprep.subr.bf16.mxu0 %v11267_v61 }
 0x187   : > { %v2152_v59 = vrot.slane %v2150_v0, 1 }
 0x189   : > { %9729 = vmatpush3.bf16.msra.mxu0 %v11267_v61  ;;  %v1838_v61 = vrot.slane %v11287_v24, 1  ;;  %v2213_v24 = vshrl.u32 %v12175_v32, 16 }
 0x18a   : > { %9730 = vmatprep.subr.bf16.mxu0 %v11270_v29 }
 0x18b   : > { %v2215_v6 = vrot.slane %v2213_v24, 1 }
 0x18c   : > { %9695 = vmatmul.mubr.bf16.gmra.mrb[4].mxu0 %v1811_v2  ;;  %v2168_v2 = vshrl.u32 %v12148_v26, 16 }
 0x18d   : > { %9698 = vmatprep.mubr.bf16.mxu0 %v1813_v9  ;;  %9731 = vmatpush3.bf16.msra.mxu0 %v11270_v29  ;;  %v2156_v29 = vor.u32 %v2155_v13, %v2152_v59  ;;  %v2171_v9 = vshll.u32 %v12148_v26, 16  ;;  %v2222_v59 = vshrl.u32 %v12179_v57, 16  ;;  %v2225_v13 = vshll.u32 %v12179_v57, 16 }
 0x18e   : > { %9732 = vmatprep.subr.bf16.mxu0 %v11273_v41 }
 0x191   : > { %9733 = vmatpush3.bf16.msra.mxu0 %v11273_v41  ;;  %v1839_v41 = vsel %vm1339_vm0, %v1836_v28, %v1838_v61  ;;  %v11292_v61 = vld [vmem:[#allocation6 + $0x160] sm:$0xff]  }
 0x192   : > { %9734 = vmatprep.subr.bf16.mxu0 %v11276_v17 }
 0x194   : > { %9699 = vmatmul.mubr.bf16.gmra.mrb[8].mxu0 %v1815_v20  ;;  %v2170_v20 = vrot.slane %v2168_v2, 1  ;;  %v2224_v2 = vrot.slane %v2222_v59, 1 }
 0x195   : > { %9702 = vmatprep.mubr.bf16.mxu0 %v1817_v38  ;;  %9735 = vmatpush3.bf16.msra.mxu0 %v11276_v17  ;;  %v2157_v17 = vsel %vm2140_vm2, %v2148_v5, %v2156_v29  ;;  %v2173_v38 = vrot.slane %v2171_v9, 2  ;;  %v2218_v5 = vrot.slane %v2216_v48, 2  ;;  %v2227_v9 = vrot.slane %v2225_v13, 2 }
 0x196   : > { %9736 = vmatprep.subr.bf16.mxu0 %v11279_v18 }
 0x199   : > { %9737 = vmatpush3.bf16.msra.mxu0 %v11279_v18  ;;  %v2165_v18 = vor.u32 %v2164_v46, %v2161_v12  ;;  %v2219_v12 = vor.u32 %v2218_v5, %v2215_v6  ;;  %v2231_v46 = vshrl.u32 %v12185_v23, 16  ;;  %v2285_v6 = vshrl.u32 %v12218_v56, 16 }
 0x19a   : > { %9738 = vmatprep.subr.bf16.mxu0 %v11282_v21  ;;  %v2288_v5 = vshll.u32 %v12218_v56, 16 }
 0x19c   : > { %9703 = vmatmul.mubr.bf16.gmra.mrb[12].mxu0 %v1819_v22  ;;  %v2186_v22 = vshrl.u32 %v12159_v40, 16 }
 0x19d   : > { %9706 = vmatprep.mubr.bf16.mxu0 %v1821_v25  ;;  %9739 = vmatpush3.bf16.msra.mxu0 %v11282_v21  ;;  %v2174_v21 = vor.u32 %v2173_v38, %v2170_v20  ;;  %v2189_v25 = vshll.u32 %v12159_v40, 16  ;;  %v2228_v20 = vor.u32 %v2227_v9, %v2224_v2  ;;  %v2240_v38 = vshrl.u32 %v12189_v33, 16 }
 0x19e   : > { %9740 = vmatprep.subr.bf16.mxu0 %v11286_v30  ;;  %v2188_v44 = vrot.slane %v2186_v22, 1  ;;  %v2294_v2 = vshrl.u32 %v12221_v1, 16  ;;  %v2297_v9 = vshll.u32 %v12221_v1, 16 }
 0x19f   : > { %v2191_v54 = vrot.slane %v2189_v25, 2  ;;  %v2229_v25 = vsel %vm2140_vm2, %v2219_v12, %v2228_v20 }
 0x1a1   : > { %9741 = vmatpush3.bf16.msra.mxu0 %v11286_v30  ;;  %v2166_v30 = vsel %vm2140_vm2, %v2156_v29, %v2165_v18  ;;  %v2192_v39 = vor.u32 %v2191_v54, %v2188_v44  ;;  %v2252_v44 = vshll.u32 %v12197_v35, 16 }
 0x1a2   : > { %9778 = vmatprep.subr.bf16.mxu0 %v12193_v31 }
 0x1a4   : > { %9707 = vmatmul.mubr.bf16.gmra.mrb[16].mxu0 %v1823_v45  ;;  %v2175_v45 = vsel %vm2140_vm2, %v2165_v18, %v2174_v21  ;;  %v2243_v18 = vshll.u32 %v12189_v33, 16 }
 0x1a5   : > { %9710 = vmatprep.mubr.bf16.mxu0 %v1825_v50  ;;  %v11289_v50 = vld [vmem:[#allocation6 + $0x148] sm:$0xff]  }
 0x1ac   : > { %9711 = vmatmul.mubr.bf16.gmra.mrb[20].mxu0 %v1827_v51  ;;  %v2183_v51 = vor.u32 %v2182_v43, %v2179_v34  ;;  %v2245_v34 = vrot.slane %v2243_v18, 2  ;;  %v11295_v43 = vld [vmem:[#allocation6 + $0x178] sm:$0xff]   ;;  %v2299_v18 = vrot.slane %v2297_v9, 2 }
 0x1ad   : > { %9714 = vmatprep.mubr.bf16.mxu0 %v1829_v27  ;;  %v2195_v27 = vshrl.u32 %v12165_v42, 16 }
 0x1ae   : > { %v2184_v28 = vsel %vm2140_vm2, %v2174_v21, %v2183_v51  ;;  %v2233_v21 = vrot.slane %v2231_v46, 1  ;;  %v2290_v46 = vrot.slane %v2288_v5, 2  ;;  %v2639_v5 = vrot.slane %v12208_v58, 2 }
 0x1af   : > { %v2197_v53 = vrot.slane %v2195_v27, 1  ;;  %v2261_v27 = vshll.u32 %v12201_v47, 16 }
 0x1b4   : > { %9715 = vmatmul.mubr.bf16.gmra.mrb[24].mxu0 %v1831_v55  ;;  %v11290_v55 = vld [vmem:[#allocation6 + $0x150] sm:$0xff]  }
 0x1b5   : > { %9718 = vmatprep.mubr.bf16.mxu0 %v1833_v37  ;;  %v2204_v37 = vshrl.u32 %v12169_v10, 16 }
 0x1b7   : > { %v2206_v0 = vrot.slane %v2204_v37, 1  ;;  %v2254_v37 = vrot.slane %v2252_v44, 2 }
 0x1b9   : > { %v2210_v49 = vor.u32 %v2209_v3, %v2206_v0  ;;  %v2270_v0 = vshll.u32 %v12208_v58, 16 }
 0x1bb   : > { %v2220_v11 = vsel %vm2140_vm2, %v2210_v49, %v2219_v12  ;;  %v2287_v12 = vrot.slane %v2285_v6, 1  ;;  %v2637_v6 = vrot.slane %v12201_v47, 2 }
 0x1bc   : > { %9719 = vmatmul.mubr.bf16.gmra.mrb[28].mxu0 %v1835_v8  ;;  %v11291_v8 = vld [vmem:[#allocation6 + $0x158] sm:$0xff]  }
 0x1bd   : > { %9722 = vmatprep.mubr.bf16.mxu0 %v1837_v14  ;;  %v2201_v14 = vor.u32 %v2200_v63, %v2197_v53  ;;  %v2263_v53 = vrot.slane %v2261_v27, 2 }
 0x1bf   : > { %v2202_v15 = vsel %vm2140_vm2, %v2192_v39, %v2201_v14  ;;  %v2211_v29 = vsel %vm2140_vm2, %v2201_v14, %v2210_v49  ;;  %v2279_v14 = vshll.u32 %v12212_v52, 16  ;;  %v2272_v49 = vrot.slane %v2270_v0, 2 }
 0x1c0   : > { %v2623_v0 = vrot.slane %v12165_v42, 2  ;;  %v11304_v42 = vld [vmem:[#allocation6 + $0x1b0] sm:$0xff]  }
 0x1c4   : > { %9723 = vmatmul.mubr.bf16.gmra.mrb[32].mxu0 %v1839_v41  ;;  %v11293_v41 = vld [vmem:[#allocation6 + $0x168] sm:$0xff]  }
 0x1c5   : > { %9742 = vmatprep.mubr.bf16.mxu0 %v2157_v17  ;;  %v2234_v17 = vshll.u32 %v12185_v23, 16 }
 0x1c7   : > { %v2236_v22 = vrot.slane %v2234_v17, 2  ;;  %v12285_v17 = vld [vmem:[%s11873_s8 + $0x98] ss:$0 sps:$4 sm:$0x33]  }
 0x1cc   : > { %9743 = vmatmul.mubr.bf16.vlgmr.msra.gmra.mrb[0].mxu0 %v2166_v30  ;;  %v2242_v30 = vrot.slane %v2240_v38, 1  ;;  %v2296_v38 = vrot.slane %v2294_v2, 1  ;;  %v2640_v2 = vsel %vm2611_vm3, %v2637_v6, %v2639_v5 }
 0x1cd   : > { %9779 = vmatpush3.bf16.msra.mxu0 %v12193_v31  ;;  %9746 = vmatprep.mubr.bf16.mxu0 %v2175_v45  ;;  %v2193_v31 = vsel %vm2140_vm2, %v2183_v51, %v2192_v39  ;;  %v2237_v45 = vor.u32 %v2236_v22, %v2233_v21  ;;  %v2258_v51 = vshrl.u32 %v12201_v47, 16  ;;  %v2306_v21 = vshll.u32 %v12285_v17, 16 }
 0x1ce   : > { %9780 = vmatprep.subr.bf16.mxu0 %v11289_v50  ;;  %v2246_v54 = vor.u32 %v2245_v34, %v2242_v30  ;;  %v2300_v22 = vor.u32 %v2299_v18, %v2296_v38  ;;  %v2645_v47 = vrot.slane %v12221_v1, 2 }
 0x1cf   : > { %v2238_v39 = vsel %vm2140_vm2, %v2228_v20, %v2237_v45 }
 0x1d0   : > { %v2247_v62 = vsel %vm2140_vm2, %v2237_v45, %v2246_v54 }
 0x1d1   : > { %9781 = vmatpush3.bf16.msra.mxu0 %v11289_v50  ;;  %v2249_v50 = vshrl.u32 %v12197_v35, 16 }
 0x1d2   : > { %9782 = vmatprep.subr.bf16.mxu0 %v11290_v55 }
 0x1d4   : > { %9747 = vmatmul.mubr.bf16.gmra.mrb[4].mxu0 %v2184_v28  ;;  %v2260_v28 = vrot.slane %v2258_v51, 1  ;;  %v2613_v51 = vrot.slane %v12137_v7, 2  ;;  %v2619_v7 = vrot.slane %v12155_v60, 2  ;;  %v11302_v60 = vld [vmem:[#allocation6 + $0x1a0] sm:$0xff]  }
 0x1d5   : > { %9750 = vmatprep.mubr.bf16.mxu0 %v2193_v31  ;;  %9783 = vmatpush3.bf16.msra.mxu0 %v11290_v55  ;;  %v2251_v55 = vrot.slane %v2249_v50, 1  ;;  %v2267_v31 = vshrl.u32 %v12208_v58, 16 }
 0x1d6   : > { %9784 = vmatprep.subr.bf16.mxu0 %v11291_v8  ;;  %v2264_v3 = vor.u32 %v2263_v53, %v2260_v28  ;;  %v11299_v28 = vld [vmem:[#allocation6 + $0x188] sm:$0xff]   ;;  %v2621_v53 = vrot.slane %v12159_v40, 2 }
 0x1d7   : > { %v2255_v63 = vor.u32 %v2254_v37, %v2251_v55  ;;  %v2269_v48 = vrot.slane %v2267_v31, 1  ;;  %v2615_v55 = vrot.slane %v12144_v16, 2  ;;  %v2617_v37 = vrot.slane %v12148_v26, 2  ;;  %v11301_v26 = vld [vmem:[#allocation6 + $0x198] sm:$0xff]  }
 0x1d8   : > { %v2622_v16 = vsel %vm2611_vm3, %v2619_v7, %v2621_v53 }
 0x1d9   : > { %9785 = vmatpush3.bf16.msra.mxu0 %v11291_v8  ;;  %v2276_v8 = vshrl.u32 %v12212_v52, 16  ;;  %v2256_v24 = vsel %vm2140_vm2, %v2246_v54, %v2255_v63  ;;  %v2265_v59 = vsel %vm2140_vm2, %v2255_v63, %v2264_v3  ;;  %v11300_v63 = vld [vmem:[#allocation6 + $0x190] sm:$0xff]   ;;  %v2620_v31 = vsel %vm2611_vm3, %v2617_v37, %v2619_v7 }
 0x1da   : > { %9786 = vmatprep.subr.bf16.mxu0 %v11292_v61 }
 0x1db   : > { %v2278_v13 = vrot.slane %v2276_v8, 1  ;;  %v11303_v8 = vld [vmem:[#allocation6 + $0x1a8] sm:$0xff]  }
 0x1dc   : > { %9751 = vmatmul.mubr.bf16.gmra.mrb[8].mxu0 %v2202_v15  ;;  %v2273_v15 = vor.u32 %v2272_v49, %v2269_v48  ;;  %v11305_v49 = vld [vmem:[#allocation6 + $0x1b8] sm:$0xff]  }
 0x1dd   : > { %9754 = vmatprep.mubr.bf16.mxu0 %v2211_v29  ;;  %9787 = vmatpush3.bf16.msra.mxu0 %v11292_v61  ;;  %v2281_v61 = vrot.slane %v2279_v14, 2  ;;  %v2627_v14 = vrot.slane %v12175_v32, 2  ;;  %v11309_v32 = vld [vmem:[#allocation6 + $0x1c0] sm:$0xff]  }
 0x1de   : > { %9788 = vmatprep.subr.bf16.mxu0 %v11293_v41 }
 0x1df   : > { %v2282_v29 = vor.u32 %v2281_v61, %v2278_v13  ;;  %v2633_v13 = vrot.slane %v12189_v33, 2 }
 0x1e1   : > { %9789 = vmatpush3.bf16.msra.mxu0 %v11293_v41  ;;  %v2274_v41 = vsel %vm2140_vm2, %v2264_v3, %v2273_v15  ;;  %v2283_v20 = vsel %vm2140_vm2, %v2273_v15, %v2282_v29  ;;  %v2624_v3 = vsel %vm2611_vm3, %v2621_v53, %v2623_v0  ;;  %v2635_v15 = vrot.slane %v12197_v35, 2  ;;  %v12375_v53 = vld [vmem:[%s11873_s8 + $0x50] sm:$0xff]  }
 0x1e2   : > { %9790 = vmatprep.subr.bf16.mxu0 %v11294_v19  ;;  %v2643_v35 = vrot.slane %v12218_v56, 2  ;;  %v2647_v56 = vrot.slane %v12285_v17, 2 }
 0x1e3   : > { %v2638_v33 = vsel %vm2611_vm3, %v2635_v15, %v2637_v6 }
 0x1e4   : > { %9755 = vmatmul.mubr.bf16.gmra.mrb[12].mxu0 %v2220_v11  ;;  %v2303_v11 = vshrl.u32 %v12285_v17, 16  ;;  %v2646_v58 = vsel %vm2611_vm3, %v2643_v35, %v2645_v47  ;;  %v2648_v18 = vsel %vm2611_vm3, %v2645_v47, %v2647_v56 }
 0x1e5   : > { %9758 = vmatprep.mubr.bf16.mxu0 %v2229_v25  ;;  %9791 = vmatpush3.bf16.msra.mxu0 %v11294_v19  ;;  %v2291_v19 = vor.u32 %v2290_v46, %v2287_v12  ;;  %v2590_v25 = vld [vmem:[%s11873_s8 + $0x8] sm:$0xc]  ;;  %v12330_v12 = vld [vmem:[%s11873_s8 + $0x14] sm:$0xf] }
 0x1e6   : > { %9792 = vmatprep.subr.bf16.mxu0 %v11295_v43  ;;  %v2305_v34 = vrot.slane %v2303_v11, 1  ;;  %v8656_v50 = vcombine.low %v2590_v25, %v12131_v4  ;;  %v2618_v4 = vsel %vm2611_vm3, %v2615_v55, %v2617_v37  ;;  %v11318_v37 = vld [vmem:[#allocation6 + $0x1d8] sm:$0xff]  }
 0x1e7   : > { %v2292_v30 = vsel %vm2140_vm2, %v2282_v29, %v2291_v19  ;;  %v2301_v45 = vsel %vm2140_vm2, %v2291_v19, %v2300_v22  ;;  %v2641_v29 = vrot.slane %v12212_v52, 2  ;;  %v12345_v19 = vld [vmem:[%s11873_s8 + $0x20] sm:$0xff]  }
 0x1e8   : > { %v2612_v54 = vrot.slane %v8656_v50, 2 }
 0x1e9   : > { %9793 = vmatpush3.bf16.msra.mxu0 %v11295_v43  ;;  %v2308_v43 = vrot.slane %v2306_v21, 2  ;;  %v2642_v9 = vsel %vm2611_vm3, %v2639_v5, %v2641_v29  ;;  %v2644_v46 = vsel %vm2611_vm3, %v2641_v29, %v2643_v35  ;;  %v12349_v21 = vld [vmem:[%s11873_s8 + $0x28] sm:$0xff]  }
 0x1ea   : > { %9830 = vmatprep.subr.bf16.mxu0 %v12268_v36  ;;  %v3080_v25 = vrot.slane %v12349_v21, 2 }
 0x1eb   : > { %v2309_v44 = vor.u32 %v2308_v43, %v2305_v34  ;;  %v11312_v43 = vld [vmem:[#allocation6 + $0x1c8] sm:$0xff]  }
 0x1ec   : > { %9759 = vmatmul.mubr.bf16.gmra.mrb[16].mxu0 %v2238_v39  ;;  %v2614_v39 = vsel %vm2611_vm3, %v2612_v54, %v2613_v51  ;;  %v11315_v54 = vld [vmem:[#allocation6 + $0x1d0] sm:$0xff]  }
 0x1ed   : > { %9762 = vmatprep.mubr.bf16.mxu0 %v2247_v62  ;;  %v2310_v27 = vsel %vm2140_vm2, %v2300_v22, %v2309_v44  ;;  %v2616_v62 = vsel %vm2611_vm3, %v2613_v51, %v2615_v55  ;;  %v3078_v22 = vrot.slane %v12345_v19, 2  ;;  %v12369_v55 = vld [vmem:[%s11873_s8 + $0x48] sm:$0xff]  }
 0x1ef   : > { %v3081_v34 = vsel %vm2611_vm3, %v3078_v22, %v3080_v25 }
 0x1f4   : > { %9763 = vmatmul.mubr.bf16.gmra.mrb[20].mxu0 %v2256_v24  ;;  %v2629_v24 = vrot.slane %v12179_v57, 2 }
 0x1f5   : > { %9766 = vmatprep.mubr.bf16.mxu0 %v2265_v59  ;;  %v2631_v59 = vrot.slane %v12185_v23, 2  ;;  %v2636_v23 = vsel %vm2611_vm3, %v2633_v13, %v2635_v15  ;;  %v12408_v15 = vld [vmem:[%s11873_s8 + $0x80] sm:$0xff]  }
 0x1f6   : > { %v2630_v48 = vsel %vm2611_vm3, %v2627_v14, %v2629_v24 }
 0x1f7   : > { %v2632_v57 = vsel %vm2611_vm3, %v2629_v24, %v2631_v59  ;;  %v2634_v61 = vsel %vm2611_vm3, %v2631_v59, %v2633_v13  ;;  %v12401_v13 = vld [vmem:[%s11873_s8 + $0x78] sm:$0xff]  }
 0x1fc   : > { %9767 = vmatmul.mubr.bf16.gmra.mrb[24].mxu0 %v2274_v41  ;;  %v2928_v41 = vld [vmem:[%s11873_s8 + $0x10] sm:$0xc] }
 0x1fd   : > { %9770 = vmatprep.mubr.bf16.mxu0 %v2283_v20  ;;  %v12335_v52 = vcombine.low %v2928_v41, %v12330_v12  ;;  %v12338_v20 = vld [vmem:[%s11873_s8 + $0x18] sm:$0xff]  }
 0x1fe   : > { %v3076_v38 = vrot.slane %v12338_v20, 2  ;;  %v3422_v56 = vshrl.u32 %v12338_v20, 16 }
 0x1ff   : > { %v3075_v1 = vrot.slane %v12335_v52, 2 }
 0x200   : > { %v3079_v17 = vsel %vm2611_vm3, %v3076_v38, %v3078_v22 }
 0x201   : > { %v3077_v11 = vsel %vm2611_vm3, %v3075_v1, %v3076_v38  ;;  %v3425_v1 = vshll.u32 %v12338_v20, 16 }
 0x204   : > { %9771 = vmatmul.mubr.bf16.gmra.mrb[28].mxu0 %v2292_v30  ;;  %v12355_v30 = vld [vmem:[%s11873_s8 + $0x30] sm:$0xff]  }
 0x205   : > { %9774 = vmatprep.mubr.bf16.mxu0 %v2301_v45  ;;  %v12359_v45 = vld [vmem:[%s11873_s8 + $0x38] sm:$0xff]   ;;  %v3082_v50 = vrot.slane %v12355_v30, 2 }
 0x206   : > { %v3084_v44 = vrot.slane %v12359_v45, 2 }
 0x207   : > { %v3083_v51 = vsel %vm2611_vm3, %v3080_v25, %v3082_v50 }
 0x20c   : > { %9775 = vmatmul.mubr.bf16.gmra.mrb[32].mxu0 %v2310_v27  ;;  %v12365_v27 = vld [vmem:[%s11873_s8 + $0x40] sm:$0xff]  }
 0x20d   : > { %9794 = vmatprep.mubr.bf16.mxu0 %v2614_v39  ;;  %v3085_v39 = vsel %vm2611_vm3, %v3082_v50, %v3084_v44  ;;  %v3431_v50 = vshrl.u32 %v12345_v19, 16 }
 0x214   : > { %9795 = vmatmul.mubr.bf16.vlgmr.msra.gmra.mrb[0].mxu0 %v2616_v62  ;;  %v3086_v62 = vrot.slane %v12365_v27, 2 }
 0x215   : > { %9831 = vmatpush3.bf16.msra.mxu0 %v12268_v36  ;;  %9798 = vmatprep.mubr.bf16.mxu0 %v2618_v4  ;;  %v2625_v36 = vrot.slane %v12169_v10, 2  ;;  %v3088_v4 = vrot.slane %v12369_v55, 2 }
 0x216   : > { %9832 = vmatprep.subr.bf16.mxu0 %v11299_v28  ;;  %v3087_v7 = vsel %vm2611_vm3, %v3084_v44, %v3086_v62 }
 0x217   : > { %v2626_v40 = vsel %vm2611_vm3, %v2623_v0, %v2625_v36  ;;  %v2628_v10 = vsel %vm2611_vm3, %v2625_v36, %v2627_v14  ;;  %v11327_v36 = vld [vmem:[#allocation6 + $0x1f0] sm:$0xff]   ;;  %v11331_v14 = vld [vmem:[#allocation6 + $0x1f8] sm:$0xff]  }
 0x219   : > { %9833 = vmatpush3.bf16.msra.mxu0 %v11299_v28  ;;  %v11321_v28 = vld [vmem:[#allocation6 + $0x1e0] sm:$0xff]  }
 0x21a   : > { %9834 = vmatprep.subr.bf16.mxu0 %v11300_v63 }
 0x21c   : > { %9799 = vmatmul.mubr.bf16.gmra.mrb[4].mxu0 %v2620_v31  ;;  %v12379_v31 = vld [vmem:[%s11873_s8 + $0x58] sm:$0xff]  }
 0x21d   : > { %9802 = vmatprep.mubr.bf16.mxu0 %v2622_v16  ;;  %9835 = vmatpush3.bf16.msra.mxu0 %v11300_v63  ;;  %v3089_v63 = vsel %vm2611_vm3, %v3086_v62, %v3088_v4  ;;  %v11324_v16 = vld [vmem:[#allocation6 + $0x1e8] sm:$0xff]   ;;  %v3092_v0 = vrot.slane %v12379_v31, 2  ;;  %v3433_v62 = vrot.slane %v3431_v50, 2  ;;  %v3497_v50 = vshll.u32 %v12379_v31, 16 }
 0x21e   : > { %9836 = vmatprep.subr.bf16.mxu0 %v11301_v26 }
 0x221   : > { %9837 = vmatpush3.bf16.msra.mxu0 %v11301_v26  ;;  %v3090_v26 = vrot.slane %v12375_v53, 2 }
 0x222   : > { %9838 = vmatprep.subr.bf16.mxu0 %v11302_v60 }
 0x224   : > { %9803 = vmatmul.mubr.bf16.gmra.mrb[8].mxu0 %v2624_v3  ;;  %v12385_v3 = vld [vmem:[%s11873_s8 + $0x60] sm:$0xff]  }
 0x225   : > { %9806 = vmatprep.mubr.bf16.mxu0 %v2626_v40  ;;  %9839 = vmatpush3.bf16.msra.mxu0 %v11302_v60  ;;  %v3091_v60 = vsel %vm2611_vm3, %v3088_v4, %v3090_v26  ;;  %v3093_v40 = vsel %vm2611_vm3, %v3090_v26, %v3092_v0  ;;  %v3094_v24 = vrot.slane %v12385_v3, 2  ;;  %v3449_v26 = vshrl.u32 %v12355_v30, 16 }
 0x226   : > { %9840 = vmatprep.subr.bf16.mxu0 %v11303_v8 }
 0x229   : > { %9841 = vmatpush3.bf16.msra.mxu0 %v11303_v8  ;;  %v12389_v8 = vld [vmem:[%s11873_s8 + $0x68] sm:$0xff]  }
 0x22a   : > { %9842 = vmatprep.subr.bf16.mxu0 %v11304_v42 }
 0x22c   : > { %9807 = vmatmul.mubr.bf16.gmra.mrb[12].mxu0 %v2628_v10  ;;  %v12393_v10 = vld [vmem:[#allocation6 + $0x200] sm:$0xff]  }
 0x22d   : > { %9810 = vmatprep.mubr.bf16.mxu0 %v2630_v48  ;;  %9843 = vmatpush3.bf16.msra.mxu0 %v11304_v42  ;;  %v3096_v42 = vrot.slane %v12389_v8, 2  ;;  %v3095_v48 = vsel %vm2611_vm3, %v3092_v0, %v3094_v24  ;;  %v3452_v0 = vshll.u32 %v12355_v30, 16 }
 0x22e   : > { %9844 = vmatprep.subr.bf16.mxu0 %v11305_v49 }
 0x22f   : > { %v3097_v59 = vsel %vm2611_vm3, %v3094_v24, %v3096_v42  ;;  %v3451_v24 = vrot.slane %v3449_v26, 2  ;;  %v3512_v26 = vshrl.u32 %v12389_v8, 16 }
 0x231   : > { %9845 = vmatpush3.bf16.msra.mxu0 %v11305_v49  ;;  %v12397_v49 = vld [vmem:[%s11873_s8 + $0x70] sm:$0xff]  }
 0x232   : > { %9882 = vmatprep.subr.bf16.mxu0 %v11309_v32 }
 0x234   : > { %9811 = vmatmul.mubr.bf16.gmra.mrb[16].mxu0 %v2632_v57  ;;  %v3100_v57 = vrot.slane %v12401_v13, 2 }
 0x235   : > { %9814 = vmatprep.mubr.bf16.mxu0 %v2634_v61 }
 0x23c   : > { %9815 = vmatmul.mubr.bf16.gmra.mrb[20].mxu0 %v2636_v23  ;;  %v12412_v23 = vld [vmem:[%s11873_s8 + $0x88] sm:$0xff]  }
 0x23d   : > { %9818 = vmatprep.mubr.bf16.mxu0 %v2638_v33  ;;  %v3102_v33 = vrot.slane %v12408_v15, 2  ;;  %v3104_v5 = vrot.slane %v12412_v23, 2 }
 0x23f   : > { %v3103_v29 = vsel %vm2611_vm3, %v3100_v57, %v3102_v33  ;;  %v3105_v35 = vsel %vm2611_vm3, %v3102_v33, %v3104_v5  ;;  %v3470_v33 = vshll.u32 %v12365_v27, 16 }
 0x244   : > { %9819 = vmatmul.mubr.bf16.gmra.mrb[24].mxu0 %v2640_v2  ;;  %v12418_v2 = vld [vmem:[%s11873_s8 + $0x90] sm:$0xff]  }
 0x245   : > { %9822 = vmatprep.mubr.bf16.mxu0 %v2642_v9  ;;  %v12421_v9 = vld [vmem:[%s11873_s8 + $0x98] sm:$0xff]   ;;  %v3106_v47 = vrot.slane %v12418_v2, 2 }
 0x246   : > { %v3108_v41 = vrot.slane %v12421_v9, 2 }
 0x247   : > { %v3107_v38 = vsel %vm2611_vm3, %v3104_v5, %v3106_v47 }
 0x24c   : > { %9823 = vmatmul.mubr.bf16.gmra.mrb[28].mxu0 %v2644_v46  ;;  %v3414_v46 = vshrl.u32 %v12335_v52, 16 }
 0x24d   : > { %9826 = vmatprep.mubr.bf16.mxu0 %v2646_v58  ;;  %v3417_v58 = vshll.u32 %v12335_v52, 16  ;;  %v3434_v52 = vshll.u32 %v12345_v19, 16 }
 0x24e   : > { %v3416_v22 = vrot.slane %v3414_v46, 2 }
 0x24f   : > { %v3419_v25 = vrot.slane %v3417_v58, 3  ;;  %v3436_v4 = vrot.slane %v3434_v52, 3  ;;  %v3472_v58 = vrot.slane %v3470_v33, 3  ;;  %v11337_v52 = vld [vmem:[#allocation6 + $0x220] sm:$0xff]   ;;  %v3530_v33 = vshrl.u32 %v12401_v13, 16 }
 0x251   : > { %v3420_v44 = vor.u32 %v3419_v25, %v3416_v22  ;;  %v3485_v25 = vshrl.u32 %v12375_v53, 16 }
 0x254   : > { %9827 = vmatmul.mubr.bf16.gmra.mrb[32].mxu0 %v2648_v18  ;;  %v3109_v18 = vsel %vm2611_vm3, %v3106_v47, %v3108_v41  ;;  %v3479_v47 = vshll.u32 %v12369_v55, 16 }
 0x255   : > { %9846 = vmatprep.mubr.bf16.mxu0 %v3077_v11  ;;  %v11332_v11 = vld [vmem:[%s11873_s8 + $0xa0] ss:$0 sps:$4 sm:$0x33]  }
 0x25c   : > { %9847 = vmatmul.mubr.bf16.vlgmr.msra.gmra.mrb[0].mxu0 %v3079_v17  ;;  %v3424_v17 = vrot.slane %v3422_v56, 2 }
 0x25d   : > { %9883 = vmatpush3.bf16.msra.mxu0 %v11309_v32  ;;  %9850 = vmatprep.mubr.bf16.mxu0 %v3081_v34  ;;  %v3098_v32 = vrot.slane %v12397_v49, 2  ;;  %v3427_v34 = vrot.slane %v3425_v1, 3  ;;  %v3481_v1 = vrot.slane %v3479_v47, 3 }
 0x25e   : > { %9884 = vmatprep.subr.bf16.mxu0 %v11312_v43 }
 0x25f   : > { %v3099_v61 = vsel %vm2611_vm3, %v3096_v42, %v3098_v32  ;;  %v3101_v6 = vsel %vm2611_vm3, %v3098_v32, %v3100_v57  ;;  %v3454_v42 = vrot.slane %v3452_v0, 3  ;;  %v3515_v0 = vshll.u32 %v12389_v8, 16 }
 0x261   : > { %9885 = vmatpush3.bf16.msra.mxu0 %v11312_v43  ;;  %v3110_v43 = vrot.slane %v11332_v11, 2  ;;  %v11344_v11 = vld [vmem:[#allocation8 + $0x8] sm:$0xff]  }
 0x262   : > { %9886 = vmatprep.subr.bf16.mxu0 %v11315_v54 }
 0x264   : > { %9851 = vmatmul.mubr.bf16.gmra.mrb[4].mxu0 %v3083_v51  ;;  %v3440_v51 = vshrl.u32 %v12349_v21, 16 }
 0x265   : > { %9854 = vmatprep.mubr.bf16.mxu0 %v3085_v39  ;;  %9887 = vmatpush3.bf16.msra.mxu0 %v11315_v54  ;;  %v3428_v54 = vor.u32 %v3427_v34, %v3424_v17  ;;  %v3443_v39 = vshll.u32 %v12349_v21, 16  ;;  %v3488_v17 = vshll.u32 %v12375_v53, 16 }
 0x266   : > { %9888 = vmatprep.subr.bf16.mxu0 %v11318_v37 }
 0x269   : > { %9889 = vmatpush3.bf16.msra.mxu0 %v11318_v37  ;;  %v3111_v37 = vsel %vm2611_vm3, %v3108_v41, %v3110_v43  ;;  %v3494_v43 = vshrl.u32 %v12379_v31, 16 }
 0x26a   : > { %9890 = vmatprep.subr.bf16.mxu0 %v11321_v28 }
 0x26c   : > { %9855 = vmatmul.mubr.bf16.gmra.mrb[8].mxu0 %v3087_v7  ;;  %v3442_v7 = vrot.slane %v3440_v51, 2  ;;  %v3490_v51 = vrot.slane %v3488_v17, 3 }
 0x26d   : > { %9858 = vmatprep.mubr.bf16.mxu0 %v3089_v63  ;;  %9891 = vmatpush3.bf16.msra.mxu0 %v11321_v28  ;;  %v3429_v28 = vsel %vm3412_vm4, %v3420_v44, %v3428_v54  ;;  %v3445_v63 = vrot.slane %v3443_v39, 3 }
 0x26e   : > { %9892 = vmatprep.subr.bf16.mxu0 %v11324_v16 }
 0x271   : > { %9893 = vmatpush3.bf16.msra.mxu0 %v11324_v16  ;;  %v3437_v16 = vor.u32 %v3436_v4, %v3433_v62  ;;  %v3499_v62 = vrot.slane %v3497_v50, 3  ;;  %v11338_v4 = vld [vmem:[#allocation6 + $0x228] sm:$0xff]  }
 0x272   : > { %9894 = vmatprep.subr.bf16.mxu0 %v11327_v36 }
 0x274   : > { %9859 = vmatmul.mubr.bf16.gmra.mrb[12].mxu0 %v3091_v60  ;;  %v3458_v60 = vshrl.u32 %v12359_v45, 16 }
 0x275   : > { %9862 = vmatprep.mubr.bf16.mxu0 %v3093_v40  ;;  %9895 = vmatpush3.bf16.msra.mxu0 %v11327_v36  ;;  %v3446_v36 = vor.u32 %v3445_v63, %v3442_v7  ;;  %v3461_v40 = vshll.u32 %v12359_v45, 16  ;;  %v3503_v7 = vshrl.u32 %v12385_v3, 16  ;;  %v3506_v63 = vshll.u32 %v12385_v3, 16 }
 0x276   : > { %9896 = vmatprep.subr.bf16.mxu0 %v11331_v14  ;;  %v3460_v32 = vrot.slane %v3458_v60, 2 }
 0x277   : > { %v3463_v57 = vrot.slane %v3461_v40, 3  ;;  %v3505_v40 = vrot.slane %v3503_v7, 2  ;;  %v12482_v7 = vld [vmem:[%s11873_s8 + $0xa0] ss:$0 sps:$4 sm:$0x77]  }
 0x279   : > { %9897 = vmatpush3.bf16.msra.mxu0 %v11331_v14  ;;  %v3438_v14 = vsel %vm3412_vm4, %v3428_v54, %v3437_v16  ;;  %v3464_v5 = vor.u32 %v3463_v57, %v3460_v32  ;;  %v3487_v54 = vrot.slane %v3485_v25, 2  ;;  %v3521_v57 = vshrl.u32 %v12397_v49, 16 }
 0x27a   : > { %9934 = vmatprep.subr.bf16.mxu0 %v12393_v10 }
 0x27c   : > { %9863 = vmatmul.mubr.bf16.gmra.mrb[16].mxu0 %v3095_v48  ;;  %v3447_v48 = vsel %vm3412_vm4, %v3437_v16, %v3446_v36 }
 0x27d   : > { %9866 = vmatprep.mubr.bf16.mxu0 %v3097_v59  ;;  %v11334_v59 = vld [vmem:[#allocation6 + $0x208] sm:$0xff]  }
 0x284   : > { %9867 = vmatmul.mubr.bf16.gmra.mrb[20].mxu0 %v3099_v61  ;;  %v3455_v61 = vor.u32 %v3454_v42, %v3451_v24  ;;  %v3514_v42 = vrot.slane %v3512_v26, 2 }
 0x285   : > { %9870 = vmatprep.mubr.bf16.mxu0 %v3101_v6  ;;  %v3467_v6 = vshrl.u32 %v12365_v27, 16 }
 0x286   : > { %v3456_v41 = vsel %vm3412_vm4, %v3446_v36, %v3455_v61  ;;  %v11339_v36 = vld [vmem:[#allocation6 + $0x230] sm:$0xff]  }
 0x287   : > { %v3469_v46 = vrot.slane %v3467_v6, 2 }
 0x289   : > { %v3473_v22 = vor.u32 %v3472_v58, %v3469_v46  ;;  %v3532_v46 = vrot.slane %v3530_v33, 2 }
 0x28b   : > { %v3474_v44 = vsel %vm3412_vm4, %v3464_v5, %v3473_v22 }
 0x28c   : > { %9871 = vmatmul.mubr.bf16.gmra.mrb[24].mxu0 %v3103_v29  ;;  %v11335_v29 = vld [vmem:[#allocation6 + $0x210] sm:$0xff]  }
 0x28d   : > { %9874 = vmatprep.mubr.bf16.mxu0 %v3105_v35  ;;  %v3476_v35 = vshrl.u32 %v12369_v55, 16 }
 0x28f   : > { %v3478_v56 = vrot.slane %v3476_v35, 2  ;;  %v3523_v35 = vrot.slane %v3521_v57, 2 }
 0x291   : > { %v3482_v34 = vor.u32 %v3481_v1, %v3478_v56  ;;  %v3539_v56 = vshrl.u32 %v12408_v15, 16  ;;  %v3542_v1 = vshll.u32 %v12408_v15, 16 }
 0x293   : > { %v3483_v39 = vsel %vm3412_vm4, %v3473_v22, %v3482_v34  ;;  %v3541_v25 = vrot.slane %v3539_v56, 2  ;;  %v3544_v17 = vrot.slane %v3542_v1, 3 }
 0x294   : > { %9875 = vmatmul.mubr.bf16.gmra.mrb[28].mxu0 %v3107_v38  ;;  %v11336_v38 = vld [vmem:[#allocation6 + $0x218] sm:$0xff]  }
 0x295   : > { %9878 = vmatprep.mubr.bf16.mxu0 %v3109_v18  ;;  %v11343_v18 = vld [vmem:[#allocation8] sm:$0xff]  }
 0x296   : > { %9986 = vmatprep.subr.bf16.mxu1 %v11343_v18 }
 0x297   : > { %9987 = vmatpush3.bf16.msra.mxu1 %v11343_v18  ;;  %v3548_v18 = vshrl.u32 %v12412_v23, 16 }
 0x298   : > { %9988 = vmatprep.subr.bf16.mxu1 %v11344_v11 }
 0x29b   : > { %9989 = vmatpush3.bf16.msra.mxu1 %v11344_v11  ;;  %v3551_v11 = vshll.u32 %v12412_v23, 16 }
 0x29c   : > { %9879 = vmatmul.mubr.bf16.gmra.mrb[32].mxu0 %v3111_v37  ;;  %v3496_v37 = vrot.slane %v3494_v43, 2  ;;  %v3550_v43 = vrot.slane %v3548_v18, 2 }
 0x29d   : > { %9898 = vmatprep.mubr.bf16.mxu0 %v3429_v28  ;;  %v3491_v28 = vor.u32 %v3490_v51, %v3487_v54  ;;  %v3553_v50 = vrot.slane %v3551_v11, 3  ;;  %v3560_v54 = vshll.u32 %v12418_v2, 16 }
 0x29e   : > { %v3500_v16 = vor.u32 %v3499_v62, %v3496_v37  ;;  %v3569_v37 = vshll.u32 %v12421_v9, 16 }
 0x29f   : > { %v3492_v60 = vsel %vm3412_vm4, %v3482_v34, %v3491_v28  ;;  %v3554_v51 = vor.u32 %v3553_v50, %v3550_v43 }
 0x2a0   : > { %v3501_v24 = vsel %vm3412_vm4, %v3491_v28, %v3500_v16  ;;  %v3562_v28 = vrot.slane %v3560_v54, 3  ;;  %v3571_v26 = vrot.slane %v3569_v37, 3  ;;  %v11348_v54 = vld [vmem:[#allocation8 + $0x28] sm:$0xff]  }
 0x2a4   : > { %9899 = vmatmul.mubr.bf16.vlgmr.msra.gmra.mrb[0].mxu0 %v3438_v14  ;;  %v3508_v14 = vrot.slane %v3506_v63, 3 }
 0x2a5   : > { %9935 = vmatpush3.bf16.msra.mxu0 %v12393_v10  ;;  %9902 = vmatprep.mubr.bf16.mxu0 %v3447_v48  ;;  %v3465_v10 = vsel %vm3412_vm4, %v3455_v61, %v3464_v5  ;;  %v3517_v48 = vrot.slane %v3515_v0, 3  ;;  %v3524_v61 = vshll.u32 %v12397_v49, 16  ;;  %v3533_v5 = vshll.u32 %v12401_v13, 16 }
 0x2a6   : > { %9936 = vmatprep.subr.bf16.mxu0 %v11334_v59  ;;  %v3509_v32 = vor.u32 %v3508_v14, %v3505_v40  ;;  %v3862_v14 = vld [vmem:[%s11873_s8 + $0x10] sm:$0x8] }
 0x2a7   : > { %v3518_v6 = vor.u32 %v3517_v48, %v3514_v42  ;;  %v3526_v47 = vrot.slane %v3524_v61, 3  ;;  %v3535_v58 = vrot.slane %v3533_v5, 3 }
 0x2a9   : > { %9937 = vmatpush3.bf16.msra.mxu0 %v11334_v59  ;;  %v11340_v59 = vld [vmem:[#allocation6 + $0x238] sm:$0xff]  }
 0x2aa   : > { %9938 = vmatprep.subr.bf16.mxu0 %v11335_v29 }
 0x2ac   : > { %9903 = vmatmul.mubr.bf16.gmra.mrb[4].mxu0 %v3456_v41  ;;  %v3519_v41 = vsel %vm3412_vm4, %v3509_v32, %v3518_v6 }
 0x2ad   : > { %9906 = vmatprep.mubr.bf16.mxu0 %v3465_v10  ;;  %9939 = vmatpush3.bf16.msra.mxu0 %v11335_v29  ;;  %v3510_v29 = vsel %vm3412_vm4, %v3500_v16, %v3509_v32  ;;  %v3527_v10 = vor.u32 %v3526_v47, %v3523_v35  ;;  %v8701_v32 = vcombine.low %v3862_v14, %v12330_v12  ;;  %v3889_v35 = vrot.slane %v12349_v21, 3 }
 0x2ae   : > { %9940 = vmatprep.subr.bf16.mxu0 %v11336_v38  ;;  %v3897_v21 = vrot.slane %v12369_v55, 3  ;;  %v3905_v55 = vrot.slane %v12389_v8, 3  ;;  %v3913_v8 = vrot.slane %v12412_v23, 3 }
 0x2af   : > { %v3528_v22 = vsel %vm3412_vm4, %v3518_v6, %v3527_v10  ;;  %v3884_v61 = vrot.slane %v8701_v32, 3  ;;  %v3885_v6 = vrot.slane %v12338_v20, 3  ;;  %v3893_v20 = vrot.slane %v12359_v45, 3 }
 0x2b0   : > { %v3901_v45 = vrot.slane %v12379_v31, 3  ;;  %v3909_v31 = vrot.slane %v12401_v13, 3  ;;  %v3917_v13 = vrot.slane %v12421_v9, 3 }
 0x2b1   : > { %9941 = vmatpush3.bf16.msra.mxu0 %v11336_v38  ;;  %v3536_v38 = vor.u32 %v3535_v58, %v3532_v46  ;;  %v3886_v5 = vsel %vm3883_vm5, %v3884_v61, %v3885_v6 }
 0x2b2   : > { %9942 = vmatprep.subr.bf16.mxu0 %v11337_v52 }
 0x2b3   : > { %v3537_v34 = vsel %vm3412_vm4, %v3527_v10, %v3536_v38 }
 0x2b4   : > { %9907 = vmatmul.mubr.bf16.gmra.mrb[8].mxu0 %v3474_v44  ;;  %v3557_v44 = vshrl.u32 %v12418_v2, 16 }
 0x2b5   : > { %9910 = vmatprep.mubr.bf16.mxu0 %v3483_v39  ;;  %9943 = vmatpush3.bf16.msra.mxu0 %v11337_v52  ;;  %v3545_v52 = vor.u32 %v3544_v17, %v3541_v25  ;;  %v3566_v39 = vshrl.u32 %v12421_v9, 16  ;;  %v11628_v9 = vmov 0  }
 0x2b6   : > { %9944 = vmatprep.subr.bf16.mxu0 %v11338_v4  ;;  %4308 = vst [vmem:[#allocation2] sm:$0xff] %v11628_v9  ;;  %4309 = vst [vmem:[#allocation2 + $0x8] sm:$0xff] %v11628_v9 }
 0x2b7   : > { %v3546_v62 = vsel %vm3412_vm4, %v3536_v38, %v3545_v52  ;;  %v3555_v63 = vsel %vm3412_vm4, %v3545_v52, %v3554_v51  ;;  %v3568_v16 = vrot.slane %v3566_v39, 2  ;;  %v11345_v52 = vld [vmem:[#allocation8 + $0x10] sm:$0xff]   ;;  %4310 = vst [vmem:[#allocation2 + $0xa0] sm:$0xff] %v11628_v9  ;;  %4311 = vst [vmem:[#allocation2 + $0xa8] sm:$0xff] %v11628_v9 }
 0x2b8   : > { %9990 = vmatprep.subr.bf16.mxu1 %v11345_v52 }
 0x2b9   : > { %9945 = vmatpush3.bf16.msra.mxu0 %v11338_v4  ;;  %v3559_v4 = vrot.slane %v3557_v44, 2  ;;  %v3572_v40 = vor.u32 %v3571_v26, %v3568_v16  ;;  %9991 = vmatpush3.bf16.msra.mxu1 %v11345_v52  ;;  %v11346_v44 = vld [vmem:[#allocation8 + $0x18] sm:$0xff]   ;;  %v12528_v16 = vrot.slane %v11628_v9, 7 }
 0x2ba   : > { %9946 = vmatprep.subr.bf16.mxu0 %v11339_v36  ;;  %9992 = vmatprep.subr.bf16.mxu1 %v11346_v44 }
 0x2bb   : > { %v3563_v0 = vor.u32 %v3562_v28, %v3559_v4  ;;  %v11350_v4 = vld [vmem:[#allocation8 + $0x38] sm:$0xff]  }
 0x2bc   : > { %9911 = vmatmul.mubr.bf16.gmra.mrb[12].mxu0 %v3492_v60  ;;  %v3578_v60 = vshll.u32 %v12482_v7, 16 }
 0x2bd   : > { %9914 = vmatprep.mubr.bf16.mxu0 %v3501_v24  ;;  %9947 = vmatpush3.bf16.msra.mxu0 %v11339_v36  ;;  %v3575_v36 = vshrl.u32 %v12482_v7, 16  ;;  %v3564_v24 = vsel %vm3412_vm4, %v3554_v51, %v3563_v0  ;;  %v11349_v51 = vld [vmem:[#allocation8 + $0x30] sm:$0xff]   ;;  %v4355_v39 = vld [vmem:[#allocation2] sm:$0xc0] }
 0x2be   : > { %9948 = vmatprep.subr.bf16.mxu0 %v11340_v59  ;;  %v3580_v48 = vrot.slane %v3578_v60, 3  ;;  %9993 = vmatpush3.bf16.msra.mxu1 %v11346_v44  ;;  %v4392_v37 = vshrl.u32 %v4355_v39, 16  ;;  %v12535_v60 = vld [vmem:[#allocation8 + $0x40] sm:$0xff]  }
 0x2bf   : > { %v3577_v42 = vrot.slane %v3575_v36, 2 }
 0x2c0   : > { %v4394_v28 = vrot.slane %v4392_v37, 6 }
 0x2c1   : > { %9949 = vmatpush3.bf16.msra.mxu0 %v11340_v59  ;;  %v3573_v59 = vsel %vm3412_vm4, %v3563_v0, %v3572_v40  ;;  %v3581_v57 = vor.u32 %v3580_v48, %v3577_v42 }
 0x2c3   : > { %v3582_v33 = vsel %vm3412_vm4, %v3572_v40, %v3581_v57  ;;  %v12541_v40 = vld [vmem:[%s13684_s2] ss:$0 sm:$0xff] }
 0x2c4   : > { %9915 = vmatmul.mubr.bf16.gmra.mrb[16].mxu0 %v3510_v29  ;;  %v3887_v29 = vrot.slane %v12345_v19, 3  ;;  %v3895_v19 = vrot.slane %v12365_v27, 3  ;;  %v3903_v27 = vrot.slane %v12385_v3, 3  ;;  %v3911_v3 = vrot.slane %v12408_v15, 3 }
 0x2c5   : > { %9918 = vmatprep.mubr.bf16.mxu0 %v3519_v41  ;;  %v3891_v41 = vrot.slane %v12355_v30, 3  ;;  %v3899_v30 = vrot.slane %v12375_v53, 3  ;;  %v3907_v53 = vrot.slane %v12397_v49, 3  ;;  %v3915_v49 = vrot.slane %v12418_v2, 3  ;;  %v11347_v2 = vld [vmem:[#allocation8 + $0x20] sm:$0xff]  }
 0x2c6   : > { %v3888_v47 = vsel %vm3883_vm5, %v3885_v6, %v3887_v29  ;;  %v3890_v12 = vsel %vm3883_vm5, %v3887_v29, %v3889_v35  ;;  %v3896_v10 = vsel %vm3883_vm5, %v3893_v20, %v3895_v19  ;;  %v3898_v56 = vsel %vm3883_vm5, %v3895_v19, %v3897_v21  ;;  %9994 = vmatprep.subr.bf16.mxu1 %v11347_v2  ;;  %v4238_v6 = vld [vmem:[#allocation9 + $0x10] sm:$0xff] }
 0x2c7   : > { %v3892_v46 = vsel %vm3883_vm5, %v3889_v35, %v3891_v41  ;;  %v3894_v58 = vsel %vm3883_vm5, %v3891_v41, %v3893_v20  ;;  %v3900_v1 = vsel %vm3883_vm5, %v3897_v21, %v3899_v30  ;;  %v3902_v38 = vsel %vm3883_vm5, %v3899_v30, %v3901_v45  ;;  %9995 = vmatpush3.bf16.msra.mxu1 %v11347_v2  ;;  %v4236_v35 = vld [vmem:[#allocation9] sm:$0xff] }
 0x2c8   : > { %v3904_v18 = vsel %vm3883_vm5, %v3901_v45, %v3903_v27  ;;  %v3906_v11 = vsel %vm3883_vm5, %v3903_v27, %v3905_v55  ;;  %v3910_v25 = vsel %vm3883_vm5, %v3907_v53, %v3909_v31  ;;  %v3912_v17 = vsel %vm3883_vm5, %v3909_v31, %v3911_v3  ;;  %9996 = vmatprep.subr.bf16.mxu1 %v11348_v54 }
 0x2c9   : > { %v3916_v43 = vsel %vm3883_vm5, %v3913_v8, %v3915_v49  ;;  %v3918_v50 = vsel %vm3883_vm5, %v3915_v49, %v3917_v13  ;;  %v3919_v15 = vrot.slane %v12482_v7, 3 }
 0x2cb   : > { %v3920_v23 = vsel %vm3883_vm5, %v3917_v13, %v3919_v15  ;;  %9997 = vmatpush3.bf16.msra.mxu1 %v11348_v54  ;;  %v4241_v13 = vld [vmem:[#allocation9 + $0x28] sm:$0xff] }
 0x2cc   : > { %9919 = vmatmul.mubr.bf16.gmra.mrb[20].mxu0 %v3528_v22  ;;  %v3908_v22 = vsel %vm3883_vm5, %v3905_v55, %v3907_v53  ;;  %9998 = vmatprep.subr.bf16.mxu1 %v11349_v51  ;;  %v4242_v55 = vld [vmem:[#allocation9 + $0x30] sm:$0xff] }
 0x2cd   : > { %9922 = vmatprep.mubr.bf16.mxu0 %v3537_v34  ;;  %v3914_v34 = vsel %vm3883_vm5, %v3911_v3, %v3913_v8 }
 0x2cf   : > { %9999 = vmatpush3.bf16.msra.mxu1 %v11349_v51 }
 0x2d0   : > { %10000 = vmatprep.subr.bf16.mxu1 %v11350_v4 }
 0x2d3   : > { %10001 = vmatpush3.bf16.msra.mxu1 %v11350_v4 }
 0x2d4   : > { %9923 = vmatmul.mubr.bf16.gmra.mrb[24].mxu0 %v3546_v62  ;;  %v4395_v62 = vshll.u32 %v4355_v39, 16  ;;  %10038 = vmatprep.subr.bf16.mxu1 %v12535_v60 }
 0x2d5   : > { %9926 = vmatprep.mubr.bf16.mxu0 %v3555_v63  ;;  %v4402_v63 = vrot.slane %v11628_v9, 6 }
 0x2d6   : > { %v4397_v7 = vrot.slane %v4395_v62, 7 }
 0x2d7   : > { %v12531_v0 = vor.u32 %v12528_v16, %v4402_v63 }
 0x2d8   : > { %v4398_v26 = vor.u32 %v4397_v7, %v4394_v28 }
 0x2da   : > { %v4407_v36 = vsel %vm4390_vm6, %v4398_v26, %v12531_v0 }
 0x2db   : > { %10002 = vmatprep.mubr.bf16.mxu1 %v4407_v36  ;;  %v11352_v36 = vld [vmem:[#allocation8 + $0x48] sm:$0xff]  }
 0x2dc   : > { %9927 = vmatmul.mubr.bf16.gmra.mrb[28].mxu0 %v3564_v24 }
 0x2dd   : > { %9930 = vmatprep.mubr.bf16.mxu0 %v3573_v59 }
 0x2e4   : > { %9931 = vmatmul.mubr.bf16.gmra.mrb[32].mxu0 %v3582_v33 }
 0x2e5   : > { %9950 = vmatprep.mubr.bf16.mxu0 %v3886_v5  ;;  %v4239_v5 = vld [vmem:[#allocation9 + $0x18] sm:$0xff] }
 0x2ec   : > { %9951 = vmatmul.mubr.bf16.vlgmr.msra.gmra.mrb[0].mxu0 %v3888_v47 }
 0x2ed   : > { %9954 = vmatprep.mubr.bf16.mxu0 %v3890_v12  ;;  %v4237_v12 = vld [vmem:[#allocation9 + $0x8] sm:$0xff] }
 0x2f4   : > { %9955 = vmatmul.mubr.bf16.gmra.mrb[4].mxu0 %v3892_v46 }
 0x2f5   : > { %9958 = vmatprep.mubr.bf16.mxu0 %v3894_v58 }
 0x2fc   : > { %9959 = vmatmul.mubr.bf16.gmra.mrb[8].mxu0 %v3896_v10 }
 0x2fd   : > { %9962 = vmatprep.mubr.bf16.mxu0 %v3898_v56 }
 0x304   : > { %9963 = vmatmul.mubr.bf16.gmra.mrb[12].mxu0 %v3900_v1 }
 0x305   : > { %9966 = vmatprep.mubr.bf16.mxu0 %v3902_v38 }
 0x30c   : > { %9967 = vmatmul.mubr.bf16.gmra.mrb[16].mxu0 %v3904_v18 }
 0x30d   : > { %9970 = vmatprep.mubr.bf16.mxu0 %v3906_v11 }
 0x314   : > { %9971 = vmatmul.mubr.bf16.gmra.mrb[20].mxu0 %v3908_v22 }
 0x315   : > { %9974 = vmatprep.mubr.bf16.mxu0 %v3910_v25  ;;  %v4243_v25 = vld [vmem:[#allocation9 + $0x38] sm:$0xff] }
 0x31c   : > { %9975 = vmatmul.mubr.bf16.gmra.mrb[24].mxu0 %v3912_v17 }
 0x31d   : > { %9978 = vmatprep.mubr.bf16.mxu0 %v3914_v34  ;;  %v4240_v34 = vld [vmem:[#allocation9 + $0x20] sm:$0xff] }
 0x324   : > { %9979 = vmatmul.mubr.bf16.gmra.mrb[28].mxu0 %v3916_v43 }
 0x325   : > { %9982 = vmatprep.mubr.bf16.mxu0 %v3918_v50 }
 0x32c   : > { %9983 = vmatmul.mubr.bf16.gmra.mrb[32].mxu0 %v3920_v23 }
 0x3bf   : > { %v9952_v14 = vpop.f32.mrb[0].mxu0 }
 0x3c0   : > { %v10454_v24 = vadd.f32 %v9952_v14, %v12541_v40  ;;  %v4021_v42 = vpop.f32.mrb[1].mxu0 }
 0x3c1   : > { %v10455_v48 = vadd.f32 %v12541_v40, %v4021_v42  ;;  %v9953_v59 = vpop.f32.mrb[2].mxu0 }
 0x3c2   : > { %v4202_v32 = vmax.f32 %v10454_v24, 0.0  ;;  %v10456_v57 = vadd.f32 %v9953_v59, %v12541_v40  ;;  %v4024_v61 = vpop.f32.mrb[3].mxu0 }
 0x3c3   : > { %v4200_v33 = vmax.f32 %v10455_v48, 0.0  ;;  %v10457_v29 = vadd.f32 %v12541_v40, %v4024_v61  ;;  %v4246_v48 = vld [vmem:[#allocation9 + $0x50] sm:$0xff] }
 0x3c4   : > { %v4203_v47 = vmax.f32 %v10456_v57, 0.0  ;;  %v4274_v20 = vmul.f32 %v4238_v6, %v4202_v32 }
 0x3c5   : > { %v4201_v41 = vmax.f32 %v10457_v29, 0.0  ;;  %v4272_v58 = vmul.f32 %v4236_v35, %v4200_v33  ;;  %v4244_v33 = vld [vmem:[#allocation9 + $0x40] sm:$0xff] }
 0x3c6   : > { %v4275_v46 = vmul.f32 %v4239_v5, %v4203_v47 }
 0x3c7   : > { %v4273_v19 = vmul.f32 %v4237_v12, %v4201_v41  ;;  %v9956_v21 = vpop.f32.mrb[4].mxu0  ;;  %v4247_v41 = vld [vmem:[#allocation9 + $0x58] sm:$0xff] }
 0x3c8   : > { %v12547_v10 = vpack.c.bf16 %v4275_v46, %v4274_v20  ;;  %v10458_v56 = vadd.f32 %v9956_v21, %v12541_v40  ;;  %v4037_v30 = vpop.f32.mrb[5].mxu0  ;;  %v4245_v21 = vld [vmem:[#allocation9 + $0x48] sm:$0xff] }
 0x3c9   : > { %v12550_v45 = vpack.c.bf16 %v4273_v19, %v4272_v58  ;;  %v10459_v1 = vadd.f32 %v12541_v40, %v4037_v30  ;;  %v9957_v38 = vpop.f32.mrb[6].mxu0 }
 0x3ca   : > { %4331 = vst [vmem:[#allocation2 + $0x18] sm:$0xff] %v12547_v10  ;;  %v4206_v27 = vmax.f32 %v10458_v56, 0.0  ;;  %v10460_v18 = vadd.f32 %v9957_v38, %v12541_v40  ;;  %v4040_v11 = vpop.f32.mrb[7].mxu0  ;;  %v4418_v53 = vshrl.u32 %v12547_v10, 16  ;;  %v4421_v31 = vshll.u32 %v12547_v10, 16 }
 0x3cb   : > { %4330 = vst [vmem:[#allocation2 + $0x10] sm:$0xff] %v12550_v45  ;;  %v4204_v22 = vmax.f32 %v10459_v1, 0.0  ;;  %v10461_v3 = vadd.f32 %v12541_v40, %v4040_v11  ;;  %v4409_v8 = vshrl.u32 %v12550_v45, 16  ;;  %v4412_v17 = vshll.u32 %v12550_v45, 16  ;;  %v11353_v1 = vld [vmem:[#allocation8 + $0x50] sm:$0xff]  }
 0x3cc   : > { %v4207_v49 = vmax.f32 %v10460_v18, 0.0  ;;  %v4420_v43 = vrot.slane %v4418_v53, 6  ;;  %v4423_v50 = vrot.slane %v4421_v31, 7  ;;  %v4278_v15 = vmul.f32 %v4242_v55, %v4206_v27 }
 0x3cd   : > { %v4205_v23 = vmax.f32 %v10461_v3, 0.0  ;;  %v4411_v52 = vrot.slane %v4409_v8, 6  ;;  %v4414_v44 = vrot.slane %v4412_v17, 7  ;;  %v13694_v54 = vrot.slane %v12550_v45, 7 }
 0x3ce   : > { %v4279_v2 = vmul.f32 %v4243_v25, %v4207_v49  ;;  %v12565_v9 = vor.u32 %v4423_v50, %v4420_v43  ;;  %v4883_v51 = vrot.slane %v12547_v10, 7  ;;  %v4276_v39 = vmul.f32 %v4240_v34, %v4204_v22  ;;  %v4250_v10 = vld [vmem:[#allocation9 + $0x70] sm:$0xff] }
 0x3cf   : > { %v4277_v37 = vmul.f32 %v4241_v13, %v4205_v23  ;;  %v9960_v62 = vpop.f32.mrb[8].mxu0  ;;  %v4415_v4 = vor.u32 %v4414_v44, %v4411_v52  ;;  %v12569_v28 = vrot.slane %v4409_v8, 7  ;;  %v12579_v24 = vrot.slane %v4418_v53, 7 }
 0x3d0   : > { %v12571_v7 = vpack.c.bf16 %v4279_v2, %v4278_v15  ;;  %v10462_v63 = vadd.f32 %v9960_v62, %v12541_v40  ;;  %v4053_v26 = vpop.f32.mrb[9].mxu0  ;;  %v12577_v14 = vsel %vm4877_vm7, %v13694_v54, %v4883_v51  ;;  %v11354_v15 = vld [vmem:[#allocation8 + $0x58] sm:$0xff]  }
 0x3d1   : > { %v12581_v42 = vpack.c.bf16 %v4277_v37, %v4276_v39  ;;  %v10463_v59 = vadd.f32 %v12541_v40, %v4053_v26  ;;  %v9961_v32 = vpop.f32.mrb[10].mxu0  ;;  %v4416_v57 = vsel %vm4390_vm6, %v12531_v0, %v4415_v4  ;;  %v4425_v61 = vsel %vm4390_vm6, %v4415_v4, %v12565_v9  ;;  %v4248_v37 = vld [vmem:[#allocation9 + $0x60] sm:$0xff] }
 0x3d2   : > { %4333 = vst [vmem:[#allocation2 + $0x28] sm:$0xff] %v12571_v7  ;;  %v4210_v6 = vmax.f32 %v10462_v63, 0.0  ;;  %v10464_v5 = vadd.f32 %v9961_v32, %v12541_v40  ;;  %v4056_v29 = vpop.f32.mrb[11].mxu0  ;;  %10003 = vmatmul.mubr.bf16.vlgmr.msra.gmra.mrb[0].mxu1 %v4416_v57  ;;  %v4436_v35 = vshrl.u32 %v12571_v7, 16  ;;  %v4439_v47 = vshll.u32 %v12571_v7, 16 }
 0x3d3   : > { %4332 = vst [vmem:[#allocation2 + $0x20] sm:$0xff] %v12581_v42  ;;  %v4208_v12 = vmax.f32 %v10463_v59, 0.0  ;;  %v10465_v0 = vadd.f32 %v12541_v40, %v4056_v29  ;;  %10006 = vmatprep.mubr.bf16.mxu1 %v4425_v61  ;;  %10039 = vmatpush3.bf16.msra.mxu1 %v12535_v60  ;;  %v4427_v20 = vshrl.u32 %v12581_v42, 16  ;;  %v4430_v46 = vshll.u32 %v12581_v42, 16  ;;  %v11355_v29 = vld [vmem:[#allocation8 + $0x60] sm:$0xff]  }
 0x3d4   : > { %v4282_v58 = vmul.f32 %v4246_v48, %v4210_v6  ;;  %v4211_v19 = vmax.f32 %v10464_v5, 0.0  ;;  %v4438_v56 = vrot.slane %v4436_v35, 6  ;;  %v4441_v30 = vrot.slane %v4439_v47, 7  ;;  %10040 = vmatprep.subr.bf16.mxu1 %v11352_v36  ;;  %v4251_v48 = vld [vmem:[#allocation9 + $0x78] sm:$0xff]  ;;  %v4249_v6 = vld [vmem:[#allocation9 + $0x68] sm:$0xff] }
 0x3d5   : > { %v4280_v38 = vmul.f32 %v4244_v33, %v4208_v12  ;;  %v4209_v27 = vmax.f32 %v10465_v0, 0.0  ;;  %v4429_v60 = vrot.slane %v4427_v20, 6  ;;  %v4432_v55 = vrot.slane %v4430_v46, 7 }
 0x3d6   : > { %v4283_v18 = vmul.f32 %v4247_v41, %v4211_v19  ;;  %v12605_v11 = vor.u32 %v4441_v30, %v4438_v56  ;;  %v4885_v53 = vrot.slane %v12581_v42, 7  ;;  %v4887_v22 = vrot.slane %v12571_v7, 7 }
 0x3d7   : > { %v4281_v25 = vmul.f32 %v4245_v21, %v4209_v27  ;;  %v9964_v3 = vpop.f32.mrb[12].mxu0  ;;  %v4433_v8 = vor.u32 %v4432_v55, %v4429_v60  ;;  %10041 = vmatpush3.bf16.msra.mxu1 %v11352_v36  ;;  %v5221_v34 = vor.u32 %v12569_v28, %v4412_v17  ;;  %v5224_v49 = vor.u32 %v12579_v24, %v4421_v31 }
 0x3d8   : > { %v12615_v13 = vpack.c.bf16 %v4283_v18, %v4282_v58  ;;  %v10466_v43 = vadd.f32 %v9964_v3, %v12541_v40  ;;  %v4069_v50 = vpop.f32.mrb[13].mxu0  ;;  %10042 = vmatprep.subr.bf16.mxu1 %v11353_v1  ;;  %v12619_v23 = vsel %vm4877_vm7, %v4883_v51, %v4885_v53  ;;  %v12624_v52 = vsel %vm4877_vm7, %v4885_v53, %v4887_v22  ;;  %v11356_v3 = vld [vmem:[#allocation8 + $0x68] sm:$0xff]  }
 0x3d9   : > { %v12626_v17 = vpack.c.bf16 %v4281_v25, %v4280_v38  ;;  %v10467_v31 = vadd.f32 %v12541_v40, %v4069_v50  ;;  %v9965_v44 = vpop.f32.mrb[14].mxu0  ;;  %v4434_v2 = vsel %vm4390_vm6, %v12565_v9, %v4433_v8  ;;  %v4443_v39 = vsel %vm4390_vm6, %v4433_v8, %v12605_v11 }
 0x3da   : > { %4335 = vst [vmem:[#allocation2 + $0x38] sm:$0xff] %v12615_v13  ;;  %v4214_v51 = vmax.f32 %v10466_v43, 0.0  ;;  %v10468_v62 = vadd.f32 %v9965_v44, %v12541_v40  ;;  %v4072_v4 = vpop.f32.mrb[15].mxu0  ;;  %10007 = vmatmul.mubr.bf16.gmra.mrb[4].mxu1 %v4434_v2  ;;  %v4454_v63 = vshrl.u32 %v12615_v13, 16  ;;  %v4457_v26 = vshll.u32 %v12615_v13, 16 }
 0x3db   : > { %4334 = vst [vmem:[#allocation2 + $0x30] sm:$0xff] %v12626_v17  ;;  %v4212_v36 = vmax.f32 %v10467_v31, 0.0  ;;  %v10469_v9 = vadd.f32 %v12541_v40, %v4072_v4  ;;  %10010 = vmatprep.mubr.bf16.mxu1 %v4443_v39  ;;  %v4445_v59 = vshrl.u32 %v12626_v17, 16  ;;  %v4448_v32 = vshll.u32 %v12626_v17, 16  ;;  %10043 = vmatpush3.bf16.msra.mxu1 %v11353_v1  ;;  %v4254_v31 = vld [vmem:[#allocation9 + $0x90] sm:$0xff] }
 0x3dc   : > { %v4286_v57 = vmul.f32 %v4250_v10, %v4214_v51  ;;  %v4215_v61 = vmax.f32 %v10468_v62, 0.0  ;;  %v4456_v33 = vrot.slane %v4454_v63, 6  ;;  %v4459_v5 = vrot.slane %v4457_v26, 7  ;;  %10044 = vmatprep.subr.bf16.mxu1 %v11354_v15 }
 0x3dd   : > { %v4284_v12 = vmul.f32 %v4248_v37, %v4212_v36  ;;  %v4213_v41 = vmax.f32 %v10469_v9, 0.0  ;;  %v4447_v0 = vrot.slane %v4445_v59, 6  ;;  %v4450_v58 = vrot.slane %v4448_v32, 7  ;;  %v4255_v37 = vld [vmem:[#allocation9 + $0x98] sm:$0xff]  ;;  %v4252_v36 = vld [vmem:[#allocation9 + $0x80] sm:$0xff]  ;;  %v4253_v9 = vld [vmem:[#allocation9 + $0x88] sm:$0xff] }
 0x3de   : > { %v4287_v19 = vmul.f32 %v4251_v48, %v4215_v61  ;;  %v12649_v21 = vor.u32 %v4459_v5, %v4456_v33  ;;  %v4889_v56 = vrot.slane %v12626_v17, 7  ;;  %v4891_v30 = vrot.slane %v12615_v13, 7 }
 0x3df   : > { %v4285_v1 = vmul.f32 %v4249_v6, %v4213_v41  ;;  %v9968_v38 = vpop.f32.mrb[16].mxu0  ;;  %v4451_v27 = vor.u32 %v4450_v58, %v4447_v0  ;;  %10045 = vmatpush3.bf16.msra.mxu1 %v11354_v15  ;;  %v12655_v60 = vsel %vm5212_vm8, %v12528_v16, %v5221_v34  ;;  %v12659_v55 = vsel %vm5212_vm8, %v12569_v28, %v5224_v49  ;;  %v11357_v6 = vld [vmem:[#allocation8 + $0x70] sm:$0xff]  }
 0x3e0   : > { %v12661_v18 = vpack.c.bf16 %v4287_v19, %v4286_v57  ;;  %v10470_v53 = vadd.f32 %v9968_v38, %v12541_v40  ;;  %v4085_v25 = vpop.f32.mrb[17].mxu0  ;;  %10046 = vmatprep.subr.bf16.mxu1 %v11355_v29  ;;  %v12667_v8 = vsel %vm4877_vm7, %v4887_v22, %v4889_v56  ;;  %v12670_v43 = vsel %vm4877_vm7, %v4889_v56, %v4891_v30 }
 0x3e1   : > { %v12672_v34 = vpack.c.bf16 %v4285_v1, %v4284_v12  ;;  %v10471_v28 = vadd.f32 %v12541_v40, %v4085_v25  ;;  %v9969_v49 = vpop.f32.mrb[18].mxu0  ;;  %v4452_v50 = vsel %vm4390_vm6, %v12605_v11, %v4451_v27  ;;  %v4461_v15 = vsel %vm4390_vm6, %v4451_v27, %v12649_v21 }
 0x3e2   : > { %4337 = vst [vmem:[#allocation2 + $0x48] sm:$0xff] %v12661_v18  ;;  %v4218_v10 = vmax.f32 %v10470_v53, 0.0  ;;  %v10472_v22 = vadd.f32 %v9969_v49, %v12541_v40  ;;  %v4088_v44 = vpop.f32.mrb[19].mxu0  ;;  %10011 = vmatmul.mubr.bf16.gmra.mrb[8].mxu1 %v4452_v50  ;;  %v13707_v2 = vshrl.u32 %v12661_v18, 16  ;;  %v13697_v39 = vshll.u32 %v12661_v18, 16  ;;  %v11358_v49 = vld [vmem:[#allocation8 + $0x78] sm:$0xff]  }
 0x3e3   : > { %4336 = vst [vmem:[#allocation2 + $0x40] sm:$0xff] %v12672_v34  ;;  %v4216_v51 = vmax.f32 %v10471_v28, 0.0  ;;  %v10473_v11 = vadd.f32 %v12541_v40, %v4088_v44  ;;  %10014 = vmatprep.mubr.bf16.mxu1 %v4461_v15  ;;  %v13711_v62 = vshrl.u32 %v12672_v34, 16  ;;  %v13698_v4 = vshll.u32 %v12672_v34, 16  ;;  %10047 = vmatpush3.bf16.msra.mxu1 %v11355_v29 }
 0x3e4   : > { %v4219_v48 = vmax.f32 %v10472_v22, 0.0  ;;  %v4474_v57 = vrot.slane %v13707_v2, 6  ;;  %v4477_v61 = vrot.slane %v13697_v39, 7  ;;  %10048 = vmatprep.subr.bf16.mxu1 %v11356_v3  ;;  %v4290_v33 = vmul.f32 %v4254_v31, %v4218_v10 }
 0x3e5   : > { %v4217_v5 = vmax.f32 %v10473_v11, 0.0  ;;  %v4465_v12 = vrot.slane %v13711_v62, 6  ;;  %v4468_v41 = vrot.slane %v13698_v4, 7  ;;  %v4893_v58 = vrot.slane %v12672_v34, 7 }
 0x3e6   : > { %v4291_v29 = vmul.f32 %v4255_v37, %v4219_v48  ;;  %v12695_v0 = vor.u32 %v4477_v61, %v4474_v57  ;;  %v4895_v19 = vrot.slane %v12661_v18, 7  ;;  %v4288_v56 = vmul.f32 %v4252_v36, %v4216_v51  ;;  %v4258_v37 = vld [vmem:[#allocation9 + $0xb0] sm:$0xff]  ;;  %v4259_v57 = vld [vmem:[#allocation9 + $0xb8] sm:$0xff] }
 0x3e7   : > { %v4289_v1 = vmul.f32 %v4253_v9, %v4217_v5  ;;  %v9972_v38 = vpop.f32.mrb[20].mxu0  ;;  %v4469_v27 = vor.u32 %v4468_v41, %v4465_v12  ;;  %10049 = vmatpush3.bf16.msra.mxu1 %v11356_v3  ;;  %v12703_v50 = vsel %vm4877_vm7, %v4891_v30, %v4893_v58  ;;  %v4256_v5 = vld [vmem:[#allocation9 + $0xa0] sm:$0xff]  ;;  %v4257_v41 = vld [vmem:[#allocation9 + $0xa8] sm:$0xff] }
 0x3e8   : > { %v12699_v53 = vpack.c.bf16 %v4291_v29, %v4290_v33  ;;  %v10474_v25 = vadd.f32 %v9972_v38, %v12541_v40  ;;  %v4101_v28 = vpop.f32.mrb[21].mxu0  ;;  %10050 = vmatprep.subr.bf16.mxu1 %v11357_v6  ;;  %v12706_v15 = vsel %vm4877_vm7, %v4893_v58, %v4895_v19 }
 0x3e9   : > { %v12708_v10 = vpack.c.bf16 %v4289_v1, %v4288_v56  ;;  %v10475_v31 = vadd.f32 %v12541_v40, %v4101_v28  ;;  %v9973_v22 = vpop.f32.mrb[22].mxu0  ;;  %v4470_v3 = vsel %vm4390_vm6, %v12649_v21, %v4469_v27  ;;  %v4479_v44 = vsel %vm4390_vm6, %v4469_v27, %v12695_v0  ;;  %v12727_v56 = vld [vmem:[#allocation8 + $0x80] sm:$0xff]  }
 0x3ea   : > { %4339 = vst [vmem:[#allocation2 + $0x58] sm:$0xff] %v12699_v53  ;;  %v4222_v51 = vmax.f32 %v10474_v25, 0.0  ;;  %v10476_v30 = vadd.f32 %v9973_v22, %v12541_v40  ;;  %v4104_v11 = vpop.f32.mrb[23].mxu0  ;;  %10015 = vmatmul.mubr.bf16.gmra.mrb[12].mxu1 %v4470_v3  ;;  %v13700_v36 = vshrl.u32 %v12699_v53, 16  ;;  %v13695_v48 = vshll.u32 %v12699_v53, 16 }
 0x3eb   : > { %4338 = vst [vmem:[#allocation2 + $0x50] sm:$0xff] %v12708_v10  ;;  %v4220_v9 = vmax.f32 %v10475_v31, 0.0  ;;  %v10477_v21 = vadd.f32 %v12541_v40, %v4104_v11  ;;  %10018 = vmatprep.mubr.bf16.mxu1 %v4479_v44  ;;  %v13705_v61 = vshrl.u32 %v12708_v10, 16  ;;  %v13696_v33 = vshll.u32 %v12708_v10, 16  ;;  %10051 = vmatpush3.bf16.msra.mxu1 %v11357_v6 }
 0x3ec   : > { %v4223_v12 = vmax.f32 %v10476_v30, 0.0  ;;  %v4492_v29 = vrot.slane %v13700_v36, 6  ;;  %v4495_v58 = vrot.slane %v13695_v48, 7  ;;  %10052 = vmatprep.subr.bf16.mxu1 %v11358_v49  ;;  %v4294_v1 = vmul.f32 %v4258_v37, %v4222_v51 }
 0x3ed   : > { %v4221_v38 = vmax.f32 %v10477_v21, 0.0  ;;  %v4483_v27 = vrot.slane %v13705_v61, 6  ;;  %v4486_v6 = vrot.slane %v13696_v33, 7  ;;  %v4897_v31 = vrot.slane %v12708_v10, 7 }
 0x3ee   : > { %v4295_v25 = vmul.f32 %v4259_v57, %v4223_v12  ;;  %v4496_v28 = vor.u32 %v4495_v58, %v4492_v29  ;;  %v4899_v22 = vrot.slane %v12699_v53, 7  ;;  %v4292_v3 = vmul.f32 %v4256_v5, %v4220_v9  ;;  %v4262_v58 = vld [vmem:[#allocation9 + $0xd0] sm:$0xff] }
 0x3ef   : > { %v4293_v44 = vmul.f32 %v4257_v41, %v4221_v38  ;;  %v9976_v30 = vpop.f32.mrb[24].mxu0  ;;  %v4487_v11 = vor.u32 %v4486_v6, %v4483_v27  ;;  %10053 = vmatpush3.bf16.msra.mxu1 %v11358_v49  ;;  %v12737_v51 = vrot.slane %v4427_v20, 7  ;;  %v12744_v57 = vsel %vm4877_vm7, %v4895_v19, %v4897_v31  ;;  %v4263_v6 = vld [vmem:[#allocation9 + $0xd8] sm:$0xff] }
 0x3f0   : > { %v12739_v37 = vpack.c.bf16 %v4295_v25, %v4294_v1  ;;  %v10478_v21 = vadd.f32 %v9976_v30, %v12541_v40  ;;  %v4117_v54 = vpop.f32.mrb[25].mxu0  ;;  %10090 = vmatprep.subr.bf16.mxu1 %v12727_v56  ;;  %v12747_v9 = vsel %vm4877_vm7, %v4897_v31, %v4899_v22  ;;  %v4261_v30 = vld [vmem:[#allocation9 + $0xc8] sm:$0xff] }
 0x3f1   : > { %v12749_v5 = vpack.c.bf16 %v4293_v44, %v4292_v3  ;;  %v10479_v49 = vadd.f32 %v12541_v40, %v4117_v54  ;;  %v9977_v12 = vpop.f32.mrb[26].mxu0  ;;  %v4488_v20 = vsel %vm4390_vm6, %v12695_v0, %v4487_v11  ;;  %v4497_v41 = vsel %vm4390_vm6, %v4487_v11, %v4496_v28  ;;  %v4260_v3 = vld [vmem:[#allocation9 + $0xc0] sm:$0xff] }
 0x3f2   : > { %4341 = vst [vmem:[#allocation2 + $0x68] sm:$0xff] %v12739_v37  ;;  %v4226_v29 = vmax.f32 %v10478_v21, 0.0  ;;  %v10480_v19 = vadd.f32 %v9977_v12, %v12541_v40  ;;  %v4120_v1 = vpop.f32.mrb[27].mxu0  ;;  %10019 = vmatmul.mubr.bf16.gmra.mrb[16].mxu1 %v4488_v20  ;;  %v13699_v38 = vshrl.u32 %v12739_v37, 16  ;;  %v13701_v27 = vshll.u32 %v12739_v37, 16 }
 0x3f3   : > { %4340 = vst [vmem:[#allocation2 + $0x60] sm:$0xff] %v12749_v5  ;;  %v4224_v54 = vmax.f32 %v10479_v49, 0.0  ;;  %v10481_v0 = vadd.f32 %v12541_v40, %v4120_v1  ;;  %10022 = vmatprep.mubr.bf16.mxu1 %v4497_v41  ;;  %v13704_v25 = vshrl.u32 %v12749_v5, 16  ;;  %v13703_v31 = vshll.u32 %v12749_v5, 16 }
 0x3f4   : > { %v4227_v44 = vmax.f32 %v10480_v19, 0.0  ;;  %v4510_v11 = vrot.slane %v13699_v38, 6  ;;  %v4513_v21 = vrot.slane %v13701_v27, 7  ;;  %v4298_v12 = vmul.f32 %v4262_v58, %v4226_v29 }
 0x3f5   : > { %v4225_v20 = vmax.f32 %v10481_v0, 0.0  ;;  %v4501_v49 = vrot.slane %v13704_v25, 6  ;;  %v4504_v41 = vrot.slane %v13703_v31, 7  ;;  %v4901_v33 = vrot.slane %v12749_v5, 7 }
 0x3f6   : > { %v4299_v1 = vmul.f32 %v4263_v6, %v4227_v44  ;;  %v4514_v48 = vor.u32 %v4513_v21, %v4510_v11  ;;  %v13702_v19 = vrot.slane %v12739_v37, 7  ;;  %v4296_v39 = vmul.f32 %v4260_v3, %v4224_v54 }
 0x3f7   : > { %v4297_v4 = vmul.f32 %v4261_v30, %v4225_v20  ;;  %v9980_v38 = vpop.f32.mrb[28].mxu0  ;;  %v4505_v36 = vor.u32 %v4504_v41, %v4501_v49  ;;  %v5227_v29 = vor.u32 %v12737_v51, %v4430_v46  ;;  %v12780_v6 = vsel %vm4877_vm7, %v4899_v22, %v4901_v33  ;;  %v4264_v20 = vld [vmem:[#allocation9 + $0xe0] sm:$0xff]  ;;  %v4265_v41 = vld [vmem:[#allocation9 + $0xe8] sm:$0xff] }
 0x3f8   : > { %v12776_v58 = vpack.c.bf16 %v4299_v1, %v4298_v12  ;;  %v10482_v0 = vadd.f32 %v9980_v38, %v12541_v40  ;;  %v4133_v27 = vpop.f32.mrb[29].mxu0  ;;  %v12785_v44 = vsel %vm4877_vm7, %v4901_v33, %v13702_v19  ;;  %v13774_v17 = vshrl.u32 %v12749_v5, 16 }
 0x3f9   : > { %v12787_v54 = vpack.c.bf16 %v4297_v4, %v4296_v39  ;;  %v10483_v3 = vadd.f32 %v12541_v40, %v4133_v27  ;;  %v9981_v42 = vpop.f32.mrb[30].mxu0  ;;  %v4506_v46 = vsel %vm4390_vm6, %v4496_v28, %v4505_v36  ;;  %v4515_v30 = vsel %vm4390_vm6, %v4505_v36, %v4514_v48  ;;  %v4266_v39 = vld [vmem:[#allocation9 + $0xf0] sm:$0xff]  ;;  %v4267_v27 = vld [vmem:[#allocation9 + $0xf8] sm:$0xff] }
 0x3fa   : > { %4343 = vst [vmem:[#allocation2 + $0x78] sm:$0xff] %v12776_v58  ;;  %v4230_v38 = vmax.f32 %v10482_v0, 0.0  ;;  %v10484_v22 = vadd.f32 %v9981_v42, %v12541_v40  ;;  %v4136_v11 = vpop.f32.mrb[31].mxu0  ;;  %10023 = vmatmul.mubr.bf16.gmra.mrb[20].mxu1 %v4506_v46  ;;  %v13706_v21 = vshrl.u32 %v12776_v58, 16  ;;  %v13708_v33 = vshll.u32 %v12776_v58, 16 }
 0x3fb   : > { %4342 = vst [vmem:[#allocation2 + $0x70] sm:$0xff] %v12787_v54  ;;  %v4228_v4 = vmax.f32 %v10483_v3, 0.0  ;;  %v10485_v28 = vadd.f32 %v12541_v40, %v4136_v11  ;;  %10026 = vmatprep.mubr.bf16.mxu1 %v4515_v30  ;;  %v13709_v36 = vshrl.u32 %v12787_v54, 16  ;;  %v13710_v12 = vshll.u32 %v12787_v54, 16 }
 0x3fc   : > { %v4231_v49 = vmax.f32 %v10484_v22, 0.0  ;;  %v4528_v1 = vrot.slane %v13706_v21, 6  ;;  %v4531_v0 = vrot.slane %v13708_v33, 7  ;;  %v4302_v30 = vmul.f32 %v4266_v39, %v4230_v38 }
 0x3fd   : > { %v4229_v42 = vmax.f32 %v10485_v28, 0.0  ;;  %v4519_v3 = vrot.slane %v13709_v36, 6  ;;  %v4522_v46 = vrot.slane %v13710_v12, 7  ;;  %v4300_v31 = vmul.f32 %v4264_v20, %v4228_v4 }
 0x3fe   : > { %v4303_v11 = vmul.f32 %v4267_v27, %v4231_v49  ;;  %v4532_v19 = vor.u32 %v4531_v0, %v4528_v1  ;;  %v12810_v21 = vsel %vm5212_vm8, %v12579_v24, %v5227_v29  ;;  %v5229_v36 = vrot.slane %v4436_v35, 7 }
 0x3ff   : > { %v4301_v25 = vmul.f32 %v4265_v41, %v4229_v42  ;;  %v9984_v22 = vpop.f32.mrb[32].mxu0  ;;  %v4523_v61 = vor.u32 %v4522_v46, %v4519_v3  ;;  %v4271_v41 = vld [vmem:[#allocation9 + $0x118] sm:$0xff]  ;;  %v4269_v42 = vld [vmem:[#allocation9 + $0x108] sm:$0xff]  ;;  %v13775_v13 = vshrl.u32 %v12739_v37, 16 }
 0x400   : > { %v12812_v2 = vpack.c.bf16 %v4303_v11, %v4302_v30  ;;  %v10486_v28 = vadd.f32 %v9984_v22, %v12541_v40  ;;  %v4149_v33 = vpop.f32.mrb[33].mxu0 }
 0x401   : > { %v12817_v12 = vpack.c.bf16 %v4301_v25, %v4300_v31  ;;  %v10487_v38 = vadd.f32 %v12541_v40, %v4149_v33  ;;  %v9985_v39 = vpop.f32.mrb[34].mxu0  ;;  %v4524_v4 = vsel %vm4390_vm6, %v4514_v48, %v4523_v61  ;;  %v4533_v27 = vsel %vm4390_vm6, %v4523_v61, %v4532_v19  ;;  %v4270_v25 = vld [vmem:[#allocation9 + $0x110] sm:$0xff]  ;;  %v4268_v33 = vld [vmem:[#allocation9 + $0x100] sm:$0xff] }
 0x402   : > { %4345 = vst [vmem:[#allocation2 + $0x88] sm:$0xff] %v12812_v2  ;;  %v4234_v24 = vmax.f32 %v10486_v28, 0.0  ;;  %v10488_v29 = vadd.f32 %v9985_v39, %v12541_v40  ;;  %v4152_v20 = vpop.f32.mrb[35].mxu0  ;;  %10027 = vmatmul.mubr.bf16.gmra.mrb[24].mxu1 %v4524_v4  ;;  %v4544_v49 = vshrl.u32 %v12812_v2, 16  ;;  %v13712_v35 = vshll.u32 %v12812_v2, 16 }
 0x403   : > { %4344 = vst [vmem:[#allocation2 + $0x80] sm:$0xff] %v12817_v12  ;;  %v4232_v31 = vmax.f32 %v10487_v38, 0.0  ;;  %v10489_v48 = vadd.f32 %v12541_v40, %v4152_v20  ;;  %10030 = vmatprep.mubr.bf16.mxu1 %v4533_v27  ;;  %v4535_v61 = vshrl.u32 %v12817_v12, 16  ;;  %v4538_v1 = vshll.u32 %v12817_v12, 16 }
 0x404   : > { %v4235_v0 = vmax.f32 %v10488_v29, 0.0  ;;  %v4546_v3 = vrot.slane %v4544_v49, 6  ;;  %v4549_v46 = vrot.slane %v13712_v35, 7  ;;  %v4306_v28 = vmul.f32 %v4270_v25, %v4234_v24 }
 0x405   : > { %v4233_v30 = vmax.f32 %v10489_v48, 0.0  ;;  %v4537_v11 = vrot.slane %v4535_v61, 6  ;;  %v4540_v22 = vrot.slane %v4538_v1, 7  ;;  %v4304_v38 = vmul.f32 %v4268_v33, %v4232_v31 }
 0x406   : > { %v4307_v39 = vmul.f32 %v4271_v41, %v4235_v0  ;;  %v4550_v4 = vor.u32 %v4549_v46, %v4546_v3  ;;  %v5230_v27 = vor.u32 %v5229_v36, %v4439_v47  ;;  %v5232_v29 = vrot.slane %v4445_v59, 7 }
 0x407   : > { %v4305_v62 = vmul.f32 %v4269_v42, %v4233_v30  ;;  %v4541_v40 = vor.u32 %v4540_v22, %v4537_v11  ;;  %v5235_v35 = vrot.slane %v4454_v63, 7  ;;  %v13770_v63 = vshrl.u32 %v12672_v34, 16 }
 0x408   : > { %v12836_v20 = vpack.c.bf16 %v4307_v39, %v4306_v28  ;;  %v12846_v31 = vsel %vm5212_vm8, %v12737_v51, %v5230_v27  ;;  %v5233_v7 = vor.u32 %v5232_v29, %v4448_v32  ;;  %v13772_v51 = vshrl.u32 %v12708_v10, 16 }
 0x409   : > { %v12840_v48 = vpack.c.bf16 %v4305_v62, %v4304_v38  ;;  %v4542_v24 = vsel %vm4390_vm6, %v4532_v19, %v4541_v40  ;;  %v4551_v25 = vsel %vm4390_vm6, %v4541_v40, %v4550_v4  ;;  %v5236_v47 = vor.u32 %v5235_v35, %v4457_v26 }
 0x40a   : > { %13768 = vst [vmem:[#allocation16_spill] sm:$0xff] %v12836_v20  ;;  %4347 = vst [vmem:[#allocation2 + $0x98] sm:$0xff] %v12836_v20  ;;  %10031 = vmatmul.mubr.bf16.gmra.mrb[28].mxu1 %v4542_v24  ;;  %v5238_v59 = vrot.slane %v13770_v63, 7  ;;  %v13771_v62 = vshrl.u32 %v12661_v18, 16  ;;  %v5244_v33 = vrot.slane %v13772_v51, 7  ;;  %v13773_v41 = vshrl.u32 %v12699_v53, 16 }
 0x40b   : > { %13769 = vst [vmem:[#allocation17_spill] sm:$0xff] %v12840_v48  ;;  %4346 = vst [vmem:[#allocation2 + $0x90] sm:$0xff] %v12840_v48  ;;  %10034 = vmatprep.mubr.bf16.mxu1 %v4551_v25  ;;  %v5250_v32 = vrot.slane %v13774_v17, 7  ;;  %v5253_v26 = vrot.slane %v13775_v13, 7  ;;  %v12867_v42 = vsel %vm5212_vm8, %v5229_v36, %v5233_v7  ;;  %v12870_v3 = vsel %vm5212_vm8, %v5232_v29, %v5236_v47 }
 0x40c   : > { %v5241_v19 = vrot.slane %v13771_v62, 7  ;;  %v5247_v0 = vrot.slane %v13773_v41, 7  ;;  %v13776_v46 = vshll.u32 %v12672_v34, 16  ;;  %v13777_v11 = vshll.u32 %v12661_v18, 16 }
 0x40d   : > { %v13778_v28 = vshll.u32 %v12708_v10, 16  ;;  %v13779_v39 = vshll.u32 %v12699_v53, 16  ;;  %v13780_v27 = vshll.u32 %v12749_v5, 16  ;;  %v13781_v36 = vshll.u32 %v12739_v37, 16 }
 0x40e   : > { %v5239_v30 = vor.u32 %v5238_v59, %v13776_v46  ;;  %v5242_v22 = vor.u32 %v5241_v19, %v13777_v11  ;;  %v13784_v18 = vshrl.u32 %v12787_v54, 16  ;;  %v13785_v10 = vshrl.u32 %v12776_v58, 16 }
 0x40f   : > { %v5245_v38 = vor.u32 %v5244_v33, %v13778_v28  ;;  %v5248_v40 = vor.u32 %v5247_v0, %v13779_v39  ;;  %v5251_v24 = vor.u32 %v5250_v32, %v13780_v27  ;;  %v5254_v25 = vor.u32 %v5253_v26, %v13781_v36  ;;  %v12942_v36 = vld [vmem:[#allocation2 + $0x18] sm:$0xff] }
 0x410   : > { %v12885_v29 = vsel %vm5212_vm8, %v5235_v35, %v5239_v30  ;;  %v12888_v34 = vsel %vm5212_vm8, %v5238_v59, %v5242_v22  ;;  %v5256_v7 = vrot.slane %v13784_v18, 7  ;;  %v5259_v47 = vrot.slane %v13785_v10, 7  ;;  %13800 = vst [vmem:[#allocation31_spill] sm:$0xff] %v12942_v36  ;;  %v12946_v18 = vld [vmem:[#allocation2 + $0x28] sm:$0xff] }
 0x411   : > { %13782 = vst [vmem:[#allocation18_spill] sm:$0xff] %v12885_v29  ;;  %13783 = vst [vmem:[#allocation19_spill] sm:$0xff] %v12888_v34  ;;  %v12895_v53 = vsel %vm5212_vm8, %v5241_v19, %v5245_v38  ;;  %v12898_v5 = vsel %vm5212_vm8, %v5244_v33, %v5248_v40  ;;  %v12901_v63 = vsel %vm5212_vm8, %v5247_v0, %v5251_v24  ;;  %v13790_v59 = vshll.u32 %v12787_v54, 16  ;;  %v12914_v19 = vld [vmem:[#allocation2] sm:$0x80]  ;;  %v12940_v24 = vld [vmem:[#allocation2 + $0x10] sm:$0xff] }
 0x412   : > { %13786 = vst [vmem:[#allocation20_spill] sm:$0xff] %v12895_v53  ;;  %13787 = vst [vmem:[#allocation21_spill] sm:$0xff] %v12898_v5  ;;  %v12904_v35 = vsel %vm5212_vm8, %v5250_v32, %v5254_v25  ;;  %v13792_v51 = vshll.u32 %v12776_v58, 16  ;;  %v5262_v17 = vrot.slane %v4535_v61, 7  ;;  %v12912_v13 = vrot.slane %v4544_v49, 7  ;;  %v12944_v25 = vld [vmem:[#allocation2 + $0x20] sm:$0xff] }
 0x413   : > { %13788 = vst [vmem:[#allocation22_spill] sm:$0xff] %v12901_v63  ;;  %13789 = vst [vmem:[#allocation23_spill] sm:$0xff] %v12904_v35  ;;  %v12908_v62 = vor.u32 %v5256_v7, %v13790_v59  ;;  %v12916_v33 = vld [vmem:[#allocation2 + $0x90] sm:$0x7f]  ;;  %v13796_v30 = vshll.u32 %v12812_v2, 16  ;;  %v4878_v22 = vrot.slane %v12914_v19, 7 }
 0x414   : > { %v5260_v41 = vor.u32 %v5259_v47, %v13792_v51  ;;  %13793 = vst [vmem:[#allocation25_spill] sm:$0xff] %v12912_v13  ;;  %v5263_v46 = vor.u32 %v5262_v17, %v4538_v1  ;;  %v4553_v61 = vshrl.u32 %v12916_v33, 16  ;;  %v4556_v49 = vshll.u32 %v12916_v33, 16  ;;  %13799 = vst [vmem:[#allocation30_spill] sm:$0xff] %v12940_v24  ;;  %v11360_v59 = vld [vmem:[#allocation8 + $0x88] sm:$0xff]   ;;  %v12955_v51 = vld [vmem:[#allocation2 + $0x38] sm:$0xff] }
 0x415   : > { %13791 = vst [vmem:[#allocation24_spill] sm:$0xff] %v12908_v62  ;;  %v12920_v0 = vsel %vm5212_vm8, %v5253_v26, %v12908_v62  ;;  %v5266_v11 = vor.u32 %v12912_v13, %v13796_v30  ;;  %v4880_v1 = vsel %vm4877_vm7, %v4878_v22, %v12528_v16  ;;  %13801 = vst [vmem:[#allocation32_spill] sm:$0xff] %v12944_v25  ;;  %v13804_v10 = vrot.slane %v12550_v45, 7  ;;  %v11362_v13 = vld [vmem:[#allocation8 + $0x98] sm:$0xff]  }
 0x416   : > { %13794 = vst [vmem:[#allocation26_spill] sm:$0xff] %v12920_v0  ;;  %v12923_v32 = vsel %vm5212_vm8, %v5256_v7, %v5260_v41  ;;  %v12932_v28 = vsel %vm5212_vm8, %v5259_v47, %v5263_v46  ;;  %v4555_v38 = vrot.slane %v4553_v61, 6  ;;  %v4558_v39 = vrot.slane %v4556_v49, 7  ;;  %13802 = vst [vmem:[#allocation33_spill] sm:$0xff] %v12946_v18  ;;  %v12948_v7 = vld [vmem:[#allocation2 + $0x30] sm:$0xff] }
 0x417   : > { %13795 = vst [vmem:[#allocation27_spill] sm:$0xff] %v12923_v32  ;;  %13797 = vst [vmem:[#allocation28_spill] sm:$0xff] %v12932_v28  ;;  %v12935_v26 = vsel %vm5212_vm8, %v5262_v17, %v5266_v11  ;;  %v4882_v47 = vsel %vm4877_vm7, %v12528_v16, %v13804_v10  ;;  %v12961_v30 = vshrl.u32 %v12944_v25, 16  ;;  %v12963_v11 = vld [vmem:[#allocation2 + $0x40] sm:$0xff]  ;;  %v12966_v45 = vshll.u32 %v12944_v25, 16  ;;  %v12995_v17 = vld [vmem:[#allocation2 + $0x58] sm:$0xff] }
 0x418   : > { %13798 = vst [vmem:[#allocation29_spill] sm:$0xff] %v12935_v26  ;;  %v4559_v40 = vor.u32 %v4558_v39, %v4555_v38  ;;  %13803 = vst [vmem:[#allocation34_spill] sm:$0xff] %v12948_v7  ;;  %v12969_v61 = vshrl.u32 %v12946_v18, 16  ;;  %v12972_v49 = vshll.u32 %v12946_v18, 16  ;;  %v12975_v22 = vshrl.u32 %v12948_v7, 16  ;;  %v12977_v38 = vld [vmem:[#allocation2 + $0x48] sm:$0xff] }
 0x419   : > { %13805 = vst [vmem:[#allocation35_spill] sm:$0xff] %v12955_v51  ;;  %13806 = vst [vmem:[#allocation36_spill] sm:$0xff] %v12963_v11  ;;  %v12982_v39 = vshll.u32 %v12948_v7, 16  ;;  %v12990_v10 = vshll.u32 %v12955_v51, 16  ;;  %v13006_v46 = vshll.u32 %v12977_v38, 16  ;;  %v13014_v7 = vld [vmem:[#allocation2 + $0x68] sm:$0xff] }
 0x41a   : > { %v4560_v27 = vsel %vm4390_vm6, %v4550_v4, %v4559_v40  ;;  %13807 = vst [vmem:[#allocation37_spill] sm:$0xff] %v12977_v38  ;;  %v12985_v40 = vshrl.u32 %v12955_v51, 16  ;;  %v13003_v4 = vshrl.u32 %v12977_v38, 16  ;;  %13810 = vst [vmem:[#allocation40_spill] sm:$0xff] %v13014_v7  ;;  %v13017_v18 = vshll.u32 %v12995_v17, 16 }
 0x41b   : > { %10035 = vmatmul.mubr.bf16.gmra.mrb[32].mxu1 %v4560_v27  ;;  %v11361_v27 = vld [vmem:[#allocation8 + $0x90] sm:$0xff]   ;;  %v13811_v25 = vshll.u32 %v12940_v24, 16  ;;  %v13812_v38 = vshll.u32 %v12942_v36, 16  ;;  %v6358_v26 = vrot.slane %v12972_v49, 1  ;;  %v6374_v28 = vrot.slane %v12990_v10, 1 }
 0x41c   : > { %10054 = vmatprep.mubr.bf16.mxu1 %v4880_v1  ;;  %v12987_v1 = vld [vmem:[#allocation2 + $0x50] sm:$0xff]  ;;  %v13031_v48 = vshll.u32 %v13014_v7, 16  ;;  %v13813_v32 = vshrl.u32 %v12940_v24, 16 }
 0x41d   : > { %13808 = vst [vmem:[#allocation38_spill] sm:$0xff] %v12987_v1  ;;  %v13009_v41 = vshrl.u32 %v12987_v1, 16  ;;  %v13012_v51 = vshll.u32 %v12987_v1, 16  ;;  %v6337_v20 = vrot.slane %v13811_v25, 1  ;;  %v6342_v62 = vrot.slane %v13812_v38, 1 }
 0x41e   : > { %v6350_v1 = vrot.slane %v12966_v45, 1  ;;  %v13814_v25 = vshrl.u32 %v12942_v36, 16  ;;  %v6362_v5 = vor.u32 %v6358_v26, %v12969_v61  ;;  %v6378_v34 = vor.u32 %v6374_v28, %v12985_v40  ;;  %v11363_v36 = vld [vmem:[#allocation8 + $0xa0] sm:$0xff]  }
 0x41f   : > { %v6338_v0 = vor.u32 %v6337_v20, %v13813_v32  ;;  %v13045_v20 = vshrl.u32 %v12995_v17, 16 }
 0x420   : > { %v6346_v35 = vor.u32 %v6342_v62, %v13814_v25  ;;  %v6354_v63 = vor.u32 %v6350_v1, %v12961_v30 }
 0x421   : > { %v13048_v32 = vsel %vm890_vm1, %v6338_v0, %v6342_v62  ;;  %v6398_v0 = vrot.slane %v13012_v51, 1 }
 0x422   : > { %13815 = vst [vmem:[#allocation41_spill] sm:$0xff] %v13048_v32  ;;  %v13051_v25 = vsel %vm890_vm1, %v6346_v35, %v6350_v1  ;;  %v13055_v24 = vsel %vm890_vm1, %v6354_v63, %v6358_v26  ;;  %v6406_v1 = vrot.slane %v13017_v18, 1  ;;  %v7622_v32 = vrot.slane %v13006_v46, 2 }
 0x423   : > { %10055 = vmatmul.mubr.bf16.vlgmr.msra.gmra.mrb[0].mxu1 %v4882_v47  ;;  %v12993_v47 = vshrl.u32 %v12963_v11, 16  ;;  %13816 = vst [vmem:[#allocation42_spill] sm:$0xff] %v13051_v25  ;;  %13817 = vst [vmem:[#allocation43_spill] sm:$0xff] %v13055_v24 }
 0x424   : > { %10058 = vmatprep.mubr.bf16.mxu1 %v12577_v14  ;;  %10091 = vmatpush3.bf16.msra.mxu1 %v12727_v56  ;;  %v12997_v14 = vld [vmem:[#allocation2 + $0x60] sm:$0xff]  ;;  %v13000_v56 = vshll.u32 %v12963_v11, 16 }
 0x425   : > { %10092 = vmatprep.subr.bf16.mxu1 %v11360_v59  ;;  %13809 = vst [vmem:[#allocation39_spill] sm:$0xff] %v12997_v14  ;;  %v13020_v11 = vshll.u32 %v12997_v14, 16  ;;  %v13071_v63 = vshrl.u32 %v12997_v14, 16 }
 0x426   : > { %v6382_v38 = vrot.slane %v13000_v56, 1 }
 0x428   : > { %10093 = vmatpush3.bf16.msra.mxu1 %v11360_v59  ;;  %v6366_v59 = vrot.slane %v12982_v39, 1  ;;  %v6386_v62 = vor.u32 %v6382_v38, %v12993_v47 }
 0x429   : > { %10094 = vmatprep.subr.bf16.mxu1 %v11361_v27 }
 0x42a   : > { %v6370_v53 = vor.u32 %v6366_v59, %v12975_v22  ;;  %v13058_v29 = vsel %vm890_vm1, %v6362_v5, %v6366_v59  ;;  %v13074_v5 = vshrl.u32 %v13014_v7, 16  ;;  %v6402_v59 = vor.u32 %v6398_v0, %v13009_v41 }
 0x42b   : > { %10059 = vmatmul.mubr.bf16.gmra.mrb[4].mxu1 %v12619_v23  ;;  %v6390_v23 = vrot.slane %v13006_v46, 1  ;;  %13818 = vst [vmem:[#allocation44_spill] sm:$0xff] %v13058_v29  ;;  %v7625_v7 = vrot.slane %v13009_v41, 1 }
 0x42c   : > { %10062 = vmatprep.mubr.bf16.mxu1 %v12624_v52  ;;  %10095 = vmatpush3.bf16.msra.mxu1 %v11361_v27  ;;  %v13061_v52 = vsel %vm890_vm1, %v6370_v53, %v6374_v28  ;;  %v13064_v27 = vsel %vm890_vm1, %v6378_v34, %v6382_v38  ;;  %v6414_v53 = vrot.slane %v13020_v11, 1  ;;  %v6422_v28 = vrot.slane %v13031_v48, 1 }
 0x42d   : > { %10096 = vmatprep.subr.bf16.mxu1 %v11362_v13  ;;  %13819 = vst [vmem:[#allocation45_spill] sm:$0xff] %v13061_v52  ;;  %13820 = vst [vmem:[#allocation46_spill] sm:$0xff] %v13064_v27  ;;  %v6394_v35 = vor.u32 %v6390_v23, %v13003_v4  ;;  %v13079_v34 = vsel %vm890_vm1, %v6386_v62, %v6390_v23  ;;  %v6410_v38 = vor.u32 %v6406_v1, %v13045_v20  ;;  %v11364_v27 = vld [vmem:[#allocation8 + $0xa8] sm:$0xff]   ;;  %v11365_v62 = vld [vmem:[#allocation8 + $0xb0] sm:$0xff]  }
 0x42e   : > { %13821 = vst [vmem:[#allocation47_spill] sm:$0xff] %v13079_v34  ;;  %v6418_v52 = vor.u32 %v6414_v53, %v13071_v63  ;;  %v6426_v29 = vor.u32 %v6422_v28, %v13074_v5  ;;  %v13089_v24 = vsel %vm890_vm1, %v6402_v59, %v6406_v1  ;;  %v11366_v1 = vld [vmem:[#allocation8 + $0xb8] sm:$0xff]   ;;  %v13828_v59 = vrot.slane %v12739_v37, 7 }
 0x42f   : > { %v13082_v26 = vsel %vm890_vm1, %v6394_v35, %v6398_v0  ;;  %13823 = vst [vmem:[#allocation49_spill] sm:$0xff] %v13089_v24  ;;  %v13099_v35 = vld [vmem:[#allocation2 + $0x70] sm:$0xff]  ;;  %v7618_v34 = vrot.slane %v13000_v56, 2 }
 0x430   : > { %10097 = vmatpush3.bf16.msra.mxu1 %v11362_v13  ;;  %13822 = vst [vmem:[#allocation48_spill] sm:$0xff] %v13082_v26  ;;  %v13092_v13 = vsel %vm890_vm1, %v6410_v38, %v6414_v53  ;;  %v13096_v23 = vsel %vm890_vm1, %v6418_v52, %v6422_v28  ;;  %v13737_v0 = vshll.u32 %v13099_v35, 16  ;;  %v4905_v53 = vrot.slane %v12787_v54, 7  ;;  %v13128_v28 = vld [vmem:[#allocation2 + $0x90] sm:$0xff] }
 0x431   : > { %10098 = vmatprep.subr.bf16.mxu1 %v11363_v36  ;;  %13824 = vst [vmem:[#allocation50_spill] sm:$0xff] %v13092_v13  ;;  %13825 = vst [vmem:[#allocation51_spill] sm:$0xff] %v13096_v23  ;;  %v4909_v52 = vrot.slane %v12817_v12, 7  ;;  %v13126_v12 = vld [vmem:[#allocation2 + $0x88] sm:$0xff]  ;;  %v7610_v26 = vrot.slane %v12982_v39, 2 }
 0x433   : > { %10063 = vmatmul.mubr.bf16.gmra.mrb[8].mxu1 %v12667_v8  ;;  %v4907_v8 = vrot.slane %v12776_v58, 7  ;;  %v13118_v58 = vld [vmem:[#allocation2 + $0x80] sm:$0xff] }
 0x434   : > { %10066 = vmatprep.mubr.bf16.mxu1 %v12670_v43  ;;  %10099 = vmatpush3.bf16.msra.mxu1 %v11363_v36  ;;  %v13109_v43 = vrot.slane %v13737_v0, 1  ;;  %v13111_v36 = vld [vmem:[#allocation8 + $0xc0] sm:$0xff]   ;;  %v7284_v37 = vrot.slane %v13118_v58, 1  ;;  %v7288_v0 = vrot.slane %v13128_v28, 1 }
 0x435   : > { %10100 = vmatprep.subr.bf16.mxu1 %v11364_v27  ;;  %v13134_v38 = vsel %vm4877_vm7, %v4905_v53, %v4907_v8 }
 0x436   : > { %13826 = vst [vmem:[#allocation52_spill] sm:$0xff] %v13109_v43 }
 0x438   : > { %10101 = vmatpush3.bf16.msra.mxu1 %v11364_v27  ;;  %v13739_v27 = vrot.slane %v12812_v2, 7 }
 0x439   : > { %10102 = vmatprep.subr.bf16.mxu1 %v11365_v62 }
 0x43b   : > { %10067 = vmatmul.mubr.bf16.gmra.mrb[12].mxu1 %v12703_v50  ;;  %v13116_v50 = vld [vmem:[#allocation2 + $0x78] sm:$0xff] }
 0x43c   : > { %10070 = vmatprep.mubr.bf16.mxu1 %v12706_v15  ;;  %10103 = vmatpush3.bf16.msra.mxu1 %v11365_v62  ;;  %v13122_v15 = vsel %vm890_vm1, %v6426_v29, %v13109_v43  ;;  %v13137_v62 = vsel %vm4877_vm7, %v4907_v8, %v4909_v52  ;;  %v7282_v54 = vrot.slane %v13116_v50, 1  ;;  %v7286_v8 = vrot.slane %v13126_v12, 1  ;;  %v13175_v29 = vld [vmem:[#allocation2] sm:$0xff] }
 0x43d   : > { %10104 = vmatprep.subr.bf16.mxu1 %v11366_v1  ;;  %13827 = vst [vmem:[#allocation53_spill] sm:$0xff] %v13122_v15  ;;  %v7605_v15 = vrot.slane %v12969_v61, 1 }
 0x43e   : > { %v13171_v43 = vsel %vm1339_vm0, %v7282_v54, %v7284_v37  ;;  %v13179_v13 = vsel %vm1339_vm0, %v7284_v37, %v7286_v8  ;;  %v13182_v24 = vsel %vm1339_vm0, %v7286_v8, %v7288_v0  ;;  %v7606_v8 = vrot.slane %v12972_v49, 2 }
 0x43f   : > { %13831 = vst [vmem:[#allocation56_spill] sm:$0xff] %v13171_v43  ;;  %13832 = vst [vmem:[#allocation57_spill] sm:$0xff] %v13179_v13  ;;  %v7601_v43 = vrot.slane %v12961_v30, 1 }
 0x440   : > { %10105 = vmatpush3.bf16.msra.mxu1 %v11366_v1  ;;  %v13744_v1 = vrot.slane %v13099_v35, 1  ;;  %13833 = vst [vmem:[#allocation58_spill] sm:$0xff] %v13182_v24  ;;  %v7609_v24 = vrot.slane %v12975_v22, 1 }
 0x441   : > { %10142 = vmatprep.subr.bf16.mxu1 %v13111_v36 }
 0x442   : > { %v7611_v37 = vor.u32 %v7610_v26, %v7609_v24  ;;  %v7626_v24 = vrot.slane %v13012_v51, 2 }
 0x443   : > { %10071 = vmatmul.mubr.bf16.gmra.mrb[16].mxu1 %v12744_v57  ;;  %v4906_v57 = vsel %vm4877_vm7, %v13828_v59, %v4905_v53  ;;  %v13148_v59 = vld [vmem:[#allocation2 + $0x98] sm:$0xff]  ;;  %v7602_v53 = vrot.slane %v12966_v45, 2 }
 0x444   : > { %10074 = vmatprep.mubr.bf16.mxu1 %v12747_v9  ;;  %v13142_v9 = vsel %vm4877_vm7, %v4909_v52, %v13739_v27  ;;  %v13155_v27 = vld [vmem:[#allocation2 + $0x18] sm:$0xfe]  ;;  %v13168_v52 = vsel %vm1339_vm0, %v13744_v1, %v7282_v54  ;;  %v13746_v23 = vrot.slane %v13148_v59, 1 }
 0x445   : > { %13829 = vst [vmem:[#allocation54_spill] sm:$0xff] %v13155_v27  ;;  %13830 = vst [vmem:[#allocation55_spill] sm:$0xff] %v13168_v52  ;;  %v7594_v1 = vshrl.u32 %v13155_v27, 16 }
 0x446   : > { %v13189_v54 = vsel %vm1339_vm0, %v7288_v0, %v13746_v23  ;;  %v7613_v0 = vrot.slane %v12985_v40, 1  ;;  %v7607_v23 = vor.u32 %v7606_v8, %v7605_v15 }
 0x447   : > { %13834 = vst [vmem:[#allocation59_spill] sm:$0xff] %v13189_v54  ;;  %v7596_v13 = vrot.slane %v7594_v1, 1  ;;  %v7614_v54 = vrot.slane %v12990_v10, 2  ;;  %v7621_v1 = vrot.slane %v13003_v4, 1 }
 0x448   : > { %v13212_v8 = vsel %vm2140_vm2, %v7607_v23, %v7611_v37 }
 0x449   : > { %v7623_v14 = vor.u32 %v7622_v32, %v7621_v1  ;;  %v7633_v32 = vrot.slane %v13071_v63, 1 }
 0x44b   : > { %10075 = vmatmul.mubr.bf16.gmra.mrb[20].mxu1 %v12780_v6  ;;  %v7597_v6 = vshll.u32 %v13155_v27, 16  ;;  %v7617_v27 = vrot.slane %v12993_v47, 1 }
 0x44c   : > { %10078 = vmatprep.mubr.bf16.mxu1 %v12785_v44  ;;  %v7603_v44 = vor.u32 %v7602_v53, %v7601_v43  ;;  %v7615_v43 = vor.u32 %v7614_v54, %v7613_v0  ;;  %v7637_v54 = vrot.slane %v13074_v5, 1 }
 0x44d   : > { %v7599_v52 = vrot.slane %v7597_v6, 2  ;;  %v7619_v53 = vor.u32 %v7618_v34, %v7617_v27  ;;  %v7629_v34 = vrot.slane %v13045_v20, 1  ;;  %v7630_v27 = vrot.slane %v13017_v18, 2 }
 0x44e   : > { %v13205_v6 = vsel %vm2140_vm2, %v7603_v44, %v7607_v23  ;;  %v13216_v26 = vsel %vm2140_vm2, %v7611_v37, %v7615_v43  ;;  %v7627_v23 = vor.u32 %v7626_v24, %v7625_v7  ;;  %v7638_v37 = vrot.slane %v13031_v48, 2 }
 0x44f   : > { %v7600_v25 = vor.u32 %v7599_v52, %v7596_v13  ;;  %13835 = vst [vmem:[#allocation60_spill] sm:$0xff] %v13216_v26  ;;  %v13219_v13 = vsel %vm2140_vm2, %v7615_v43, %v7619_v53  ;;  %v7631_v52 = vor.u32 %v7630_v27, %v7629_v34  ;;  %v13840_v43 = vshll.u32 %v13099_v35, 16 }
 0x450   : > { %13836 = vst [vmem:[#allocation61_spill] sm:$0xff] %v13219_v13  ;;  %v13234_v1 = vsel %vm2140_vm2, %v7623_v14, %v7627_v23  ;;  %v13841_v7 = vshrl.u32 %v13116_v50, 16  ;;  %v7639_v34 = vor.u32 %v7638_v37, %v7637_v54  ;;  %v13843_v27 = vshll.u32 %v13116_v50, 16 }
 0x451   : > { %v13209_v15 = vsel %vm2140_vm2, %v7600_v25, %v7603_v44  ;;  %v13225_v25 = vsel %vm2140_vm2, %v7619_v53, %v7623_v14  ;;  %v13838_v44 = vshrl.u32 %v13099_v35, 16  ;;  %13839 = vst [vmem:[#allocation63_spill] sm:$0xff] %v13234_v1  ;;  %v7642_v53 = vrot.slane %v13840_v43, 2 }
 0x452   : > { %13837 = vst [vmem:[#allocation62_spill] sm:$0xff] %v13225_v25  ;;  %v7645_v24 = vrot.slane %v13841_v7, 1  ;;  %v13241_v25 = vsel %vm2140_vm2, %v7627_v23, %v7631_v52  ;;  %v7646_v13 = vrot.slane %v13843_v27, 2  ;;  %v13844_v26 = vshrl.u32 %v13118_v58, 16 }
 0x453   : > { %10079 = vmatmul.mubr.bf16.gmra.mrb[24].mxu1 %v4906_v57  ;;  %v7634_v57 = vrot.slane %v13020_v11, 2  ;;  %v7641_v0 = vrot.slane %v13838_v44, 1  ;;  %13842 = vst [vmem:[#allocation64_spill] sm:$0xff] %v13241_v25  ;;  %v13847_v1 = vshrl.u32 %v13126_v12, 16  ;;  %v13848_v37 = vshll.u32 %v13126_v12, 16 }
 0x454   : > { %10082 = vmatprep.mubr.bf16.mxu1 %v13134_v38  ;;  %v7649_v44 = vrot.slane %v13844_v26, 1  ;;  %v7647_v54 = vor.u32 %v7646_v13, %v7645_v24  ;;  %v13849_v25 = vshrl.u32 %v13128_v28, 16  ;;  %v13852_v24 = vshll.u32 %v13148_v59, 16 }
 0x455   : > { %v7635_v38 = vor.u32 %v7634_v57, %v7633_v32  ;;  %v7643_v32 = vor.u32 %v7642_v53, %v7641_v0  ;;  %v13846_v57 = vshll.u32 %v13118_v58, 16  ;;  %v7653_v7 = vrot.slane %v13847_v1, 1 }
 0x456   : > { %v7654_v27 = vrot.slane %v13848_v37, 2  ;;  %v7657_v26 = vrot.slane %v13849_v25, 1  ;;  %v13850_v53 = vshll.u32 %v13128_v28, 16  ;;  %v7662_v37 = vrot.slane %v13852_v24, 2 }
 0x457   : > { %v13248_v14 = vsel %vm2140_vm2, %v7631_v52, %v7635_v38  ;;  %v7650_v43 = vrot.slane %v13846_v57, 2  ;;  %v13255_v23 = vsel %vm2140_vm2, %v7635_v38, %v7639_v34  ;;  %v13262_v52 = vsel %vm2140_vm2, %v7639_v34, %v7643_v32 }
 0x458   : > { %13845 = vst [vmem:[#allocation65_spill] sm:$0xff] %v13248_v14  ;;  %v7658_v57 = vrot.slane %v13850_v53, 2  ;;  %v13851_v14 = vshrl.u32 %v13148_v59, 16  ;;  %v13270_v13 = vsel %vm2140_vm2, %v7643_v32, %v7647_v54  ;;  %v7655_v38 = vor.u32 %v7654_v27, %v7653_v7 }
 0x459   : > { %v7651_v0 = vor.u32 %v7650_v43, %v7649_v44  ;;  %v13853_v25 = vshrl.u32 %v13175_v29, 16  ;;  %v4913_v24 = vrot.slane %v12916_v33, 7  ;;  %v11368_v33 = vld [vmem:[#allocation8 + $0xc8] sm:$0xff]  }
 0x45a   : > { %v7661_v1 = vrot.slane %v13851_v14, 1  ;;  %v7659_v43 = vor.u32 %v7658_v57, %v7657_v26  ;;  %v13854_v14 = vshll.u32 %v13175_v29, 16 }
 0x45b   : > { %10083 = vmatmul.mubr.bf16.gmra.mrb[28].mxu1 %v13137_v62  ;;  %v7665_v34 = vrot.slane %v13853_v25, 1  ;;  %v13278_v44 = vsel %vm2140_vm2, %v7647_v54, %v7651_v0  ;;  %v13855_v62 = vshrl.u32 %v12914_v19, 16  ;;  %v13285_v7 = vsel %vm2140_vm2, %v7651_v0, %v7655_v38 }
 0x45c   : > { %10086 = vmatprep.mubr.bf16.mxu1 %v13142_v9  ;;  %v7666_v53 = vrot.slane %v13854_v14, 2  ;;  %v7663_v27 = vor.u32 %v7662_v37, %v7661_v1  ;;  %v13289_v25 = vsel %vm2140_vm2, %v7655_v38, %v7659_v43  ;;  %v13856_v0 = vrot.slane %v12812_v2, 7  ;;  %v11369_v1 = vld [vmem:[#allocation8 + $0xd0] sm:$0xff]   ;;  %v11370_v38 = vld [vmem:[#allocation8 + $0xd8] sm:$0xff]   ;;  %v11372_v2 = vld [vmem:[#allocation8 + $0xe8] sm:$0xff]  }
 0x45d   : > { %v5216_v32 = vrot.slane %v13855_v62, 7  ;;  %v13859_v37 = vld [vmem:[#allocation20_spill] sm:$0xff]  ;;  %v13864_v14 = vld [vmem:[#allocation27_spill] sm:$0xff] }
 0x45e   : > { %v13291_v9 = vor.u32 %v7666_v53, %v7665_v34  ;;  %v13294_v54 = vsel %vm2140_vm2, %v7659_v43, %v7663_v27  ;;  %v4914_v57 = vsel %vm4877_vm7, %v13856_v0, %v4913_v24  ;;  %v13862_v34 = vld [vmem:[#allocation23_spill] sm:$0xff]  ;;  %v13863_v43 = vld [vmem:[#allocation26_spill] sm:$0xff]  ;;  %v13865_v53 = vld [vmem:[#allocation17_spill] sm:$0xff] }
 0x45f   : > { %v5219_v19 = vsel %vm5212_vm8, %v5216_v32, %v12528_v16  ;;  %v11371_v16 = vld [vmem:[#allocation8 + $0xe0] sm:$0xff]   ;;  %v5269_v62 = vshrl.u32 %v13865_v53, 16  ;;  %v5555_v32 = vld [vmem:[#allocation2 + $0x8] sm:$0x80]  ;;  %v13867_v0 = vld [vmem:[#allocation30_spill] sm:$0xff] }
 0x460   : > { %v13298_v26 = vsel %vm2140_vm2, %v7663_v27, %v13291_v9  ;;  %v13866_v24 = vld [vmem:[#allocation28_spill] sm:$0xff] }
 0x461   : > { %v13321_v27 = vrot.slane %v5269_v62, 7 }
 0x463   : > { %10087 = vmatmul.mubr.bf16.gmra.mrb[32].mxu1 %v4914_v57  ;;  %v13868_v57 = vshrl.u32 %v13867_v0, 16 }
 0x464   : > { %10106 = vmatprep.mubr.bf16.mxu1 %v5219_v19  ;;  %v5592_v19 = vshrl.u32 %v5555_v32, 16 }
 0x46b   : > { %10107 = vmatmul.mubr.bf16.vlgmr.msra.gmra.mrb[0].mxu1 %v12655_v60  ;;  %v11373_v60 = vld [vmem:[#allocation8 + $0xf0] sm:$0xff]  }
 0x46c   : > { %10110 = vmatprep.mubr.bf16.mxu1 %v12659_v55  ;;  %10143 = vmatpush3.bf16.msra.mxu1 %v13111_v36  ;;  %v11374_v55 = vld [vmem:[#allocation8 + $0xf8] sm:$0xff]   ;;  %v13857_v36 = vld [vmem:[#allocation18_spill] sm:$0xff] }
 0x46d   : > { %10144 = vmatprep.subr.bf16.mxu1 %v11368_v33 }
 0x470   : > { %10145 = vmatpush3.bf16.msra.mxu1 %v11368_v33  ;;  %v5598_v33 = vrot.slane %v13868_v57, 7  ;;  %v11376_v57 = vld [vmem:[#allocation8 + $0x108] sm:$0xff]  }
 0x471   : > { %10146 = vmatprep.subr.bf16.mxu1 %v11369_v1 }
 0x473   : > { %10111 = vmatmul.mubr.bf16.gmra.mrb[4].mxu1 %v12810_v21  ;;  %v13858_v21 = vld [vmem:[#allocation19_spill] sm:$0xff] }
 0x474   : > { %10114 = vmatprep.mubr.bf16.mxu1 %v12846_v31  ;;  %10147 = vmatpush3.bf16.msra.mxu1 %v11369_v1  ;;  %v11375_v31 = vld [vmem:[#allocation8 + $0x100] sm:$0xff]   ;;  %v13869_v1 = vld [vmem:[#allocation29_spill] sm:$0xff] }
 0x475   : > { %10148 = vmatprep.subr.bf16.mxu1 %v11370_v38 }
 0x478   : > { %10149 = vmatpush3.bf16.msra.mxu1 %v11370_v38  ;;  %v5272_v38 = vshll.u32 %v13865_v53, 16 }
 0x479   : > { %10150 = vmatprep.subr.bf16.mxu1 %v11371_v16 }
 0x47b   : > { %10115 = vmatmul.mubr.bf16.gmra.mrb[8].mxu1 %v12867_v42  ;;  %v13860_v42 = vld [vmem:[#allocation21_spill] sm:$0xff] }
 0x47c   : > { %10118 = vmatprep.mubr.bf16.mxu1 %v12870_v3  ;;  %10151 = vmatpush3.bf16.msra.mxu1 %v11371_v16  ;;  %v13861_v3 = vld [vmem:[#allocation22_spill] sm:$0xff]  ;;  %v5274_v16 = vor.u32 %v5272_v38, %v13321_v27 }
 0x47d   : > { %10152 = vmatprep.subr.bf16.mxu1 %v11372_v2 }
 0x480   : > { %10153 = vmatpush3.bf16.msra.mxu1 %v11372_v2  ;;  %v5594_v2 = vrot.slane %v5592_v19, 7 }
 0x481   : > { %10154 = vmatprep.subr.bf16.mxu1 %v11373_v60 }
 0x483   : > { %10119 = vmatmul.mubr.bf16.gmra.mrb[12].mxu1 %v13857_v36  ;;  %v13871_v36 = vld [vmem:[#allocation25_spill] sm:$0xff] }
 0x484   : > { %10122 = vmatprep.mubr.bf16.mxu1 %v13858_v21  ;;  %10155 = vmatpush3.bf16.msra.mxu1 %v11373_v60  ;;  %v13870_v60 = vshll.u32 %v13867_v0, 16  ;;  %v13333_v21 = vsel %vm5212_vm8, %v13871_v36, %v5274_v16  ;;  %v5622_v16 = vrot.slane %v12969_v61, 7  ;;  %v5630_v36 = vrot.slane %v12975_v22, 7 }
 0x485   : > { %10156 = vmatprep.subr.bf16.mxu1 %v11374_v55  ;;  %v5638_v61 = vrot.slane %v12985_v40, 7  ;;  %v5646_v22 = vrot.slane %v12993_v47, 7  ;;  %v5654_v40 = vrot.slane %v13003_v4, 7  ;;  %v5662_v47 = vrot.slane %v13009_v41, 7 }
 0x486   : > { %v5670_v4 = vrot.slane %v13045_v20, 7  ;;  %v5678_v41 = vrot.slane %v13071_v63, 7 }
 0x488   : > { %10157 = vmatpush3.bf16.msra.mxu1 %v11374_v55  ;;  %v5601_v55 = vor.u32 %v13870_v60, %v5598_v33 }
 0x489   : > { %10194 = vmatprep.subr.bf16.mxu1 %v11375_v31 }
 0x48b   : > { %10123 = vmatmul.mubr.bf16.gmra.mrb[16].mxu1 %v13859_v37  ;;  %v13872_v37 = vld [vmem:[#allocation31_spill] sm:$0xff] }
 0x48c   : > { %10126 = vmatprep.mubr.bf16.mxu1 %v13860_v42  ;;  %v13873_v42 = vshrl.u32 %v13872_v37, 16  ;;  %v13874_v62 = vshll.u32 %v13872_v37, 16 }
 0x493   : > { %10127 = vmatmul.mubr.bf16.gmra.mrb[20].mxu1 %v13861_v3  ;;  %v5606_v3 = vrot.slane %v13873_v42, 7 }
 0x494   : > { %10130 = vmatprep.mubr.bf16.mxu1 %v13862_v34  ;;  %v5602_v34 = vsel %vm5212_vm8, %v5594_v2, %v5601_v55  ;;  %v5625_v2 = vor.u32 %v12972_v49, %v5622_v16  ;;  %v5633_v55 = vor.u32 %v12982_v39, %v5630_v36  ;;  %v5641_v49 = vor.u32 %v12990_v10, %v5638_v61 }
 0x495   : > { %v5609_v32 = vor.u32 %v13874_v62, %v5606_v3  ;;  %v5649_v39 = vor.u32 %v13000_v56, %v5646_v22  ;;  %v11381_v62 = vld [vmem:[#allocation8 + $0x130] sm:$0xff]   ;;  %v5657_v10 = vor.u32 %v13006_v46, %v5654_v40  ;;  %v5665_v56 = vor.u32 %v13012_v51, %v5662_v47 }
 0x496   : > { %v5634_v42 = vsel %vm5212_vm8, %v5622_v16, %v5633_v55  ;;  %v5673_v46 = vor.u32 %v13017_v18, %v5670_v4  ;;  %v5681_v51 = vor.u32 %v13020_v11, %v5678_v41  ;;  %v13876_v11 = vld [vmem:[#allocation16_spill] sm:$0xff] }
 0x497   : > { %v5610_v38 = vsel %vm5212_vm8, %v5598_v33, %v5609_v32  ;;  %v11382_v32 = vld [vmem:[#allocation8 + $0x138] sm:$0xff]  }
 0x498   : > { %v5674_v16 = vsel %vm5212_vm8, %v5662_v47, %v5673_v46  ;;  %v5682_v20 = vsel %vm5212_vm8, %v5670_v4, %v5681_v51  ;;  %v11417_v47 = vld [vmem:[#allocation2 + $0x78] sm:$0xff]  ;;  %v11393_v4 = vld [vmem:[#allocation8 + $0x190] sm:$0xff]   ;;  %v11396_v46 = vld [vmem:[#allocation8 + $0x1a8] sm:$0xff]  }
 0x499   : > { %v13891_v51 = vld [vmem:[#allocation46_spill] sm:$0xff] }
 0x49b   : > { %10131 = vmatmul.mubr.bf16.gmra.mrb[24].mxu1 %v13863_v43  ;;  %v5614_v43 = vrot.slane %v12961_v30, 7  ;;  %v11377_v30 = vld [vmem:[#allocation8 + $0x110] sm:$0xff]  }
 0x49c   : > { %10134 = vmatprep.mubr.bf16.mxu1 %v13864_v14 }
 0x49d   : > { %v5617_v19 = vor.u32 %v12966_v45, %v5614_v43  ;;  %v11378_v45 = vld [vmem:[#allocation8 + $0x118] sm:$0xff]   ;;  %v5626_v33 = vsel %vm5212_vm8, %v5614_v43, %v5625_v2  ;;  %v5650_v43 = vsel %vm5212_vm8, %v5638_v61, %v5649_v39  ;;  %v5732_v2 = vshrl.u32 %v13876_v11, 16  ;;  %v13879_v61 = vld [vmem:[#allocation34_spill] sm:$0xff] }
 0x49e   : > { %v13883_v39 = vld [vmem:[#allocation38_spill] sm:$0xff] }
 0x49f   : > { %v5618_v60 = vsel %vm5212_vm8, %v5606_v3, %v5617_v19  ;;  %v11380_v3 = vld [vmem:[#allocation8 + $0x128] sm:$0xff]   ;;  %v5658_v19 = vsel %vm5212_vm8, %v5646_v22, %v5657_v10  ;;  %v11389_v22 = vld [vmem:[#allocation8 + $0x170] sm:$0xff]  }
 0x4a0   : > { %v11419_v10 = vld [vmem:[#allocation2 + $0x88] sm:$0xff] }
 0x4a3   : > { %10135 = vmatmul.mubr.bf16.gmra.mrb[28].mxu1 %v13866_v24 }
 0x4a4   : > { %10138 = vmatprep.mubr.bf16.mxu1 %v13869_v1 }
 0x4ab   : > { %10139 = vmatmul.mubr.bf16.gmra.mrb[32].mxu1 %v13333_v21 }
 0x4ac   : > { %10158 = vmatprep.mubr.bf16.mxu1 %v5602_v34  ;;  %v5642_v34 = vsel %vm5212_vm8, %v5630_v36, %v5641_v49  ;;  %v13882_v49 = vld [vmem:[#allocation37_spill] sm:$0xff] }
 0x4b3   : > { %10159 = vmatmul.mubr.bf16.vlgmr.msra.gmra.mrb[0].mxu1 %v5610_v38  ;;  %v11383_v38 = vld [vmem:[#allocation8 + $0x140] sm:$0xff]  }
 0x4b4   : > { %10162 = vmatprep.mubr.bf16.mxu1 %v5618_v60  ;;  %10195 = vmatpush3.bf16.msra.mxu1 %v11375_v31  ;;  %v11379_v31 = vld [vmem:[#allocation8 + $0x120] sm:$0xff]   ;;  %v5686_v60 = vrot.slane %v13074_v5, 7  ;;  %v5734_v5 = vrot.slane %v5732_v2, 7 }
 0x4b5   : > { %10196 = vmatprep.subr.bf16.mxu1 %v11376_v57  ;;  %v13897_v2 = vld [vmem:[#allocation52_spill] sm:$0xff] }
 0x4b6   : > { %v5689_v63 = vor.u32 %v13031_v48, %v5686_v60  ;;  %v5735_v48 = vshll.u32 %v13876_v11, 16 }
 0x4b8   : > { %10197 = vmatpush3.bf16.msra.mxu1 %v11376_v57  ;;  %v5666_v57 = vsel %vm5212_vm8, %v5654_v40, %v5665_v56  ;;  %v5690_v36 = vsel %vm5212_vm8, %v5678_v41, %v5689_v63  ;;  %v5737_v55 = vor.u32 %v5735_v48, %v5734_v5  ;;  %v13885_v40 = vld [vmem:[#allocation40_spill] sm:$0xff]  ;;  %v13886_v56 = vld [vmem:[#allocation41_spill] sm:$0xff]  ;;  %v13898_v5 = vshrl.u32 %v13099_v35, 16 }
 0x4b9   : > { %10198 = vmatprep.subr.bf16.mxu1 %v11377_v30  ;;  %v13889_v41 = vld [vmem:[#allocation44_spill] sm:$0xff] }
 0x4ba   : > { %v13893_v63 = vld [vmem:[#allocation48_spill] sm:$0xff]  ;;  %v6434_v48 = vor.u32 %v13898_v5, %v13897_v2 }
 0x4bb   : > { %10163 = vmatmul.mubr.bf16.gmra.mrb[4].mxu1 %v5626_v33  ;;  %v11384_v33 = vld [vmem:[#allocation8 + $0x148] sm:$0xff]   ;;  %v11420_v2 = vld [vmem:[#allocation2 + $0x20] sm:$0xff] }
 0x4bc   : > { %10166 = vmatprep.mubr.bf16.mxu1 %v5634_v42  ;;  %10199 = vmatpush3.bf16.msra.mxu1 %v11377_v30  ;;  %v13875_v30 = vld [vmem:[#allocation24_spill] sm:$0xff]  ;;  %v13880_v42 = vld [vmem:[#allocation35_spill] sm:$0xff]  ;;  %v7260_v5 = vrot.slane %v11420_v2, 1  ;;  %v13919_v2 = vrot.slane %v13148_v59, 1 }
 0x4bd   : > { %10200 = vmatprep.subr.bf16.mxu1 %v11378_v45  ;;  %v5698_v18 = vsel %vm5212_vm8, %v5686_v60, %v13875_v30  ;;  %v11397_v60 = vld [vmem:[#allocation8 + $0x1b0] sm:$0xff]   ;;  %v11399_v30 = vld [vmem:[#allocation8 + $0x1c0] sm:$0xff]  }
 0x4c0   : > { %10201 = vmatpush3.bf16.msra.mxu1 %v11378_v45  ;;  %v5738_v45 = vsel %vm5212_vm8, %v13321_v27, %v5737_v55  ;;  %v11387_v27 = vld [vmem:[#allocation8 + $0x160] sm:$0xff]   ;;  %v13899_v55 = vshll.u32 %v13116_v50, 16 }
 0x4c1   : > { %10202 = vmatprep.subr.bf16.mxu1 %v11379_v31 }
 0x4c3   : > { %10167 = vmatmul.mubr.bf16.gmra.mrb[8].mxu1 %v5642_v34  ;;  %v13884_v34 = vld [vmem:[#allocation39_spill] sm:$0xff] }
 0x4c4   : > { %10170 = vmatprep.mubr.bf16.mxu1 %v5650_v43  ;;  %10203 = vmatpush3.bf16.msra.mxu1 %v11379_v31  ;;  %v11390_v31 = vld [vmem:[#allocation8 + $0x178] sm:$0xff]   ;;  %v11416_v43 = vld [vmem:[#allocation2 + $0x70] sm:$0xff] }
 0x4c5   : > { %10204 = vmatprep.subr.bf16.mxu1 %v11380_v3 }
 0x4c8   : > { %10205 = vmatpush3.bf16.msra.mxu1 %v11380_v3  ;;  %v11391_v3 = vld [vmem:[#allocation8 + $0x180] sm:$0xff]  }
 0x4c9   : > { %10206 = vmatprep.subr.bf16.mxu1 %v11381_v62 }
 0x4cb   : > { %10171 = vmatmul.mubr.bf16.gmra.mrb[12].mxu1 %v5658_v19  ;;  %v13888_v19 = vld [vmem:[#allocation43_spill] sm:$0xff] }
 0x4cc   : > { %10174 = vmatprep.mubr.bf16.mxu1 %v5666_v57  ;;  %10207 = vmatpush3.bf16.msra.mxu1 %v11381_v62  ;;  %v11418_v62 = vld [vmem:[#allocation2 + $0x80] sm:$0xff]  ;;  %v11394_v57 = vld [vmem:[#allocation8 + $0x198] sm:$0xff]  }
 0x4cd   : > { %10208 = vmatprep.subr.bf16.mxu1 %v11382_v32 }
 0x4d0   : > { %10209 = vmatpush3.bf16.msra.mxu1 %v11382_v32  ;;  %v11392_v32 = vld [vmem:[#allocation8 + $0x188] sm:$0xff]  }
 0x4d1   : > { %10246 = vmatprep.subr.bf16.mxu1 %v11383_v38 }
 0x4d3   : > { %10175 = vmatmul.mubr.bf16.gmra.mrb[16].mxu1 %v5674_v16  ;;  %v13892_v16 = vld [vmem:[#allocation47_spill] sm:$0xff] }
 0x4d4   : > { %10178 = vmatprep.mubr.bf16.mxu1 %v5682_v20  ;;  %v11398_v20 = vld [vmem:[#allocation8 + $0x1b8] sm:$0xff]  }
 0x4db   : > { %10179 = vmatmul.mubr.bf16.gmra.mrb[20].mxu1 %v5690_v36  ;;  %v13894_v36 = vld [vmem:[#allocation49_spill] sm:$0xff] }
 0x4dc   : > { %10182 = vmatprep.mubr.bf16.mxu1 %v5698_v18  ;;  %v13895_v18 = vld [vmem:[#allocation50_spill] sm:$0xff] }
 0x4e3   : > { %10183 = vmatmul.mubr.bf16.gmra.mrb[24].mxu1 %v13864_v14  ;;  %v13877_v14 = vld [vmem:[#allocation32_spill] sm:$0xff] }
 0x4e4   : > { %10186 = vmatprep.mubr.bf16.mxu1 %v13866_v24  ;;  %v11385_v24 = vld [vmem:[#allocation8 + $0x150] sm:$0xff]  }
 0x4eb   : > { %10187 = vmatmul.mubr.bf16.gmra.mrb[28].mxu1 %v13869_v1  ;;  %v11386_v1 = vld [vmem:[#allocation8 + $0x158] sm:$0xff]  }
 0x4ec   : > { %10190 = vmatprep.mubr.bf16.mxu1 %v13333_v21  ;;  %v13878_v21 = vld [vmem:[#allocation33_spill] sm:$0xff] }
 0x4f3   : > { %10191 = vmatmul.mubr.bf16.gmra.mrb[32].mxu1 %v5738_v45  ;;  %v6438_v45 = vrot.slane %v13899_v55, 1  ;;  %v13912_v55 = vld [vmem:[#allocation54_spill] sm:$0xff] }
 0x4f4   : > { %10210 = vmatprep.mubr.bf16.mxu1 %v13867_v0  ;;  %v11388_v0 = vld [vmem:[#allocation8 + $0x168] sm:$0xff]  }
 0x4fb   : > { %10211 = vmatmul.mubr.bf16.vlgmr.msra.gmra.mrb[0].mxu1 %v13872_v37  ;;  %v13881_v37 = vld [vmem:[#allocation36_spill] sm:$0xff] }
 0x4fc   : > { %10214 = vmatprep.mubr.bf16.mxu1 %v13877_v14  ;;  %10247 = vmatpush3.bf16.msra.mxu1 %v11383_v38  ;;  %v13890_v38 = vld [vmem:[#allocation45_spill] sm:$0xff]  ;;  %v6439_v14 = vsel %vm890_vm1, %v6434_v48, %v6438_v45 }
 0x4fd   : > { %10248 = vmatprep.subr.bf16.mxu1 %v11384_v33 }
 0x500   : > { %10249 = vmatpush3.bf16.msra.mxu1 %v11384_v33  ;;  %v13900_v33 = vld [vmem:[#allocation53_spill] sm:$0xff] }
 0x501   : > { %10250 = vmatprep.subr.bf16.mxu1 %v11385_v24 }
 0x503   : > { %10215 = vmatmul.mubr.bf16.gmra.mrb[4].mxu1 %v13878_v21  ;;  %v13902_v21 = vshrl.u32 %v13118_v58, 16 }
 0x504   : > { %10218 = vmatprep.mubr.bf16.mxu1 %v13879_v61  ;;  %10251 = vmatpush3.bf16.msra.mxu1 %v11385_v24  ;;  %v13901_v24 = vshll.u32 %v13118_v58, 16  ;;  %v6314_v58 = vld [vmem:[#allocation2 + $0xa0] sm:$0x1] }
 0x505   : > { %10252 = vmatprep.subr.bf16.mxu1 %v11386_v1 }
 0x508   : > { %10253 = vmatpush3.bf16.msra.mxu1 %v11386_v1  ;;  %v6446_v1 = vrot.slane %v13901_v24, 1 }
 0x509   : > { %10254 = vmatprep.subr.bf16.mxu1 %v11387_v27 }
 0x50a   : > { %v6450_v61 = vor.u32 %v13902_v21, %v6446_v1 }
 0x50b   : > { %10219 = vmatmul.mubr.bf16.gmra.mrb[8].mxu1 %v13880_v42  ;;  %v13904_v42 = vshll.u32 %v13126_v12, 16 }
 0x50c   : > { %10222 = vmatprep.mubr.bf16.mxu1 %v13881_v37  ;;  %10255 = vmatpush3.bf16.msra.mxu1 %v11387_v27  ;;  %v13903_v27 = vshrl.u32 %v13116_v50, 16 }
 0x50d   : > { %10256 = vmatprep.subr.bf16.mxu1 %v11388_v0  ;;  %v6454_v37 = vrot.slane %v13904_v42, 1  ;;  %v11409_v42 = vld [vmem:[#allocation8 + $0x210] sm:$0xff]  }
 0x510   : > { %10257 = vmatpush3.bf16.msra.mxu1 %v11388_v0  ;;  %v6442_v0 = vor.u32 %v13903_v27, %v6438_v45  ;;  %v7259_v45 = vrot.slane %v13912_v55, 1  ;;  %v13920_v55 = vld [vmem:[#allocation60_spill] sm:$0xff] }
 0x511   : > { %10258 = vmatprep.subr.bf16.mxu1 %v11389_v22 }
 0x513   : > { %10223 = vmatmul.mubr.bf16.gmra.mrb[12].mxu1 %v13882_v49  ;;  %v13905_v49 = vshll.u32 %v13128_v28, 16 }
 0x514   : > { %10226 = vmatprep.mubr.bf16.mxu1 %v13883_v39  ;;  %10259 = vmatpush3.bf16.msra.mxu1 %v11389_v22  ;;  %v6447_v22 = vsel %vm890_vm1, %v6442_v0, %v6446_v1  ;;  %v11422_v1 = vld [vmem:[#allocation2 + $0x30] sm:$0xff] }
 0x515   : > { %10260 = vmatprep.subr.bf16.mxu1 %v11390_v31  ;;  %v6462_v39 = vrot.slane %v13905_v49, 1  ;;  %v7264_v21 = vrot.slane %v11422_v1, 1  ;;  %v7958_v1 = vld [vmem:[%s11873_s8 + $0xc] sm:$0xf] }
 0x518   : > { %10261 = vmatpush3.bf16.msra.mxu1 %v11390_v31  ;;  %v6455_v31 = vsel %vm890_vm1, %v6450_v61, %v6454_v37  ;;  %v11408_v61 = vld [vmem:[#allocation8 + $0x208] sm:$0xff]  }
 0x519   : > { %10298 = vmatprep.subr.bf16.mxu1 %v11391_v3 }
 0x51b   : > { %10227 = vmatmul.mubr.bf16.gmra.mrb[16].mxu1 %v12995_v17  ;;  %v13887_v17 = vld [vmem:[#allocation42_spill] sm:$0xff] }
 0x51c   : > { %10230 = vmatprep.mubr.bf16.mxu1 %v13884_v34 }
 0x523   : > { %10231 = vmatmul.mubr.bf16.gmra.mrb[20].mxu1 %v13885_v40  ;;  %v13907_v40 = vshrl.u32 %v13126_v12, 16  ;;  %v11400_v12 = vld [vmem:[#allocation8 + $0x1c8] sm:$0xff]  }
 0x524   : > { %10234 = vmatprep.mubr.bf16.mxu1 %v11416_v43  ;;  %v13908_v43 = vshll.u32 %v13148_v59, 16 }
 0x525   : > { %v6458_v50 = vor.u32 %v13907_v40, %v6454_v37  ;;  %v11423_v37 = vld [vmem:[#allocation2 + $0x38] sm:$0xff]  ;;  %v11425_v40 = vld [vmem:[#allocation2 + $0x48] sm:$0xff] }
 0x52b   : > { %10235 = vmatmul.mubr.bf16.gmra.mrb[24].mxu1 %v11417_v47  ;;  %v6470_v47 = vrot.slane %v13908_v43, 1  ;;  %v11426_v43 = vld [vmem:[#allocation2 + $0x50] sm:$0xff] }
 0x52c   : > { %10238 = vmatprep.mubr.bf16.mxu1 %v11418_v62  ;;  %v6463_v62 = vsel %vm890_vm1, %v6458_v50, %v6462_v39  ;;  %v7270_v50 = vrot.slane %v11425_v40, 1 }
 0x533   : > { %10239 = vmatmul.mubr.bf16.gmra.mrb[28].mxu1 %v11419_v10  ;;  %v6476_v10 = vshll.u32 %v6314_v58, 16  ;;  %v11411_v58 = vld [vmem:[#allocation8 + $0x220] sm:$0xff]  }
 0x534   : > { %10242 = vmatprep.mubr.bf16.mxu1 %v13865_v53  ;;  %v11395_v53 = vld [vmem:[#allocation8 + $0x1a0] sm:$0xff]  }
 0x53b   : > { %10243 = vmatmul.mubr.bf16.gmra.mrb[32].mxu1 %v13876_v11  ;;  %v13896_v11 = vld [vmem:[#allocation51_spill] sm:$0xff] }
 0x53c   : > { %10262 = vmatprep.mubr.bf16.mxu1 %v13886_v56 }
 0x543   : > { %10263 = vmatmul.mubr.bf16.vlgmr.msra.gmra.mrb[0].mxu1 %v13887_v17 }
 0x544   : > { %10266 = vmatprep.mubr.bf16.mxu1 %v13888_v19  ;;  %10299 = vmatpush3.bf16.msra.mxu1 %v11391_v3  ;;  %v13906_v3 = vshrl.u32 %v13128_v28, 16 }
 0x545   : > { %10300 = vmatprep.subr.bf16.mxu1 %v11392_v32 }
 0x546   : > { %v6466_v34 = vor.u32 %v13906_v3, %v6462_v39  ;;  %v11410_v39 = vld [vmem:[#allocation8 + $0x218] sm:$0xff]  }
 0x548   : > { %10301 = vmatpush3.bf16.msra.mxu1 %v11392_v32  ;;  %v6471_v56 = vsel %vm890_vm1, %v6466_v34, %v6470_v47  ;;  %v13909_v32 = vshrl.u32 %v13148_v59, 16  ;;  %v13923_v59 = vld [vmem:[#allocation63_spill] sm:$0xff] }
 0x549   : > { %10302 = vmatprep.subr.bf16.mxu1 %v11393_v4 }
 0x54b   : > { %10267 = vmatmul.mubr.bf16.gmra.mrb[4].mxu1 %v13889_v41 }
 0x54c   : > { %10270 = vmatprep.mubr.bf16.mxu1 %v13890_v38  ;;  %10303 = vmatpush3.bf16.msra.mxu1 %v11393_v4  ;;  %v6474_v4 = vor.u32 %v13909_v32, %v6470_v47  ;;  %v7272_v47 = vrot.slane %v11426_v43, 1  ;;  %v11413_v32 = vld [vmem:[#allocation8 + $0x230] sm:$0xff]  }
 0x54d   : > { %10304 = vmatprep.subr.bf16.mxu1 %v11394_v57 }
 0x550   : > { %10305 = vmatpush3.bf16.msra.mxu1 %v11394_v57  ;;  %v6478_v57 = vrot.slane %v6476_v10, 1 }
 0x551   : > { %10306 = vmatprep.subr.bf16.mxu1 %v11395_v53 }
 0x552   : > { %v6479_v28 = vsel %vm890_vm1, %v6474_v4, %v6478_v57 }
 0x553   : > { %10271 = vmatmul.mubr.bf16.gmra.mrb[8].mxu1 %v13891_v51 }
 0x554   : > { %10274 = vmatprep.mubr.bf16.mxu1 %v13892_v16  ;;  %10307 = vmatpush3.bf16.msra.mxu1 %v11395_v53  ;;  %v11401_v53 = vld [vmem:[#allocation8 + $0x1d0] sm:$0xff]  }
 0x555   : > { %10308 = vmatprep.subr.bf16.mxu1 %v11396_v46 }
 0x558   : > { %10309 = vmatpush3.bf16.msra.mxu1 %v11396_v46  ;;  %v11402_v46 = vld [vmem:[#allocation8 + $0x1d8] sm:$0xff]  }
 0x559   : > { %10310 = vmatprep.subr.bf16.mxu1 %v11397_v60 }
 0x55b   : > { %10275 = vmatmul.mubr.bf16.gmra.mrb[12].mxu1 %v13893_v63 }
 0x55c   : > { %10278 = vmatprep.mubr.bf16.mxu1 %v13894_v36  ;;  %10311 = vmatpush3.bf16.msra.mxu1 %v11397_v60  ;;  %v11403_v60 = vld [vmem:[#allocation8 + $0x1e0] sm:$0xff]  }
 0x55d   : > { %10312 = vmatprep.subr.bf16.mxu1 %v11398_v20 }
 0x560   : > { %10313 = vmatpush3.bf16.msra.mxu1 %v11398_v20 }
 0x561   : > { %10350 = vmatprep.subr.bf16.mxu1 %v11399_v30 }
 0x563   : > { %10279 = vmatmul.mubr.bf16.gmra.mrb[16].mxu1 %v13895_v18 }
 0x564   : > { %10282 = vmatprep.mubr.bf16.mxu1 %v13896_v11 }
 0x56b   : > { %10283 = vmatmul.mubr.bf16.gmra.mrb[20].mxu1 %v13900_v33 }
 0x56c   : > { %10286 = vmatprep.mubr.bf16.mxu1 %v6439_v14 }
 0x573   : > { %10287 = vmatmul.mubr.bf16.gmra.mrb[24].mxu1 %v6447_v22 }
 0x574   : > { %10290 = vmatprep.mubr.bf16.mxu1 %v6455_v31 }
 0x57b   : > { %10291 = vmatmul.mubr.bf16.gmra.mrb[28].mxu1 %v6463_v62 }
 0x57c   : > { %10294 = vmatprep.mubr.bf16.mxu1 %v6471_v56 }
 0x583   : > { %10295 = vmatmul.mubr.bf16.gmra.mrb[32].mxu1 %v6479_v28  ;;  %v11428_v28 = vld [vmem:[#allocation2 + $0x60] sm:$0xff] }
 0x584   : > { %10314 = vmatprep.mubr.bf16.mxu1 %v13887_v17  ;;  %v11404_v17 = vld [vmem:[#allocation8 + $0x1e8] sm:$0xff]  }
 0x58b   : > { %10315 = vmatmul.mubr.bf16.vlgmr.msra.gmra.mrb[0].mxu1 %v13888_v19  ;;  %v11405_v19 = vld [vmem:[#allocation8 + $0x1f0] sm:$0xff]  }
 0x58c   : > { %10318 = vmatprep.mubr.bf16.mxu1 %v13889_v41  ;;  %10351 = vmatpush3.bf16.msra.mxu1 %v11399_v30  ;;  %v11406_v41 = vld [vmem:[#allocation8 + $0x1f8] sm:$0xff]   ;;  %v13911_v30 = vshrl.u32 %v13175_v29, 16 }
 0x58d   : > { %10352 = vmatprep.subr.bf16.mxu1 %v11400_v12 }
 0x590   : > { %10353 = vmatpush3.bf16.msra.mxu1 %v11400_v12  ;;  %v7276_v12 = vrot.slane %v11428_v28, 1 }
 0x591   : > { %10354 = vmatprep.subr.bf16.mxu1 %v11401_v53 }
 0x593   : > { %10319 = vmatmul.mubr.bf16.gmra.mrb[4].mxu1 %v13890_v38  ;;  %v11407_v38 = vld [vmem:[#allocation8 + $0x200] sm:$0xff]  }
 0x594   : > { %10322 = vmatprep.mubr.bf16.mxu1 %v13891_v51  ;;  %10355 = vmatpush3.bf16.msra.mxu1 %v11401_v53  ;;  %v13448_v51 = vld [vmem:[#allocation2 + $0xa8] sm:$0x1]  ;;  %v11414_v53 = vld [vmem:[#allocation8 + $0x238] sm:$0xff]  }
 0x595   : > { %10356 = vmatprep.subr.bf16.mxu1 %v11402_v46 }
 0x598   : > { %10357 = vmatpush3.bf16.msra.mxu1 %v11402_v46 }
 0x599   : > { %10358 = vmatprep.subr.bf16.mxu1 %v11403_v60 }
 0x59b   : > { %10323 = vmatmul.mubr.bf16.gmra.mrb[8].mxu1 %v13892_v16  ;;  %v13910_v16 = vshll.u32 %v13175_v29, 16 }
 0x59c   : > { %10326 = vmatprep.mubr.bf16.mxu1 %v13893_v63  ;;  %10359 = vmatpush3.bf16.msra.mxu1 %v11403_v60  ;;  %v6939_v63 = vshll.u32 %v13448_v51, 16 }
 0x59d   : > { %10360 = vmatprep.subr.bf16.mxu1 %v11404_v17  ;;  %v6933_v20 = vrot.slane %v13910_v16, 1 }
 0x5a0   : > { %10361 = vmatpush3.bf16.msra.mxu1 %v11404_v17  ;;  %v11429_v17 = vld [vmem:[#allocation2 + $0x68] sm:$0xff] }
 0x5a1   : > { %10362 = vmatprep.subr.bf16.mxu1 %v11405_v19 }
 0x5a3   : > { %10327 = vmatmul.mubr.bf16.gmra.mrb[12].mxu1 %v13894_v36  ;;  %v6934_v36 = vsel %vm890_vm1, %v6474_v4, %v6933_v20  ;;  %v11427_v4 = vld [vmem:[#allocation2 + $0x58] sm:$0xff] }
 0x5a4   : > { %10330 = vmatprep.mubr.bf16.mxu1 %v13895_v18  ;;  %10363 = vmatpush3.bf16.msra.mxu1 %v11405_v19  ;;  %v6937_v18 = vor.u32 %v13911_v30, %v6933_v20  ;;  %v7274_v57 = vrot.slane %v11427_v4, 1  ;;  %v7278_v19 = vrot.slane %v11429_v17, 1  ;;  %v13914_v20 = vld [vmem:[#allocation55_spill] sm:$0xff]  ;;  %v13917_v30 = vld [vmem:[#allocation58_spill] sm:$0xff] }
 0x5a5   : > { %10364 = vmatprep.subr.bf16.mxu1 %v11406_v41 }
 0x5a6   : > { %v7275_v46 = vsel %vm1339_vm0, %v7272_v47, %v7274_v57  ;;  %v7277_v60 = vsel %vm1339_vm0, %v7274_v57, %v7276_v12 }
 0x5a8   : > { %10365 = vmatpush3.bf16.msra.mxu1 %v11406_v41  ;;  %v7279_v41 = vsel %vm1339_vm0, %v7276_v12, %v7278_v19 }
 0x5a9   : > { %10402 = vmatprep.subr.bf16.mxu1 %v11407_v38 }
 0x5ab   : > { %10331 = vmatmul.mubr.bf16.gmra.mrb[16].mxu1 %v13896_v11  ;;  %v6941_v11 = vrot.slane %v6939_v63, 1  ;;  %v13915_v63 = vld [vmem:[#allocation56_spill] sm:$0xff] }
 0x5ac   : > { %10334 = vmatprep.mubr.bf16.mxu1 %v13900_v33  ;;  %v7261_v33 = vsel %vm1339_vm0, %v7259_v45, %v7260_v5  ;;  %v13922_v45 = vld [vmem:[#allocation62_spill] sm:$0xff] }
 0x5ad   : > { %v6942_v48 = vsel %vm890_vm1, %v6937_v18, %v6941_v11  ;;  %v7292_v18 = vrot.slane %v13175_v29, 1  ;;  %v13918_v11 = vld [vmem:[#allocation59_spill] sm:$0xff]  ;;  %v13921_v29 = vld [vmem:[#allocation61_spill] sm:$0xff] }
 0x5b3   : > { %10335 = vmatmul.mubr.bf16.gmra.mrb[20].mxu1 %v6439_v14  ;;  %v11421_v14 = vld [vmem:[#allocation2 + $0x28] sm:$0xff] }
 0x5b4   : > { %10338 = vmatprep.mubr.bf16.mxu1 %v6447_v22  ;;  %v7262_v24 = vrot.slane %v11421_v14, 1  ;;  %v7266_v22 = vrot.slane %v11423_v37, 1  ;;  %v9018_v37 = vld [vmem:[%s11873_s8 + $0x20] sm:$0xff]  }
 0x5b6   : > { %v7263_v27 = vsel %vm1339_vm0, %v7260_v5, %v7262_v24  ;;  %v7265_v0 = vsel %vm1339_vm0, %v7262_v24, %v7264_v21  ;;  %v7267_v3 = vsel %vm1339_vm0, %v7264_v21, %v7266_v22  ;;  %v7293_v5 = vsel %vm1339_vm0, %v13919_v2, %v7292_v18 }
 0x5bb   : > { %10339 = vmatmul.mubr.bf16.gmra.mrb[24].mxu1 %v6455_v31  ;;  %v11424_v31 = vld [vmem:[#allocation2 + $0x40] sm:$0xff] }
 0x5bc   : > { %10342 = vmatprep.mubr.bf16.mxu1 %v6463_v62  ;;  %v7268_v49 = vrot.slane %v11424_v31, 1  ;;  %v11412_v62 = vld [vmem:[#allocation8 + $0x228] sm:$0xff]  }
 0x5be   : > { %v7269_v34 = vsel %vm1339_vm0, %v7266_v22, %v7268_v49  ;;  %v7271_v10 = vsel %vm1339_vm0, %v7268_v49, %v7270_v50  ;;  %v8868_v49 = vunpack.c.l.bf16 %v9018_v37 }
 0x5c3   : > { %10343 = vmatmul.mubr.bf16.gmra.mrb[28].mxu1 %v6471_v56  ;;  %v7273_v56 = vsel %vm1339_vm0, %v7270_v50, %v7272_v47 }
 0x5c4   : > { %10346 = vmatprep.mubr.bf16.mxu1 %v6934_v36  ;;  %v13916_v36 = vld [vmem:[#allocation57_spill] sm:$0xff] }
 0x5cb   : > { %10347 = vmatmul.mubr.bf16.gmra.mrb[32].mxu1 %v6942_v48 }
 0x5cc   : > { %10366 = vmatprep.mubr.bf16.mxu1 %v7261_v33  ;;  %v13924_v33 = vld [vmem:[#allocation64_spill] sm:$0xff] }
 0x5d3   : > { %10367 = vmatmul.mubr.bf16.vlgmr.msra.gmra.mrb[0].mxu1 %v7263_v27  ;;  %v7995_v27 = vunpack.c.l.bf16 %v7958_v1 }
 0x5d4   : > { %10370 = vmatprep.mubr.bf16.mxu1 %v7265_v0  ;;  %10403 = vmatpush3.bf16.msra.mxu1 %v11407_v38  ;;  %v13913_v38 = vrot.slane %v13099_v35, 1  ;;  %v7294_v35 = vrot.slane %v13448_v51, 1  ;;  %v13925_v51 = vld [vmem:[#allocation65_spill] sm:$0xff] }
 0x5d5   : > { %10404 = vmatprep.subr.bf16.mxu1 %v11408_v61 }
 0x5d6   : > { %v7281_v16 = vsel %vm1339_vm0, %v7278_v19, %v13913_v38  ;;  %v7295_v48 = vsel %vm1339_vm0, %v7292_v18, %v7294_v35  ;;  %v9020_v19 = vld [vmem:[%s11873_s8 + $0x30] sm:$0xff]  }
 0x5d8   : > { %10405 = vmatpush3.bf16.msra.mxu1 %v11408_v61 }
 0x5d9   : > { %10406 = vmatprep.subr.bf16.mxu1 %v11409_v42 }
 0x5db   : > { %10371 = vmatmul.mubr.bf16.gmra.mrb[4].mxu1 %v7267_v3  ;;  %v9019_v3 = vld [vmem:[%s11873_s8 + $0x28] sm:$0xff]  }
 0x5dc   : > { %10374 = vmatprep.mubr.bf16.mxu1 %v7269_v34  ;;  %10407 = vmatpush3.bf16.msra.mxu1 %v11409_v42  ;;  %v8872_v4 = vunpack.c.l.bf16 %v9019_v3 }
 0x5dd   : > { %10408 = vmatprep.subr.bf16.mxu1 %v11410_v39 }
 0x5e0   : > { %10409 = vmatpush3.bf16.msra.mxu1 %v11410_v39  ;;  %v8869_v39 = vunpack.c.h.bf16 %v9018_v37 }
 0x5e1   : > { %10410 = vmatprep.subr.bf16.mxu1 %v11411_v58 }
 0x5e3   : > { %10375 = vmatmul.mubr.bf16.gmra.mrb[8].mxu1 %v7271_v10 }
 0x5e4   : > { %10378 = vmatprep.mubr.bf16.mxu1 %v7273_v56  ;;  %10411 = vmatpush3.bf16.msra.mxu1 %v11411_v58 }
 0x5e5   : > { %10412 = vmatprep.subr.bf16.mxu1 %v11412_v62 }
 0x5e8   : > { %10413 = vmatpush3.bf16.msra.mxu1 %v11412_v62 }
 0x5e9   : > { %10414 = vmatprep.subr.bf16.mxu1 %v11413_v32 }
 0x5eb   : > { %10379 = vmatmul.mubr.bf16.gmra.mrb[12].mxu1 %v7275_v46  ;;  %v8082_v46 = vrot.slane %v8869_v39, 3 }
 0x5ec   : > { %10382 = vmatprep.mubr.bf16.mxu1 %v7277_v60  ;;  %10415 = vmatpush3.bf16.msra.mxu1 %v11413_v32 }
 0x5ed   : > { %10416 = vmatprep.subr.bf16.mxu1 %v11414_v53 }
 0x5f0   : > { %10417 = vmatpush3.bf16.msra.mxu1 %v11414_v53  ;;  %v8080_v53 = vrot.slane %v8868_v49, 3 }
 0x5f2   : > { %v8083_v18 = vsel %vm3883_vm5, %v8080_v53, %v8082_v46 }
 0x5f3   : > { %10383 = vmatmul.mubr.bf16.gmra.mrb[16].mxu1 %v7279_v41 }
 0x5f4   : > { %10386 = vmatprep.mubr.bf16.mxu1 %v7281_v16 }
 0x5fb   : > { %10387 = vmatmul.mubr.bf16.gmra.mrb[20].mxu1 %v13914_v20  ;;  %v8084_v20 = vrot.slane %v8872_v4, 3 }
 0x5fc   : > { %10390 = vmatprep.mubr.bf16.mxu1 %v13915_v63  ;;  %v13523_v63 = vld [vmem:[%s11873_s8 + $0x38] sm:$0xff]  }
 0x603   : > { %10391 = vmatmul.mubr.bf16.gmra.mrb[24].mxu1 %v13916_v36 }
 0x604   : > { %10394 = vmatprep.mubr.bf16.mxu1 %v13917_v30 }
 0x60b   : > { %10395 = vmatmul.mubr.bf16.gmra.mrb[28].mxu1 %v13918_v11  ;;  %v8876_v11 = vunpack.c.l.bf16 %v9020_v19 }
 0x60c   : > { %10398 = vmatprep.mubr.bf16.mxu1 %v7293_v5 }
 0x613   : > { %10399 = vmatmul.mubr.bf16.gmra.mrb[32].mxu1 %v7295_v48  ;;  %v8877_v48 = vunpack.c.h.bf16 %v9020_v19 }
 0x614   : > { %10418 = vmatprep.mubr.bf16.mxu1 %v13209_v15 }
 0x61b   : > { %10419 = vmatmul.mubr.bf16.vlgmr.msra.gmra.mrb[0].mxu1 %v13205_v6  ;;  %v7575_v6 = vld [vmem:[#allocation2 + $0xa8] sm:$0x3] }
 0x61c   : > { %10422 = vmatprep.mubr.bf16.mxu1 %v13212_v8  ;;  %v7670_v15 = vshrl.u32 %v7575_v6, 16  ;;  %v7673_v8 = vshll.u32 %v7575_v6, 16 }
 0x61e   : > { %v7672_v14 = vrot.slane %v7670_v15, 1  ;;  %v7675_v24 = vrot.slane %v7673_v8, 2 }
 0x623   : > { %10423 = vmatmul.mubr.bf16.gmra.mrb[4].mxu1 %v13920_v55  ;;  %v8873_v55 = vunpack.c.h.bf16 %v9019_v3 }
 0x624   : > { %10426 = vmatprep.mubr.bf16.mxu1 %v13921_v29 }
 0x62b   : > { %10427 = vmatmul.mubr.bf16.gmra.mrb[8].mxu1 %v13922_v45 }
 0x62c   : > { %10430 = vmatprep.mubr.bf16.mxu1 %v13923_v59 }
 0x633   : > { %10431 = vmatmul.mubr.bf16.gmra.mrb[12].mxu1 %v13924_v33 }
 0x634   : > { %10434 = vmatprep.mubr.bf16.mxu1 %v13925_v51  ;;  %v8880_v51 = vunpack.c.l.bf16 %v13523_v63 }
 0x63b   : > { %10435 = vmatmul.mubr.bf16.gmra.mrb[16].mxu1 %v13255_v23  ;;  %v7676_v23 = vor.u32 %v7675_v24, %v7672_v14  ;;  %v8085_v14 = vsel %vm3883_vm5, %v8082_v46, %v8084_v20 }
 0x63c   : > { %10438 = vmatprep.mubr.bf16.mxu1 %v13262_v52 }
 0x63d   : > { %v7677_v52 = vsel %vm2140_vm2, %v13291_v9, %v7676_v23  ;;  %v13509_v9 = vld [vmem:[%s13686_s4] ss:$0 sm:$0xff] }
 0x643   : > { %10439 = vmatmul.mubr.bf16.gmra.mrb[20].mxu1 %v13270_v13  ;;  %v9016_v13 = vld [vmem:[%s11873_s8 + $0x10] sm:$0xff]  }
 0x644   : > { %10442 = vmatprep.mubr.bf16.mxu1 %v13278_v44  ;;  %v7957_v44 = vld [vmem:[%s11873_s8 + $0x8] sm:$0xe]  ;;  %v8861_v21 = vunpack.c.h.bf16 %v9016_v13 }
 0x645   : > { %v7994_v61 = vunpack.c.l.bf16 %v7957_v44  ;;  %v8088_v44 = vrot.slane %v8876_v11, 3 }
 0x647   : > { %v8069_v22 = vrot.slane %v7994_v61, 3  ;;  %v9022_v61 = vld [vmem:[%s11873_s8 + $0x40] sm:$0xff]  }
 0x64b   : > { %10443 = vmatmul.mubr.bf16.gmra.mrb[24].mxu1 %v13285_v7  ;;  %v9017_v7 = vld [vmem:[%s11873_s8 + $0x18] sm:$0xff]  }
 0x64c   : > { %10446 = vmatprep.mubr.bf16.mxu1 %v13289_v25  ;;  %v8860_v25 = vunpack.c.l.bf16 %v9016_v13  ;;  %v8864_v0 = vunpack.c.l.bf16 %v9017_v7  ;;  %v8865_v47 = vunpack.c.h.bf16 %v9017_v7 }
 0x64e   : > { %v8072_v42 = vrot.slane %v8860_v25, 3  ;;  %v8076_v31 = vrot.slane %v8864_v0, 3  ;;  %v8078_v38 = vrot.slane %v8865_v47, 3  ;;  %v8090_v25 = vrot.slane %v8877_v48, 3 }
 0x64f   : > { %v8092_v0 = vrot.slane %v8880_v51, 3 }
 0x650   : > { %v8079_v33 = vsel %vm3883_vm5, %v8076_v31, %v8078_v38  ;;  %v8081_v13 = vsel %vm3883_vm5, %v8078_v38, %v8080_v53 }
 0x651   : > { %v8093_v47 = vsel %vm3883_vm5, %v8090_v25, %v8092_v0 }
 0x653   : > { %10447 = vmatmul.mubr.bf16.gmra.mrb[28].mxu1 %v13294_v54  ;;  %v8074_v54 = vrot.slane %v8861_v21, 3  ;;  %v8086_v21 = vrot.slane %v8873_v55, 3 }
 0x654   : > { %10450 = vmatprep.mubr.bf16.mxu1 %v13298_v26  ;;  %v8070_v26 = vrot.slane %v7995_v27, 3 }
 0x655   : > { %v8075_v58 = vsel %vm3883_vm5, %v8072_v42, %v8074_v54  ;;  %v8077_v56 = vsel %vm3883_vm5, %v8074_v54, %v8076_v31  ;;  %v9023_v31 = vld [vmem:[%s11873_s8 + $0x48] sm:$0xff]   ;;  %v8089_v4 = vsel %vm3883_vm5, %v8086_v21, %v8088_v44 }
 0x656   : > { %v8071_v43 = vsel %vm3883_vm5, %v8069_v22, %v8070_v26  ;;  %v8073_v32 = vsel %vm3883_vm5, %v8070_v26, %v8072_v42  ;;  %v8884_v22 = vunpack.c.l.bf16 %v9022_v61  ;;  %v8885_v26 = vunpack.c.h.bf16 %v9022_v61 }
 0x658   : > { %v8096_v46 = vrot.slane %v8884_v22, 3 }
 0x65b   : > { %10451 = vmatmul.mubr.bf16.gmra.mrb[32].mxu1 %v7677_v52 }
 0x6ee   : > { %v10420_v34 = vpop.f32.mrb[0].mxu1 }
 0x6ef   : > { %v10490_v40 = vadd.f32 %v10420_v34, %v13509_v9  ;;  %v7778_v50 = vpop.f32.mrb[1].mxu1  ;;  %v8091_v34 = vsel %vm3883_vm5, %v8088_v44, %v8090_v25 }
 0x6f0   : > { %v10491_v62 = vadd.f32 %v13509_v9, %v7778_v50  ;;  %v10421_v10 = vpop.f32.mrb[2].mxu1 }
 0x6f1   : > { %v8180_v57 = vadd.f32 %v10490_v40, %v8075_v58  ;;  %v10492_v28 = vadd.f32 %v10421_v10, %v13509_v9  ;;  %v7781_v12 = vpop.f32.mrb[3].mxu1  ;;  %v8087_v58 = vsel %vm3883_vm5, %v8084_v20, %v8086_v21 }
 0x6f2   : > { %v8178_v60 = vadd.f32 %v10491_v62, %v8071_v43  ;;  %v10493_v17 = vadd.f32 %v13509_v9, %v7781_v12  ;;  %v8881_v62 = vunpack.c.h.bf16 %v13523_v63 }
 0x6f3   : > { %v8181_v41 = vadd.f32 %v10492_v28, %v8077_v56  ;;  %v8216_v36 = vmax.f32 %v8180_v57, 0.0  ;;  %v8888_v57 = vunpack.c.l.bf16 %v9023_v31 }
 0x6f4   : > { %v8179_v16 = vadd.f32 %v10493_v17, %v8073_v32  ;;  %v8214_v2 = vmax.f32 %v8178_v60, 0.0  ;;  %v8098_v60 = vrot.slane %v8885_v26, 3 }
 0x6f5   : > { %v8217_v30 = vmax.f32 %v8181_v41, 0.0  ;;  %v9024_v41 = vld [vmem:[%s11873_s8 + $0x50] sm:$0xff]   ;;  %v8100_v63 = vrot.slane %v8888_v57, 3 }
 0x6f6   : > { %v8215_v5 = vmax.f32 %v8179_v16, 0.0  ;;  %v10424_v35 = vpop.f32.mrb[4].mxu1  ;;  %v8094_v16 = vrot.slane %v8881_v62, 3  ;;  %v8099_v11 = vsel %vm3883_vm5, %v8096_v46, %v8098_v60  ;;  %v8893_v55 = vunpack.c.h.bf16 %v9024_v41 }
 0x6f7   : > { %v8934_v29 = vpack.c.bf16 %v8217_v30, %v8216_v36  ;;  %v10494_v45 = vadd.f32 %v10424_v35, %v13509_v9  ;;  %v7794_v59 = vpop.f32.mrb[5].mxu1  ;;  %v13553_v36 = vld [vmem:[%s11873_s8 + $0x58] sm:$0xff]  }
 0x6f8   : > { %v8929_v6 = vpack.c.bf16 %v8215_v5, %v8214_v2  ;;  %v10495_v15 = vadd.f32 %v13509_v9, %v7794_v59  ;;  %v10425_v8 = vpop.f32.mrb[6].mxu1  ;;  %v8892_v2 = vunpack.c.l.bf16 %v9024_v41  ;;  %v8095_v51 = vsel %vm3883_vm5, %v8092_v0, %v8094_v16 }
 0x6f9   : > { %9033 = vst [vmem:[%s13531_s15 + $0x8] sm:$0xff] %v8934_v29   ;;  %v8184_v24 = vadd.f32 %v10494_v45, %v8083_v18  ;;  %v10496_v23 = vadd.f32 %v10425_v8, %v13509_v9  ;;  %v7797_v52 = vpop.f32.mrb[7].mxu1  ;;  %v8889_v29 = vunpack.c.h.bf16 %v9023_v31  ;;  %v8097_v44 = vsel %vm3883_vm5, %v8094_v16, %v8096_v46 }
 0x6fa   : > { %8930 = vst [vmem:[%s13531_s15] sm:$0xff] %v8929_v6   ;;  %v8182_v1 = vadd.f32 %v10495_v15, %v8079_v33  ;;  %v10497_v7 = vadd.f32 %v13509_v9, %v7797_v52  ;;  %v8896_v6 = vunpack.c.l.bf16 %v13553_v36  ;;  %v8106_v21 = vrot.slane %v8893_v55, 3 }
 0x6fb   : > { %v8185_v27 = vadd.f32 %v10496_v23, %v8085_v14  ;;  %v8220_v54 = vmax.f32 %v8184_v24, 0.0  ;;  %v8101_v24 = vsel %vm3883_vm5, %v8098_v60, %v8100_v63  ;;  %v8102_v61 = vrot.slane %v8889_v29, 3 }
 0x6fc   : > { %v8183_v42 = vadd.f32 %v10497_v7, %v8081_v13  ;;  %v8218_v49 = vmax.f32 %v8182_v1, 0.0  ;;  %v8104_v1 = vrot.slane %v8892_v2, 3 }
 0x6fd   : > { %v8221_v37 = vmax.f32 %v8185_v27, 0.0  ;;  %v9026_v27 = vld [vmem:[%s11873_s8 + $0x60] sm:$0xff]  }
 0x6fe   : > { %v8219_v39 = vmax.f32 %v8183_v42, 0.0  ;;  %v10428_v3 = vpop.f32.mrb[8].mxu1  ;;  %v8108_v42 = vrot.slane %v8896_v6, 3  ;;  %v8900_v26 = vunpack.c.l.bf16 %v9026_v27  ;;  %v8901_v31 = vunpack.c.h.bf16 %v9026_v27 }
 0x6ff   : > { %v8944_v40 = vpack.c.bf16 %v8221_v37, %v8220_v54  ;;  %v10498_v50 = vadd.f32 %v10428_v3, %v13509_v9  ;;  %v7810_v43 = vpop.f32.mrb[9].mxu1  ;;  %v8105_v57 = vsel %vm3883_vm5, %v8102_v61, %v8104_v1 }
 0x700   : > { %v8939_v10 = vpack.c.bf16 %v8219_v39, %v8218_v49  ;;  %v10499_v56 = vadd.f32 %v13509_v9, %v7810_v43  ;;  %v10429_v32 = vpop.f32.mrb[10].mxu1  ;;  %v9027_v49 = vld [vmem:[%s11873_s8 + $0x68] sm:$0xff]   ;;  %v8109_v62 = vsel %vm3883_vm5, %v8106_v21, %v8108_v42  ;;  %v8112_v60 = vrot.slane %v8900_v26, 3 }
 0x701   : > { %9035 = vst [vmem:[%s13531_s15 + $0x18] sm:$0xff] %v8944_v40   ;;  %v8188_v28 = vadd.f32 %v10498_v50, %v8091_v34  ;;  %v10500_v12 = vadd.f32 %v10429_v32, %v13509_v9  ;;  %v7813_v53 = vpop.f32.mrb[11].mxu1  ;;  %v8103_v40 = vsel %vm3883_vm5, %v8100_v63, %v8102_v61 }
 0x702   : > { %9034 = vst [vmem:[%s13531_s15 + $0x10] sm:$0xff] %v8939_v10   ;;  %v8186_v17 = vadd.f32 %v10499_v56, %v8087_v58  ;;  %v10501_v19 = vadd.f32 %v13509_v9, %v7813_v53  ;;  %v8107_v58 = vsel %vm3883_vm5, %v8104_v1, %v8106_v21  ;;  %v8897_v10 = vunpack.c.h.bf16 %v13553_v36 }
 0x703   : > { %v8189_v38 = vadd.f32 %v10500_v12, %v8093_v47  ;;  %v8224_v30 = vmax.f32 %v8188_v28, 0.0  ;;  %v8904_v28 = vunpack.c.l.bf16 %v9027_v49 }
 0x704   : > { %v8187_v20 = vadd.f32 %v10501_v19, %v8089_v4  ;;  %v8222_v5 = vmax.f32 %v8186_v17, 0.0  ;;  %v8114_v17 = vrot.slane %v8901_v31, 3 }
 0x705   : > { %v8225_v18 = vmax.f32 %v8189_v38, 0.0  ;;  %v9028_v38 = vld [vmem:[%s11873_s8 + $0x70] sm:$0xff]   ;;  %v8116_v36 = vrot.slane %v8904_v28, 3 }
 0x706   : > { %v8223_v35 = vmax.f32 %v8187_v20, 0.0  ;;  %v10432_v48 = vpop.f32.mrb[12].mxu1  ;;  %v8110_v20 = vrot.slane %v8897_v10, 3  ;;  %v8115_v2 = vsel %vm3883_vm5, %v8112_v60, %v8114_v17  ;;  %v8909_v29 = vunpack.c.h.bf16 %v9028_v38 }
 0x707   : > { %v8954_v45 = vpack.c.bf16 %v8225_v18, %v8224_v30  ;;  %v10502_v59 = vadd.f32 %v10432_v48, %v13509_v9  ;;  %v7826_v33 = vpop.f32.mrb[13].mxu1  ;;  %v13581_v30 = vld [vmem:[%s11873_s8 + $0x78] sm:$0xff]  }
 0x708   : > { %v8949_v15 = vpack.c.bf16 %v8223_v35, %v8222_v5  ;;  %v10503_v8 = vadd.f32 %v13509_v9, %v7826_v33  ;;  %v10433_v14 = vpop.f32.mrb[14].mxu1  ;;  %v8908_v5 = vunpack.c.l.bf16 %v9028_v38  ;;  %v8111_v6 = vsel %vm3883_vm5, %v8108_v42, %v8110_v20 }
 0x709   : > { %9037 = vst [vmem:[%s13531_s15 + $0x28] sm:$0xff] %v8954_v45   ;;  %v8192_v23 = vadd.f32 %v10502_v59, %v8099_v11  ;;  %v10504_v52 = vadd.f32 %v10433_v14, %v13509_v9  ;;  %v7829_v13 = vpop.f32.mrb[15].mxu1  ;;  %v8905_v45 = vunpack.c.h.bf16 %v9027_v49  ;;  %v8113_v1 = vsel %vm3883_vm5, %v8110_v20, %v8112_v60 }
 0x70a   : > { %9036 = vst [vmem:[%s13531_s15 + $0x20] sm:$0xff] %v8949_v15   ;;  %v8190_v7 = vadd.f32 %v10503_v8, %v8095_v51  ;;  %v10505_v25 = vadd.f32 %v13509_v9, %v7829_v13  ;;  %v8912_v15 = vunpack.c.l.bf16 %v13581_v30  ;;  %v8122_v61 = vrot.slane %v8909_v29, 3 }
 0x70b   : > { %v8193_v0 = vadd.f32 %v10504_v52, %v8101_v24  ;;  %v8228_v37 = vmax.f32 %v8192_v23, 0.0  ;;  %v8117_v23 = vsel %vm3883_vm5, %v8114_v17, %v8116_v36  ;;  %v8118_v27 = vrot.slane %v8905_v45, 3 }
 0x70c   : > { %v8191_v54 = vadd.f32 %v10505_v25, %v8097_v44  ;;  %v8226_v39 = vmax.f32 %v8190_v7, 0.0  ;;  %v8120_v7 = vrot.slane %v8908_v5, 3  ;;  %v7993_v5 = vld [vmem:[%s11873_s8 + $0x98] sm:$0x3] }
 0x70d   : > { %v8229_v22 = vmax.f32 %v8193_v0, 0.0  ;;  %v9030_v0 = vld [vmem:[%s11873_s8 + $0x80] sm:$0xff]  }
 0x70e   : > { %v8227_v3 = vmax.f32 %v8191_v54, 0.0  ;;  %v10436_v34 = vpop.f32.mrb[16].mxu1  ;;  %v8124_v54 = vrot.slane %v8912_v15, 3  ;;  %v8916_v31 = vunpack.c.l.bf16 %v9030_v0  ;;  %v8917_v49 = vunpack.c.h.bf16 %v9030_v0 }
 0x70f   : > { %v8964_v50 = vpack.c.bf16 %v8229_v22, %v8228_v37  ;;  %v10506_v43 = vadd.f32 %v10436_v34, %v13509_v9  ;;  %v7842_v47 = vpop.f32.mrb[17].mxu1  ;;  %v8121_v28 = vsel %vm3883_vm5, %v8118_v27, %v8120_v7 }
 0x710   : > { %v8959_v56 = vpack.c.bf16 %v8227_v3, %v8226_v39  ;;  %v10507_v32 = vadd.f32 %v13509_v9, %v7842_v47  ;;  %v10437_v4 = vpop.f32.mrb[18].mxu1  ;;  %v9031_v39 = vld [vmem:[%s11873_s8 + $0x88] sm:$0xff]   ;;  %v8125_v10 = vsel %vm3883_vm5, %v8122_v61, %v8124_v54  ;;  %v8128_v17 = vrot.slane %v8916_v31, 3 }
 0x711   : > { %9039 = vst [vmem:[%s13531_s15 + $0x38] sm:$0xff] %v8964_v50   ;;  %v8196_v12 = vadd.f32 %v10506_v43, %v8107_v58  ;;  %v10508_v53 = vadd.f32 %v10437_v4, %v13509_v9  ;;  %v7845_v46 = vpop.f32.mrb[19].mxu1  ;;  %v8119_v50 = vsel %vm3883_vm5, %v8116_v36, %v8118_v27  ;;  %v8921_v15 = vunpack.c.h.bf16 %v9031_v39 }
 0x712   : > { %9038 = vst [vmem:[%s13531_s15 + $0x30] sm:$0xff] %v8959_v56   ;;  %v8194_v19 = vadd.f32 %v10507_v32, %v8103_v40  ;;  %v10509_v41 = vadd.f32 %v13509_v9, %v7845_v46  ;;  %v8123_v40 = vsel %vm3883_vm5, %v8120_v7, %v8122_v61  ;;  %v8913_v56 = vunpack.c.h.bf16 %v13581_v30 }
 0x713   : > { %v8197_v16 = vadd.f32 %v10508_v53, %v8109_v62  ;;  %v8232_v18 = vmax.f32 %v8196_v12, 0.0  ;;  %v8920_v12 = vunpack.c.l.bf16 %v9031_v39 }
 0x714   : > { %v8195_v63 = vadd.f32 %v10509_v41, %v8105_v57  ;;  %v8230_v35 = vmax.f32 %v8194_v19, 0.0  ;;  %v8130_v19 = vrot.slane %v8917_v49, 3  ;;  %v8126_v20 = vrot.slane %v8913_v56, 3 }
 0x715   : > { %v8233_v11 = vmax.f32 %v8197_v16, 0.0  ;;  %v8132_v30 = vrot.slane %v8920_v12, 3 }
 0x716   : > { %v8231_v48 = vmax.f32 %v8195_v63, 0.0  ;;  %v10440_v55 = vpop.f32.mrb[20].mxu1  ;;  %v9032_v63 = vld [vmem:[%s11873_s8 + $0x90] sm:$0xff]   ;;  %v8129_v7 = vsel %vm3883_vm5, %v8126_v20, %v8128_v17  ;;  %s11548_s8 = sshll.u32 %s11629_s10, 4  ;;  %s11549_s8 = int_to_ptr.vmem [resolvable:$false] %s11548_s8 }
 0x717   : > { %v8974_v59 = vpack.c.bf16 %v8233_v11, %v8232_v18  ;;  %v10510_v33 = vadd.f32 %v10440_v55, %v13509_v9  ;;  %v7858_v51 = vpop.f32.mrb[21].mxu1  ;;  %v8924_v29 = vunpack.c.l.bf16 %v9032_v63  ;;  %v8925_v45 = vunpack.c.h.bf16 %v9032_v63  ;;  %s11550_s27 = scalar_lea.vmem %s11549_s8, 4608  ;;  %p11551_p12 = scmp.lt.s32.totalorder %s13636_s11, %s11549_s8 }
 0x718   : > { %v8969_v8 = vpack.c.bf16 %v8231_v48, %v8230_v35  ;;  %v10511_v14 = vadd.f32 %v13509_v9, %v7858_v51  ;;  %v10441_v24 = vpop.f32.mrb[22].mxu1  ;;  %p11552_p1 = scmp.lt.s32.totalorder %s11550_s27, %s11544_s7 }
 0x719   : > { %9041 = vst [vmem:[%s13531_s15 + $0x48] sm:$0xff] %v8974_v59   ;;  %v8200_v52 = vadd.f32 %v10510_v33, %v8115_v2  ;;  %v10512_v13 = vadd.f32 %v10441_v24, %v13509_v9  ;;  %v7861_v44 = vpop.f32.mrb[23].mxu1  ;;  %v8131_v2 = vsel %vm3883_vm5, %v8128_v17, %v8130_v19  ;;  %v8136_v61 = vrot.slane %v8924_v29, 3 }
 0x71a   : > { %9040 = vst [vmem:[%s13531_s15 + $0x40] sm:$0xff] %v8969_v8   ;;  %v8198_v25 = vadd.f32 %v10511_v14, %v8111_v6  ;;  %v10513_v21 = vadd.f32 %v13509_v9, %v7861_v44  ;;  %v8127_v6 = vsel %vm3883_vm5, %v8124_v54, %v8126_v20  ;;  %v8138_v27 = vrot.slane %v8925_v45, 3  ;;  %p11553_p2 = por %p11552_p1, %p11551_p12 }
 0x71b   : > { %v8201_v42 = vadd.f32 %v10512_v13, %v8117_v23  ;;  %v8236_v22 = vmax.f32 %v8200_v52, 0.0  ;;  %v8133_v23 = vsel %vm3883_vm5, %v8130_v19, %v8132_v30  ;;  %v8030_v52 = vunpack.c.l.bf16 %v7993_v5 }
 0x71c   : > { %v8199_v37 = vadd.f32 %v10513_v21, %v8113_v1  ;;  %v8234_v3 = vmax.f32 %v8198_v25, 0.0  ;;  %p11554_p4 = pnand %p11553_p2, %p11547_p7 }
 0x71d   : > { %v8237_v26 = vmax.f32 %v8201_v42, 0.0  ;;  %v8134_v42 = vrot.slane %v8921_v15, 3 }
 0x71e   : > { %v8235_v34 = vmax.f32 %v8199_v37, 0.0  ;;  %v10444_v58 = vpop.f32.mrb[24].mxu1  ;;  %v8140_v37 = vrot.slane %v8030_v52, 3 }
 0x71f   : > { %v8984_v43 = vpack.c.bf16 %v8237_v26, %v8236_v22  ;;  %v10514_v47 = vadd.f32 %v10444_v58, %v13509_v9  ;;  %v7874_v62 = vpop.f32.mrb[25].mxu1 }
 0x720   : > { %v8979_v32 = vpack.c.bf16 %v8235_v34, %v8234_v3  ;;  %v10515_v4 = vadd.f32 %v13509_v9, %v7874_v62  ;;  %v10445_v57 = vpop.f32.mrb[26].mxu1  ;;  %v8139_v3 = vsel %vm3883_vm5, %v8136_v61, %v8138_v27 }
 0x721   : > { %9043 = vst [vmem:[%s13531_s15 + $0x58] sm:$0xff] %v8984_v43   ;;  %v8204_v53 = vadd.f32 %v10514_v47, %v8123_v40  ;;  %v10516_v46 = vadd.f32 %v10445_v57, %v13509_v9  ;;  %v7877_v60 = vpop.f32.mrb[27].mxu1  ;;  %v8137_v57 = vsel %vm3883_vm5, %v8134_v42, %v8136_v61 }
 0x722   : > { %9042 = vst [vmem:[%s13531_s15 + $0x50] sm:$0xff] %v8979_v32   ;;  %v8202_v41 = vadd.f32 %v10515_v4, %v8119_v50  ;;  %v10517_v38 = vadd.f32 %v13509_v9, %v7877_v60  ;;  %v8135_v50 = vsel %vm3883_vm5, %v8132_v30, %v8134_v42 }
 0x723   : > { %v8205_v16 = vadd.f32 %v10516_v46, %v8125_v10  ;;  %v8240_v18 = vmax.f32 %v8204_v53, 0.0  ;;  %v8141_v10 = vsel %vm3883_vm5, %v8138_v27, %v8140_v37 }
 0x724   : > { %v8203_v36 = vadd.f32 %v10517_v38, %v8121_v28  ;;  %v8238_v35 = vmax.f32 %v8202_v41, 0.0 }
 0x725   : > { %v8241_v11 = vmax.f32 %v8205_v16, 0.0 }
 0x726   : > { %v8239_v48 = vmax.f32 %v8203_v36, 0.0  ;;  %v10448_v55 = vpop.f32.mrb[28].mxu1 }
 0x727   : > { %v8994_v59 = vpack.c.bf16 %v8241_v11, %v8240_v18  ;;  %v10518_v33 = vadd.f32 %v10448_v55, %v13509_v9  ;;  %v7890_v51 = vpop.f32.mrb[29].mxu1 }
 0x728   : > { %v8989_v8 = vpack.c.bf16 %v8239_v48, %v8238_v35  ;;  %v10519_v14 = vadd.f32 %v13509_v9, %v7890_v51  ;;  %v10449_v24 = vpop.f32.mrb[30].mxu1 }
 0x729   : > { %9045 = vst [vmem:[%s13531_s15 + $0x68] sm:$0xff] %v8994_v59   ;;  %v8208_v13 = vadd.f32 %v10518_v33, %v8131_v2  ;;  %v10520_v44 = vadd.f32 %v10449_v24, %v13509_v9  ;;  %v7893_v1 = vpop.f32.mrb[31].mxu1 }
 0x72a   : > { %9044 = vst [vmem:[%s13531_s15 + $0x60] sm:$0xff] %v8989_v8   ;;  %v8206_v25 = vadd.f32 %v10519_v14, %v8127_v6  ;;  %v10521_v21 = vadd.f32 %v13509_v9, %v7893_v1 }
 0x72b   : > { %v8209_v0 = vadd.f32 %v10520_v44, %v8133_v23  ;;  %v8244_v22 = vmax.f32 %v8208_v13, 0.0 }
 0x72c   : > { %v8207_v54 = vadd.f32 %v10521_v21, %v8129_v7  ;;  %v8242_v31 = vmax.f32 %v8206_v25, 0.0 }
 0x72d   : > { %v8245_v26 = vmax.f32 %v8209_v0, 0.0 }
 0x72e   : > { %v8243_v49 = vmax.f32 %v8207_v54, 0.0  ;;  %v10452_v39 = vpop.f32.mrb[32].mxu1 }
 0x72f   : > { %v9004_v34 = vpack.c.bf16 %v8245_v26, %v8244_v22  ;;  %v10522_v58 = vadd.f32 %v10452_v39, %v13509_v9  ;;  %v7906_v40 = vpop.f32.mrb[33].mxu1 }
 0x730   : > { %v8999_v43 = vpack.c.bf16 %v8243_v49, %v8242_v31  ;;  %v10523_v47 = vadd.f32 %v13509_v9, %v7906_v40  ;;  %v10453_v62 = vpop.f32.mrb[34].mxu1 }
 0x731   : > { %9047 = vst [vmem:[%s13531_s15 + $0x78] sm:$0xff] %v9004_v34   ;;  %v8212_v56 = vadd.f32 %v10522_v58, %v8139_v3  ;;  %v10524_v32 = vadd.f32 %v10453_v62, %v13509_v9  ;;  %v7909_v4 = vpop.f32.mrb[35].mxu1 }
 0x732   : > { %9046 = vst [vmem:[%s13531_s15 + $0x70] sm:$0xff] %v8999_v43   ;;  %v8210_v28 = vadd.f32 %v10523_v47, %v8135_v50  ;;  %v10525_v12 = vadd.f32 %v13509_v9, %v7909_v4 }
 0x733   : > { %v8213_v53 = vadd.f32 %v10524_v32, %v8141_v10  ;;  %v8248_v60 = vmax.f32 %v8212_v56, 0.0 }
 0x734   : > { %v8211_v46 = vadd.f32 %v10525_v12, %v8137_v57  ;;  %v8246_v19 = vmax.f32 %v8210_v28, 0.0 }
 0x735   : > { %v8249_v17 = vmax.f32 %v8213_v53, 0.0 }
 0x736   : > { %v8247_v41 = vmax.f32 %v8211_v46, 0.0 }
 0x737   : > { %v9014_v38 = vpack.c.bf16 %v8249_v17, %v8248_v60 }
 0x738   : > { %v9009_v16 = vpack.c.bf16 %v8247_v41, %v8246_v19 }
 0x739   : > { %9049 = vst [vmem:[%s13531_s15 + $0x88] sm:$0xff] %v9014_v38  }
 0x73a   : > { %9048 = vst [vmem:[%s13531_s15 + $0x80] sm:$0xff] %v9009_v16  }
 0x73b   : > { %11557 = shalt.err (!%p11554_p4)
}
 0x73c   : > { %s11558_s29 = scalar_lea.hbm %s13634_s16, 2304  ;;  %s11562_s13 = scalar_lea.hbm %s13688_s6, 4608 }
 0x73d   : > { %p11559_p9 = scmp.ne.s32.totalorder %s13634_s16, %s11558_s29  ;;  %p11563_p8 = scmp.lt.u32.totalorder %s13634_s16, %s13688_s6 }
 0x73e   : > { %p11564_p13 = scmp.lt.u32.totalorder %s11562_s13, %s11558_s29  ;;  %p11566_p10 = scmp.lt.u32.totalorder %s11558_s29, %s13634_s16 }
 0x73f   : > { %p11560_p0 = pnand %p11559_p9, %p11818_p5 }
 0x740   : > { %p11565_p6 = por %p11564_p13, %p11563_p8 }
 0x741   : > { %p11561_p11 = pneg %p11560_p0 }
 0x742   : > { %p11567_p3 = por %p11566_p10, %p11565_p6 }
 0x744   : > { %p11568_p7 = pnand %p11567_p3, %p11561_p11 }
 0x746   : > { %11571 = shalt.err (!%p11568_p7)
}
 0x747   : > { %s11630_s30 = smov 64   ;;  %s11631_s9 = smov 4  }
 0x748   : > { %11121 = dma.vmem_to_hbm [thread:$0]  (%p11818_p5), %s13636_s11, 2304, %s13634_s16, %s8431_s25, %s11630_s30, %s11630_s30, %s11631_s9  }
 0x749 PF: > { %s8459_s7 = sand.u32 1, %s11606_s21   ;;  %p13926_p12 = scmp.ne.s32.totalorder %s13753_s28, 0 }
 0x74a   : > { %p13927_p1 = scmp.ge.s32.totalorder %s11618_s24, 2  ;;  %s8460_s10 = scalar_lea.sflag [#allocation5], %s8459_s7 }
 0x74c   : > { %p11138_p2 = pnand %p13927_p1, %p13926_p12 }
 0x74e   : > { %11601 = dma.done.wait (!%p11138_p2), %s8460_s10, 2304  }
 0x74f   : > { %11603 = vsyncadd (!%p11138_p2), %s8460_s10, 4294964992  ;;  %p21_p4 = scmp.ge.s32.totalorder %s11804_s14, 4   ;;  %s13928_s21 = smov %s11610_s22 }
 0x750   : > { %s13929_s22 = smov %s11614_s23  ;;  %s13930_s23 = smov %s11814_s17 }
 0x751   : > { %s13931_s24 = smov %s11804_s14  ;;  %23 = sbr.rel (!%p21_p4) target bundleno = 7 (0x7), region = 117 }
 0x758   :  { %8465 = vsyncpa [#allocation4], 1 }
 0x759   :  { %8467 = vsyncpa [#allocation4 + $0x1], 1 }
 0x75a   :  { %8468 = vsyncpa [#allocation7], 1 }
 0x75b   :  { %8469 = vsyncpa [#allocation10], 1 }
 0x75c   :  { %8470 = vsyncpa [#allocation5], 1 }
 0x75d   :  { %8472 = vsyncpa [#allocation5 + $0x1], 1 }

</bundles_post_ra>
